<compile_context>
chip_gen: v6e
topology: v6e:2x2x1
jax: 0.10.0
libtpu: 0.0.40
codegen_flags: <defaults>
</compile_context>

<pallas_src>
import math
import functools

import jax
import jax.numpy as jnp
from jax.experimental import pallas as pl
from jax.experimental.pallas import tpu as pltpu


def _round_up(v, m):
    return (v + m - 1) // m * m


def _pick_vmem_limit_bytes():
    """Generation-aware scoped-VMEM limit (~75% of physical, 32..100 MiB)."""
    cap = 128 * 1024 * 1024
    try:
        cap = int(pltpu.get_tpu_info().vmem_capacity_bytes)
    except Exception:
        pass
    return int(max(32 * 1024 * 1024, min(100 * 1024 * 1024, (cap * 3) // 4)))


def _neighbor_embedding_kernel(
    # inputs
    x_ref,      # [N_pad, H_pad]   f32   node features (all nodes, resident)
    xnb_ref,    # [N_pad, H_pad]   bf16  embedding(z), precomputed in wrapper
    ei0_ref,    # [1, e_tile]      i32   scatter (dest) index; -1 => dropped edge
    ei1_ref,    # [e_tile, 1]      i32   gather (source) index
    ew_ref,     # [e_tile, 1]      f32   edge weight (distance)
    ea_ref,     # [e_tile, R_pad]  bf16  edge attributes (RBF expansion)
    dpw_ref,    # [R_pad, H_pad]   bf16  distance_proj weight (in, out)
    dpb_ref,    # [1, H_pad]       f32   distance_proj bias
    cwx_ref,    # [H_pad, H_pad]   f32   combine weight acting on x
    cwa_ref,    # [H_pad, H_pad]   f32   combine weight acting on aggregation
    cb_ref,     # [1, H_pad]       f32   combine bias
    # output
    o_ref,      # [N_pad, H_pad]
    # scratch
    acc_ref,    # [N_pad, H_pad]   f32   neighbour-message accumulator
    *, cutoff_lower, cutoff_upper,
):
    ei = pl.program_id(0)
    n_edge_tiles = pl.num_programs(0)

    N_pad, _ = acc_ref.shape
    e_tile = ea_ref.shape[0]

    # ---- accumulator init (once, at the first edge tile) --------------------
    @pl.when(ei == 0)
    def _init():
        acc_ref[...] = jnp.zeros_like(acc_ref)

    # ---- CosineCutoff on [e_tile, 1] (f32, folded into W below) -------------
    ew = ew_ref[...]
    if cutoff_lower > 0:
        C = 0.5 * (jnp.cos(math.pi * (2.0 * (ew - cutoff_lower)
                                      / (cutoff_upper - cutoff_lower) + 1.0)) + 1.0)
        C = C * (ew < cutoff_upper).astype(jnp.float32)
        C = C * (ew > cutoff_lower).astype(jnp.float32)
    else:
        C = 0.5 * (jnp.cos(ew * (math.pi / cutoff_upper)) + 1.0)
        C = C * (ew < cutoff_upper).astype(jnp.float32)

    # ---- W = distance_proj(edge_attr) * C   (bf16 operands, f32 accum) ------
    W = (jnp.dot(ea_ref[...], dpw_ref[...], preferred_element_type=jnp.float32)
         + dpb_ref[...]) * C                                     # [e_tile, H_pad] f32

    # ---- gather embedding(z)[edge_index[1]] via bf16 one-hot matmul ---------
    iota_n = jax.lax.broadcasted_iota(jnp.int32, (e_tile, N_pad), 1)
    gather1 = (ei1_ref[...] == iota_n).astype(jnp.bfloat16)       # [e_tile, N_pad]
    gathered = jnp.dot(gather1, xnb_ref[...],
                       preferred_element_type=jnp.float32)        # [e_tile, H_pad]
    msg = (W * gathered).astype(jnp.bfloat16)                     # single bf16 round

    # ---- scatter-add onto edge_index[0] (exact 0/1 one-hot in bf16) ---------
    # Self-loops and padded edges carry dest = -1 -> match no row -> exact drop.
    node_ids = jax.lax.broadcasted_iota(jnp.int32, (N_pad, e_tile), 0)
    scat = (ei0_ref[...] == node_ids).astype(jnp.bfloat16)        # [N_pad, e_tile]
    acc_ref[...] += jnp.dot(scat, msg, preferred_element_type=jnp.float32)

    # ---- finalize: combine(cat([x, agg])), once at the last edge tile -------
    @pl.when(ei == n_edge_tiles - 1)
    def _finalize():
        out = (jnp.dot(x_ref[...], cwx_ref[...],
                       preferred_element_type=jnp.float32)
               + jnp.dot(acc_ref[...], cwa_ref[...],
                         preferred_element_type=jnp.float32)
               + cb_ref[...])
        o_ref[...] = out.astype(o_ref.dtype)


def neighbor_embedding(z, x, edge_index, edge_weight, edge_attr, params,
                       cutoff_lower=0.0, cutoff_upper=5.0,
                       *, edge_tile=512):
    N, H = x.shape
    E, R = edge_attr.shape

    assert edge_tile % 128 == 0
    H_pad = _round_up(H, 128)
    R_pad = _round_up(R, 128)
    N_pad = _round_up(max(N, 1), 128)
    E_pad = _round_up(max(E, 1), edge_tile)
    n_edge_tiles = E_pad // edge_tile

    f32 = jnp.float32
    src = edge_index[0].astype(jnp.int32)   # dest of the scatter (index_add dim 0)
    dst = edge_index[1].astype(jnp.int32)   # source of the gather (index_select)
    # PyTorch drops self-loop edges; encode that (and padded edges) as dest = -1,
    # which matches no row of the scatter one-hot -> contributes exactly zero.
    src = jnp.where(src != dst, src, -1)

    ei0_row = jnp.full((1, E_pad), -1, jnp.int32).at[0, :E].set(src)
    ei1_col = jnp.zeros((E_pad, 1), jnp.int32).at[:E, 0].set(dst)
    ew_col = jnp.full((E_pad, 1), float(cutoff_upper) + 1.0, f32)
    ew_col = ew_col.at[:E, 0].set(edge_weight.astype(f32))
    ea_pad = (jnp.zeros((E_pad, R_pad), f32).at[:E, :R]
              .set(edge_attr.astype(f32)).astype(jnp.bfloat16))

    x_pad = jnp.zeros((N_pad, H_pad), f32).at[:N, :H].set(x.astype(f32))
    # Embedding lookup hoisted out of the kernel (plain XLA gather), bf16 input.
    xnb = jnp.zeros((N_pad, H_pad), f32).at[:N, :H].set(
        params["embedding"][z.astype(jnp.int32)]).astype(jnp.bfloat16)

    dpw = (jnp.zeros((R_pad, H_pad), f32).at[:R, :H]
           .set(params["dproj_w"]).astype(jnp.bfloat16))
    dpb = jnp.zeros((1, H_pad), f32).at[0, :H].set(params["dproj_b"].reshape(-1))
    cwx = jnp.zeros((H_pad, H_pad), f32).at[:H, :H].set(params["comb_w"][:H])
    cwa = jnp.zeros((H_pad, H_pad), f32).at[:H, :H].set(params["comb_w"][H:2 * H])
    cb = jnp.zeros((1, H_pad), f32).at[0, :H].set(params["comb_b"].reshape(-1))

    # Advisory cost estimate (edge-side terms counted once; no node-tile factor).
    mm_flops = 2 * (
        E_pad * R_pad * H_pad          # distance proj
        + E_pad * N_pad * H_pad        # one-hot gather
        + N_pad * E_pad * H_pad        # one-hot scatter
        + 2 * N_pad * H_pad * H_pad)   # combine
    cost = pl.CostEstimate(
        flops=int(mm_flops),
        transcendentals=int(E_pad),
        bytes_accessed=int(
            x_pad.nbytes + xnb.nbytes + ei0_row.nbytes + ei1_col.nbytes
            + ew_col.nbytes + ea_pad.nbytes + dpw.nbytes + dpb.nbytes
            + cwx.nbytes + cwa.nbytes + cb.nbytes + N_pad * H_pad * 4))

    kernel = functools.partial(_neighbor_embedding_kernel,
                               cutoff_lower=float(cutoff_lower),
                               cutoff_upper=float(cutoff_upper))

    out_pad = pl.pallas_call(
        kernel,
        out_shape=jax.ShapeDtypeStruct((N_pad, H_pad), x.dtype),
        grid_spec=pltpu.PrefetchScalarGridSpec(
            num_scalar_prefetch=0,
            grid=(n_edge_tiles,),
            in_specs=[
                pl.BlockSpec((N_pad, H_pad), lambda ei: (0, 0)),        # x (resident)
                pl.BlockSpec((N_pad, H_pad), lambda ei: (0, 0)),        # embedding(z)
                pl.BlockSpec((1, edge_tile), lambda ei: (0, ei)),       # dest index row
                pl.BlockSpec((edge_tile, 1), lambda ei: (ei, 0)),       # src index col
                pl.BlockSpec((edge_tile, 1), lambda ei: (ei, 0)),       # edge_weight
                pl.BlockSpec((edge_tile, R_pad), lambda ei: (ei, 0)),   # edge_attr bf16
                pl.BlockSpec((R_pad, H_pad), lambda ei: (0, 0)),        # dproj w (bf16)
                pl.BlockSpec((1, H_pad), lambda ei: (0, 0)),            # dproj b
                pl.BlockSpec((H_pad, H_pad), lambda ei: (0, 0)),        # comb w (x)
                pl.BlockSpec((H_pad, H_pad), lambda ei: (0, 0)),        # comb w (agg)
                pl.BlockSpec((1, H_pad), lambda ei: (0, 0)),            # comb b
            ],
            out_specs=pl.BlockSpec((N_pad, H_pad), lambda ei: (0, 0)),
            scratch_shapes=[
                pltpu.VMEM((N_pad, H_pad), jnp.float32),   # aggregation accumulator
            ],
        ),
        compiler_params=pltpu.CompilerParams(
            # single (reduction) grid axis: edge tiles accumulate into scratch
            dimension_semantics=("arbitrary",),
            vmem_limit_bytes=_pick_vmem_limit_bytes(),
        ),
        cost_estimate=cost,
        # NOTE: if the edge_attr DMA ever becomes exposed, add
        # pipeline_mode=pl.Buffered(3) on the edge-streamed specs above.
    )(x_pad, xnb, ei0_row, ei1_col, ew_col, ea_pad, dpw, dpb, cwx, cwa, cb)

    return out_pad[:N, :H]


def _reference(z, x, edge_index, edge_weight, edge_attr, params,
               cutoff_lower=0.0, cutoff_upper=5.0):
    # pure-JAX f32 reference mirroring the PyTorch forward
    ei0, ei1 = edge_index[0], edge_index[1]
    mask = (ei0 != ei1)
    if cutoff_lower > 0:
        C = 0.5 * (jnp.cos(math.pi * (2.0 * (edge_weight - cutoff_lower)
                                      / (cutoff_upper - cutoff_lower) + 1.0)) + 1.0)
        C = C * (edge_weight < cutoff_upper) * (edge_weight > cutoff_lower)
    else:
        C = 0.5 * (jnp.cos(edge_weight * math.pi / cutoff_upper) + 1.0)
        C = C * (edge_weight < cutoff_upper)
    C = C * mask
    W = (edge_attr @ params["dproj_w"] + params["dproj_b"]) * C[:, None]
    x_nb = params["embedding"][z]
    msg = W * x_nb[ei1]
    agg = jnp.zeros((z.shape[0], x.shape[1]), x.dtype).at[ei0].add(msg)
    return jnp.concatenate([x, agg], axis=1) @ params["comb_w"] + params["comb_b"]


if __name__ == "__main__":
    N, E, H, R, MAX_Z = 150, 400, 64, 32, 100

    key = jax.random.PRNGKey(0)
    ks = jax.random.split(key, 9)
    z = jax.random.randint(ks[0], (N,), 0, MAX_Z)
    x = jax.random.normal(ks[1], (N, H), jnp.float32)
    src = jax.random.randint(ks[2], (E,), 0, N)
    dst = jax.random.randint(ks[3], (E,), 0, N)
    src = src.at[:5].set(dst[:5])                 # guarantee some self-loops
    edge_index = jnp.stack([src, dst])            # [2, E]
    edge_weight = jax.random.uniform(ks[4], (E,), jnp.float32, 0.0, 6.0)
    edge_attr = jax.random.normal(ks[5], (E, R), jnp.float32)

    def xavier_uniform(k, shape):
        fan_in, fan_out = shape
        lim = math.sqrt(6.0 / (fan_in + fan_out))
        return jax.random.uniform(k, shape, jnp.float32, -lim, lim)

    params = {
        "embedding": jax.random.normal(ks[6], (MAX_Z, H), jnp.float32),
        # stored already transposed to [in, out] for row-major matmul
        "dproj_w": xavier_uniform(ks[7], (R, H)),
        "dproj_b": jnp.zeros((H,), jnp.float32),
        "comb_w": xavier_uniform(ks[8], (2 * H, H)),
        "comb_b": jnp.zeros((H,), jnp.float32),
    }

    # Exercise both CosineCutoff branches, a multi-tile edge grid (incl. a
    # padded edge tile) and the single-tile default edge_tile path.
    for lo, hi, et in [(0.0, 5.0, 128), (0.5, 4.0, 128), (0.0, 5.0, 512)]:
        out = neighbor_embedding(z, x, edge_index, edge_weight, edge_attr, params,
                                 cutoff_lower=lo, cutoff_upper=hi, edge_tile=et)
        out = jax.block_until_ready(out)
        ref = _reference(z, x, edge_index, edge_weight, edge_attr, params, lo, hi)
        assert out.shape == (N, H)
        # tolerance reflects deliberate bf16 casts (embedding, edge_attr,
        # dproj weight, message); structural errors would be O(1).
        err = jnp.max(jnp.abs(out - ref))
        assert jnp.allclose(out, ref, atol=3e-2, rtol=3e-2), \
            f"mismatch (lo={lo}, hi={hi}, edge_tile={et}): max abs err {err}"
    print("KERNEL_OK")
</pallas_src>

<mosaic_0001>
module attributes {stable_mosaic.version = 11 : i64} {
  func.func @_neighbor_embedding_kernel(%arg0: i32, %arg1: memref<256x128xf32, #tpu.memory_space<vmem>>, %arg2: memref<256x128xbf16, #tpu.memory_space<vmem>>, %arg3: memref<1x128xi32, #tpu.memory_space<vmem>>, %arg4: memref<128x1xi32, #tpu.memory_space<vmem>>, %arg5: memref<128x1xf32, #tpu.memory_space<vmem>>, %arg6: memref<128x128xbf16, #tpu.memory_space<vmem>>, %arg7: memref<128x128xbf16, #tpu.memory_space<vmem>>, %arg8: memref<1x128xf32, #tpu.memory_space<vmem>>, %arg9: memref<128x128xf32, #tpu.memory_space<vmem>>, %arg10: memref<128x128xf32, #tpu.memory_space<vmem>>, %arg11: memref<1x128xf32, #tpu.memory_space<vmem>>, %arg12: memref<256x128xf32, #tpu.memory_space<vmem>>, %arg13: memref<256x128xf32, #tpu.memory_space<vmem>>) attributes {dimension_semantics = [#tpu.dimension_semantics<arbitrary>], iteration_bounds = array<i64: 4>, scalar_prefetch = 0 : i64, scratch_operands = 1 : i64, tpu.core_type = #tpu.core_type<tc>, window_params = [{pipeline_mode = #tpu.pipeline_mode<synchronous>, transform_indices = @transform_0, window_bounds = array<i64: 256, 128>}, {pipeline_mode = #tpu.pipeline_mode<synchronous>, transform_indices = @transform_1, window_bounds = array<i64: 256, 128>}, {transform_indices = @transform_2, window_bounds = array<i64: 1, 128>}, {transform_indices = @transform_3, window_bounds = array<i64: 128, 1>}, {transform_indices = @transform_4, window_bounds = array<i64: 128, 1>}, {transform_indices = @transform_5, window_bounds = array<i64: 128, 128>}, {pipeline_mode = #tpu.pipeline_mode<synchronous>, transform_indices = @transform_6, window_bounds = array<i64: 128, 128>}, {pipeline_mode = #tpu.pipeline_mode<synchronous>, transform_indices = @transform_7, window_bounds = array<i64: 1, 128>}, {pipeline_mode = #tpu.pipeline_mode<synchronous>, transform_indices = @transform_8, window_bounds = array<i64: 128, 128>}, {pipeline_mode = #tpu.pipeline_mode<synchronous>, transform_indices = @transform_9, window_bounds = array<i64: 128, 128>}, {pipeline_mode = #tpu.pipeline_mode<synchronous>, transform_indices = @transform_10, window_bounds = array<i64: 1, 128>}, {pipeline_mode = #tpu.pipeline_mode<synchronous>, transform_indices = @transform_11, window_bounds = array<i64: 256, 128>}]} {
    %c0_i32 = arith.constant 0 : i32
    %0 = arith.cmpi eq, %arg0, %c0_i32 : i32
    %1 = arith.extui %0 : i1 to i32
    %c0_i32_0 = arith.constant 0 : i32
    %2 = arith.cmpi ne, %1, %c0_i32_0 : i32
    scf.if %2 {
      %cst_25 = arith.constant 0.000000e+00 : f32
      %49 = vector.broadcast %cst_25 : f32 to vector<256x128xf32>
      %c0_26 = arith.constant 0 : index
      %c0_27 = arith.constant 0 : index
      %50 = vector.load %arg13[%c0_26, %c0_27] : memref<256x128xf32, #tpu.memory_space<vmem>>, vector<256x128xf32>
      tpu.vector_store %arg13[%c0_26, %c0_27], %49 {strides = array<i32>} : memref<256x128xf32, #tpu.memory_space<vmem>>, vector<256x128xf32>,
    } else {
    }
    %c0 = arith.constant 0 : index
    %c0_1 = arith.constant 0 : index
    %3 = vector.load %arg5[%c0, %c0_1] : memref<128x1xf32, #tpu.memory_space<vmem>>, vector<128x1xf32>
    %cst = arith.constant 0.628318548 : f32
    %4 = vector.broadcast %cst : f32 to vector<128x1xf32>
    %5 = arith.mulf %3, %4 : vector<128x1xf32>
    %6 = math.cos %5 : vector<128x1xf32>
    %cst_2 = arith.constant 1.000000e+00 : f32
    %7 = vector.broadcast %cst_2 : f32 to vector<128x1xf32>
    %8 = arith.addf %6, %7 : vector<128x1xf32>
    %cst_3 = arith.constant 5.000000e-01 : f32
    %9 = vector.broadcast %cst_3 : f32 to vector<128x1xf32>
    %10 = arith.mulf %9, %8 : vector<128x1xf32>
    %cst_4 = arith.constant 5.000000e+00 : f32
    %11 = vector.broadcast %cst_4 : f32 to vector<128x1xf32>
    %12 = arith.cmpf olt, %3, %11 : vector<128x1xf32>
    %13 = arith.extui %12 : vector<128x1xi1> to vector<128x1xi32>
    %14 = arith.sitofp %13 : vector<128x1xi32> to vector<128x1xf32>
    %15 = arith.mulf %10, %14 : vector<128x1xf32>
    %c0_5 = arith.constant 0 : index
    %c0_6 = arith.constant 0 : index
    %16 = vector.load %arg6[%c0_5, %c0_6] : memref<128x128xbf16, #tpu.memory_space<vmem>>, vector<128x128xbf16>
    %c0_7 = arith.constant 0 : index
    %c0_8 = arith.constant 0 : index
    %17 = vector.load %arg7[%c0_7, %c0_8] : memref<128x128xbf16, #tpu.memory_space<vmem>>, vector<128x128xbf16>
    %cst_9 = arith.constant dense<0.000000e+00> : vector<128x128xf32>
    %18 = tpu.matmul %16, %17, %cst_9 {dimension_numbers = #tpu.dot_dimension_numbers<[1], [0], [0], [1], [0, 0, 1, 1], [], []>} : vector<128x128xbf16>, vector<128x128xbf16>, vector<128x128xf32> -> vector<128x128xf32>
    %c0_10 = arith.constant 0 : index
    %c0_11 = arith.constant 0 : index
    %19 = vector.load %arg8[%c0_10, %c0_11] : memref<1x128xf32, #tpu.memory_space<vmem>>, vector<1x128xf32>
    %20 = vector.broadcast %19 : vector<1x128xf32> to vector<128x128xf32>
    %21 = arith.addf %18, %20 : vector<128x128xf32>
    %22 = vector.broadcast %15 : vector<128x1xf32> to vector<128x128xf32>
    %23 = arith.mulf %21, %22 : vector<128x128xf32>
    %24 = tpu.iota {dimensions = array<i32: 1>} : vector<128x256xi32>
    %c0_12 = arith.constant 0 : index
    %c0_13 = arith.constant 0 : index
    %25 = vector.load %arg4[%c0_12, %c0_13] : memref<128x1xi32, #tpu.memory_space<vmem>>, vector<128x1xi32>
    %26 = vector.broadcast %25 : vector<128x1xi32> to vector<128x256xi32>
    %27 = arith.cmpi eq, %26, %24 : vector<128x256xi32>
    %28 = arith.extui %27 : vector<128x256xi1> to vector<128x256xi32>
    %29 = arith.sitofp %28 : vector<128x256xi32> to vector<128x256xf32>
    %30 = arith.truncf %29 : vector<128x256xf32> to vector<128x256xbf16>
    %c0_14 = arith.constant 0 : index
    %c0_15 = arith.constant 0 : index
    %31 = vector.load %arg2[%c0_14, %c0_15] : memref<256x128xbf16, #tpu.memory_space<vmem>>, vector<256x128xbf16>
    %cst_16 = arith.constant dense<0.000000e+00> : vector<128x128xf32>
    %32 = tpu.matmul %30, %31, %cst_16 {dimension_numbers = #tpu.dot_dimension_numbers<[1], [0], [0], [1], [0, 0, 1, 1], [], []>} : vector<128x256xbf16>, vector<256x128xbf16>, vector<128x128xf32> -> vector<128x128xf32>
    %33 = arith.mulf %23, %32 : vector<128x128xf32>
    %34 = arith.truncf %33 : vector<128x128xf32> to vector<128x128xbf16>
    %35 = tpu.iota {dimensions = array<i32: 0>} : vector<256x128xi32>
    %c0_17 = arith.constant 0 : index
    %c0_18 = arith.constant 0 : index
    %36 = vector.load %arg3[%c0_17, %c0_18] : memref<1x128xi32, #tpu.memory_space<vmem>>, vector<1x128xi32>
    %37 = vector.broadcast %36 : vector<1x128xi32> to vector<256x128xi32>
    %38 = arith.cmpi eq, %37, %35 : vector<256x128xi32>
    %39 = arith.extui %38 : vector<256x128xi1> to vector<256x128xi32>
    %40 = arith.sitofp %39 : vector<256x128xi32> to vector<256x128xf32>
    %41 = arith.truncf %40 : vector<256x128xf32> to vector<256x128xbf16>
    %c0_19 = arith.constant 0 : index
    %c0_20 = arith.constant 0 : index
    %42 = vector.load %arg13[%c0_19, %c0_20] : memref<256x128xf32, #tpu.memory_space<vmem>>, vector<256x128xf32>
    %cst_21 = arith.constant dense<0.000000e+00> : vector<256x128xf32>
    %43 = tpu.matmul %41, %34, %cst_21 {dimension_numbers = #tpu.dot_dimension_numbers<[1], [0], [0], [1], [0, 0, 1, 1], [], []>} : vector<256x128xbf16>, vector<128x128xbf16>, vector<256x128xf32> -> vector<256x128xf32>
    %44 = arith.addf %42, %43 : vector<256x128xf32>
    %c0_22 = arith.constant 0 : index
    %c0_23 = arith.constant 0 : index
    %45 = vector.load %arg13[%c0_22, %c0_23] : memref<256x128xf32, #tpu.memory_space<vmem>>, vector<256x128xf32>
    tpu.vector_store %arg13[%c0_22, %c0_23], %44 {strides = array<i32>} : memref<256x128xf32, #tpu.memory_space<vmem>>, vector<256x128xf32>,
    %c3_i32 = arith.constant 3 : i32
    %46 = arith.cmpi eq, %arg0, %c3_i32 : i32
    %47 = arith.extui %46 : i1 to i32
    %c0_i32_24 = arith.constant 0 : i32
    %48 = arith.cmpi ne, %47, %c0_i32_24 : i32
    scf.if %48 {
      %c0_25 = arith.constant 0 : index
      %c0_26 = arith.constant 0 : index
      %49 = vector.load %arg1[%c0_25, %c0_26] : memref<256x128xf32, #tpu.memory_space<vmem>>, vector<256x128xf32>
      %c0_27 = arith.constant 0 : index
      %c0_28 = arith.constant 0 : index
      %50 = vector.load %arg9[%c0_27, %c0_28] : memref<128x128xf32, #tpu.memory_space<vmem>>, vector<128x128xf32>
      %cst_29 = arith.constant dense<0.000000e+00> : vector<256x128xf32>
      %51 = tpu.matmul %49, %50, %cst_29 {dimension_numbers = #tpu.dot_dimension_numbers<[1], [0], [0], [1], [0, 0, 1, 1], [], []>} : vector<256x128xf32>, vector<128x128xf32>, vector<256x128xf32> -> vector<256x128xf32>
      %c0_30 = arith.constant 0 : index
      %c0_31 = arith.constant 0 : index
      %52 = vector.load %arg13[%c0_30, %c0_31] : memref<256x128xf32, #tpu.memory_space<vmem>>, vector<256x128xf32>
      %c0_32 = arith.constant 0 : index
      %c0_33 = arith.constant 0 : index
      %53 = vector.load %arg10[%c0_32, %c0_33] : memref<128x128xf32, #tpu.memory_space<vmem>>, vector<128x128xf32>
      %cst_34 = arith.constant dense<0.000000e+00> : vector<256x128xf32>
      %54 = tpu.matmul %52, %53, %cst_34 {dimension_numbers = #tpu.dot_dimension_numbers<[1], [0], [0], [1], [0, 0, 1, 1], [], []>} : vector<256x128xf32>, vector<128x128xf32>, vector<256x128xf32> -> vector<256x128xf32>
      %55 = arith.addf %51, %54 : vector<256x128xf32>
      %c0_35 = arith.constant 0 : index
      %c0_36 = arith.constant 0 : index
      %56 = vector.load %arg11[%c0_35, %c0_36] : memref<1x128xf32, #tpu.memory_space<vmem>>, vector<1x128xf32>
      %57 = vector.broadcast %56 : vector<1x128xf32> to vector<256x128xf32>
      %58 = arith.addf %55, %57 : vector<256x128xf32>
      %c0_37 = arith.constant 0 : index
      %c0_38 = arith.constant 0 : index
      %59 = vector.load %arg12[%c0_37, %c0_38] : memref<256x128xf32, #tpu.memory_space<vmem>>, vector<256x128xf32>
      tpu.vector_store %arg12[%c0_37, %c0_38], %58 {strides = array<i32>} : memref<256x128xf32, #tpu.memory_space<vmem>>, vector<256x128xf32>,
    } else {
    }
    return
  }
  func.func @transform_0(%arg0: i32) -> (i32, i32) {
    %c0_i32 = arith.constant 0 : i32
    %c0_i32_0 = arith.constant 0 : i32
    %c0_i32_1 = arith.constant 0 : i32
    return %c0_i32, %c0_i32_0 : i32, i32
  }
  func.func @transform_1(%arg0: i32) -> (i32, i32) {
    %c0_i32 = arith.constant 0 : i32
    %c0_i32_0 = arith.constant 0 : i32
    %c0_i32_1 = arith.constant 0 : i32
    return %c0_i32, %c0_i32_0 : i32, i32
  }
  func.func @transform_2(%arg0: i32) -> (i32, i32) {
    %c0_i32 = arith.constant 0 : i32
    %c0_i32_0 = arith.constant 0 : i32
    return %c0_i32, %arg0 : i32, i32
  }
  func.func @transform_3(%arg0: i32) -> (i32, i32) {
    %c0_i32 = arith.constant 0 : i32
    %c0_i32_0 = arith.constant 0 : i32
    return %arg0, %c0_i32 : i32, i32
  }
  func.func @transform_4(%arg0: i32) -> (i32, i32) {
    %c0_i32 = arith.constant 0 : i32
    %c0_i32_0 = arith.constant 0 : i32
    return %arg0, %c0_i32 : i32, i32
  }
  func.func @transform_5(%arg0: i32) -> (i32, i32) {
    %c0_i32 = arith.constant 0 : i32
    %c0_i32_0 = arith.constant 0 : i32
    return %arg0, %c0_i32 : i32, i32
  }
  func.func @transform_6(%arg0: i32) -> (i32, i32) {
    %c0_i32 = arith.constant 0 : i32
    %c0_i32_0 = arith.constant 0 : i32
    %c0_i32_1 = arith.constant 0 : i32
    return %c0_i32, %c0_i32_0 : i32, i32
  }
  func.func @transform_7(%arg0: i32) -> (i32, i32) {
    %c0_i32 = arith.constant 0 : i32
    %c0_i32_0 = arith.constant 0 : i32
    %c0_i32_1 = arith.constant 0 : i32
    return %c0_i32, %c0_i32_0 : i32, i32
  }
  func.func @transform_8(%arg0: i32) -> (i32, i32) {
    %c0_i32 = arith.constant 0 : i32
    %c0_i32_0 = arith.constant 0 : i32
    %c0_i32_1 = arith.constant 0 : i32
    return %c0_i32, %c0_i32_0 : i32, i32
  }
  func.func @transform_9(%arg0: i32) -> (i32, i32) {
    %c0_i32 = arith.constant 0 : i32
    %c0_i32_0 = arith.constant 0 : i32
    %c0_i32_1 = arith.constant 0 : i32
    return %c0_i32, %c0_i32_0 : i32, i32
  }
  func.func @transform_10(%arg0: i32) -> (i32, i32) {
    %c0_i32 = arith.constant 0 : i32
    %c0_i32_0 = arith.constant 0 : i32
    %c0_i32_1 = arith.constant 0 : i32
    return %c0_i32, %c0_i32_0 : i32, i32
  }
  func.func @transform_11(%arg0: i32) -> (i32, i32) {
    %c0_i32 = arith.constant 0 : i32
    %c0_i32_0 = arith.constant 0 : i32
    %c0_i32_1 = arith.constant 0 : i32
    return %c0_i32, %c0_i32_0 : i32, i32
  }
}

</mosaic_0001>

<bundles_post_ra>
// kernel: tpu_custom_call.1
= control target key start
LH: loop header
LB: loop body
LE: loop exit
PB: predicated region body
PF: predicated region fallthrough
CT: control target
= control target key end

     0   :  { %16 = vsyncpa [#allocation4], 0  ;;  %s5124_s17 = smov 0   ;;  %s7312_s0 = inlined_call_operand.vmem [shape: f32[256,128], index: 0, kind: input, shape index: {}]   ;;  %s7313_s1 = inlined_call_operand.vmem [shape: bf16[256,128], index: 1, kind: input, shape index: {}]   ;;  %s7314_s2 = inlined_call_operand.vmem [shape: s32[1,512], index: 2, kind: input, shape index: {}]   ;;  %s7315_s3 = inlined_call_operand.vmem [shape: s32[512,1], index: 3, kind: input, shape index: {}]   ;;  %s7316_s4 = inlined_call_operand.vmem [shape: f32[512,1], index: 4, kind: input, shape index: {}]   ;;  %s7317_s5 = inlined_call_operand.vmem [shape: bf16[512,128], index: 5, kind: input, shape index: {}]   ;;  %s7318_s6 = inlined_call_operand.vmem [shape: bf16[128,128], index: 6, kind: input, shape index: {}]   ;;  %s7319_s7 = inlined_call_operand.vmem [shape: f32[1,128], index: 7, kind: input, shape index: {}]   ;;  %s7320_s8 = inlined_call_operand.vmem [shape: f32[128,128], index: 8, kind: input, shape index: {}]   ;;  %s7321_s9 = inlined_call_operand.vmem [shape: f32[128,128], index: 9, kind: input, shape index: {}]   ;;  %s7322_s10 = inlined_call_operand.vmem [shape: f32[1,128], index: 10, kind: input, shape index: {}]   ;;  %s7323_s11 = inlined_call_operand.hbm [shape: f32[256,128], index: 11, kind: output, shape index: {}]  }
   0x1 LB: > { %s5130_s18 = sadd.s32 4294967295, %s5049_s17   ;;  %p4114_p0 = scmp.ge.s32.totalorder %s5049_s17, 1  ;;  %s5049_s17 = sphi %s5124_s17, %s22_s17  }
   0x2   : > { %p364_p1 = scmp.lt.s32.totalorder %s5049_s17, 5 }
   0x4   : > { %p365_p2 = pnand %p4114_p0, %p364_p1 }
   0x6   : > { %368 = sbr.rel (%p365_p2) target bundleno = 1291 (0x50b), region = 64 }
   0xb   : > { %p412_p3 = scmp.lt.s32.totalorder %s5130_s18, 3  ;;  %s4115_s19 = sshll.u32 %s5130_s18, 4 }
   0xc   : > { %p416_p4 = scmp.lt.s32.totalorder %s4115_s19, 63  ;;  %p4121_p5 = scmp.ne.s32.totalorder %s5130_s18, 0 }
   0xd   : > { %s5137_s20 = scalar_select %p412_p3, %s5130_s18, 3 }
   0xe   : > { %s7437_s19 = smov (!%p416_p4, %s4115_s19), 63  ;;  %437 = sbr.rel (%p4121_p5) target bundleno = 36 (0x24), region = 68 }
   0xf   : > { %s414_s23 = scalar_lea.vmem %s7314_s2, %s5137_s20  ;;  %s4116_s24 = sshll.u32 %s7437_s19, 3 }
  0x10   : > { %s4120_s25 = sshll.u32 %s7437_s19, 2  ;;  %s5146_s28 = scalar_lea.vmem %s7315_s3, %s4116_s24 }
  0x11   : > { %s5151_s12 = scalar_lea.vmem %s7316_s4, %s4116_s24  ;;  %s5156_s15 = scalar_lea.vmem %s7317_s5, %s4120_s25 }
  0x13   : > { %v5051_v0 = vmov 0.0  }
  0x14   : > { %438 = vst [vmem:[#allocation2 + $0xb0] sm:$0xff] %v5051_v0  ;;  %439 = vst [vmem:[#allocation2] sm:$0xff] %v5051_v0 }
  0x15   : > { %440 = vst [vmem:[#allocation2 + $0xd8] sm:$0xff] %v5051_v0  ;;  %441 = vst [vmem:[#allocation2 + $0x18] sm:$0xff] %v5051_v0 }
  0x16   : > { %442 = vst [vmem:[#allocation2 + $0x50] sm:$0xff] %v5051_v0  ;;  %443 = vst [vmem:[#allocation2 + $0x68] sm:$0xff] %v5051_v0 }
  0x17   : > { %444 = vst [vmem:[#allocation2 + $0x30] sm:$0xff] %v5051_v0  ;;  %445 = vst [vmem:[#allocation2 + $0x48] sm:$0xff] %v5051_v0 }
  0x18   : > { %446 = vst [vmem:[#allocation2 + $0x80] sm:$0xff] %v5051_v0  ;;  %447 = vst [vmem:[#allocation2 + $0x88] sm:$0xff] %v5051_v0 }
  0x19   : > { %448 = vst [vmem:[#allocation2 + $0xe8] sm:$0xff] %v5051_v0  ;;  %449 = vst [vmem:[#allocation2 + $0xb8] sm:$0xff] %v5051_v0 }
  0x1a   : > { %450 = vst [vmem:[#allocation2 + $0x60] sm:$0xff] %v5051_v0  ;;  %451 = vst [vmem:[#allocation2 + $0xf0] sm:$0xff] %v5051_v0 }
  0x1b   : > { %452 = vst [vmem:[#allocation2 + $0x8] sm:$0xff] %v5051_v0  ;;  %453 = vst [vmem:[#allocation2 + $0x78] sm:$0xff] %v5051_v0 }
  0x1c   : > { %454 = vst [vmem:[#allocation2 + $0x38] sm:$0xff] %v5051_v0  ;;  %455 = vst [vmem:[#allocation2 + $0x58] sm:$0xff] %v5051_v0 }
  0x1d   : > { %456 = vst [vmem:[#allocation2 + $0x40] sm:$0xff] %v5051_v0  ;;  %457 = vst [vmem:[#allocation2 + $0xc8] sm:$0xff] %v5051_v0 }
  0x1e   : > { %458 = vst [vmem:[#allocation2 + $0xe0] sm:$0xff] %v5051_v0  ;;  %459 = vst [vmem:[#allocation2 + $0x90] sm:$0xff] %v5051_v0 }
  0x1f   : > { %460 = vst [vmem:[#allocation2 + $0x70] sm:$0xff] %v5051_v0  ;;  %461 = vst [vmem:[#allocation2 + $0xc0] sm:$0xff] %v5051_v0 }
  0x20   : > { %462 = vst [vmem:[#allocation2 + $0xa8] sm:$0xff] %v5051_v0  ;;  %463 = vst [vmem:[#allocation2 + $0xd0] sm:$0xff] %v5051_v0 }
  0x21   : > { %464 = vst [vmem:[#allocation2 + $0x10] sm:$0xff] %v5051_v0  ;;  %465 = vst [vmem:[#allocation2 + $0x28] sm:$0xff] %v5051_v0 }
  0x22   : > { %466 = vst [vmem:[#allocation2 + $0xa0] sm:$0xff] %v5051_v0  ;;  %467 = vst [vmem:[#allocation2 + $0xf8] sm:$0xff] %v5051_v0 }
  0x23   : > { %468 = vst [vmem:[#allocation2 + $0x20] sm:$0xff] %v5051_v0  ;;  %469 = vst [vmem:[#allocation2 + $0x98] sm:$0xff] %v5051_v0 }
  0x24 PF: > { %v2579_v1 = vld [vmem:[%s5146_s28 + $0x10] sm:$0xff]  ;;  %v2577_v2 = vld [vmem:[%s5146_s28] sm:$0xff]  ;;  %v5052_v3 = vmov 0   ;;  %v4919_v4 = vld [vmem:[%s7318_s6 + $0x38] sm:$0xff]   ;;  %v5053_v62 = vmov 683565275  }
  0x25   : > { %4918 = vset.pattern.permute.xlu1 %v5052_v3  ;;  %4917 = vset.pattern.permute.xlu0 %v5052_v3  ;;  %v2580_v5 = vld [vmem:[%s5146_s28 + $0x18] sm:$0xff]  ;;  %v2578_v6 = vld [vmem:[%s5146_s28 + $0x8] sm:$0xff]  ;;  %v4920_v7 = vld [vmem:[%s7318_s6 + $0x30] sm:$0xff]   ;;  %v5054_v0 = vmov 2475754826   ;;  %p4364_p6 = scmp.ne.s32.totalorder %s5130_s18, 3 }
  0x26   : > { %2600 = vperm.xlu1 %4918, %v2579_v1   ;;  %2594 = vperm.xlu0 %4917, %v2577_v2   ;;  %v4921_v8 = vld [vmem:[%s7318_s6 + $0x28] sm:$0xff]   ;;  %v2581_v10 = vld [vmem:[%s5146_s28 + $0x20] sm:$0xff]  ;;  %v2584_v12 = vld [vmem:[%s5146_s28 + $0x38] sm:$0xff]  ;;  %v5055_v2 = vmov 2131351028  }
  0x27   : > { %4570 = vmatprep.subr.bf16.mxu0 %v4919_v4  ;;  %v2582_v9 = vld [vmem:[%s5146_s28 + $0x28] sm:$0xff]  ;;  %v4922_v11 = vld [vmem:[%s7318_s6 + $0x20] sm:$0xff]   ;;  %v2583_v13 = vld [vmem:[%s5146_s28 + $0x30] sm:$0xff] }
  0x28   : > { %4571 = vmatpush3.bf16.msra.mxu0 %v4919_v4  ;;  %v2586_v14 = vld [vmem:[%s5146_s28 + $0x48] sm:$0xff]  ;;  %v4923_v15 = vld [vmem:[%s7318_s6 + $0x18] sm:$0xff]   ;;  %v4927_v16 = vld [vmem:[%s5156_s15] sm:$0xff]  }
  0x29   : > { %4572 = vmatprep.subr.bf16.mxu0 %v4920_v7  ;;  %v2585_v17 = vld [vmem:[%s5146_s28 + $0x40] sm:$0xff]  ;;  %4586 = vmatprep.mubr.bf16.mxu0 %v4927_v16  ;;  %v4924_v18 = vld [vmem:[%s7318_s6 + $0x10] sm:$0xff]   ;;  %v2588_v19 = vld [vmem:[%s5146_s28 + $0x58] sm:$0xff] }
  0x2a   : > { %2603 = vperm.xlu1 %4918, %v2580_v5   ;;  %2597 = vperm.xlu0 %4917, %v2578_v6   ;;  %v2587_v20 = vld [vmem:[%s5146_s28 + $0x50] sm:$0xff]  ;;  %v4925_v21 = vld [vmem:[%s7318_s6 + $0x8] sm:$0xff]   ;;  %v5194_v22 = vld [vmem:[%s5151_s12 + $0x78] sm:$0xff]  ;;  %v5056_v5 = vmov 2102212464  }
  0x2b   : > { %v5197_v23 = vld [vmem:[%s5151_s12 + $0x70] sm:$0xff]  ;;  %v5200_v24 = vmul.f32 0.62831855, %v5194_v22  ;;  %v2590_v26 = vld [vmem:[%s5146_s28 + $0x68] sm:$0xff]  ;;  %v2589_v27 = vld [vmem:[%s5146_s28 + $0x60] sm:$0xff]  ;;  %vm2197_vm12 = vcmp.lt.f32.partialorder %v5194_v22, 5.0 }
  0x2c   : > { %4573 = vmatpush3.bf16.msra.mxu0 %v4920_v7  ;;  %v5203_v25 = vmul.f32 0.62831855, %v5197_v23  ;;  %v4926_v28 = vld [vmem:[%s7318_s6] sm:$0xff]   ;;  %v5215_v33 = vld [vmem:[%s5151_s12 + $0x68] sm:$0xff]  ;;  %v2592_v36 = vld [vmem:[%s5146_s28 + $0x78] sm:$0xff] }
  0x2d   : > { %4574 = vmatprep.subr.bf16.mxu0 %v4921_v8  ;;  %v2047_v29 = vand.u32 2147483647, %v5200_v24  ;;  %v2050_v30 = vand.u32 2139095040, %v5200_v24  ;;  %v2591_v37 = vld [vmem:[%s5146_s28 + $0x70] sm:$0xff]  ;;  %v5224_v41 = vmul.f32 0.62831855, %v5215_v33 }
  0x2e   : > { %2609 = vperm.xlu1 %4918, %v2582_v9   ;;  %2606 = vperm.xlu0 %4917, %v2581_v10   ;;  %v1944_v31 = vand.u32 2147483647, %v5203_v25  ;;  %v1947_v32 = vand.u32 2139095040, %v5203_v25  ;;  %v4928_v45 = vld [vmem:[%s5156_s15 + $0x8] sm:$0xff]   ;;  %v4929_v49 = vld [vmem:[%s5156_s15 + $0x10] sm:$0xff]   ;;  %v4930_v4 = vld [vmem:[%s5156_s15 + $0x18] sm:$0xff]  }
  0x2f   : > { %v2051_v34 = vshrl.u32 %v2050_v30, 23  ;;  %v2054_v35 = vand.u32 8388607, %v2047_v29  ;;  %v1844_v48 = vand.u32 2139095040, %v5224_v41  ;;  %v1841_v51 = vand.u32 2147483647, %v5224_v41 }
  0x30   : > { %4575 = vmatpush3.bf16.msra.mxu0 %v4921_v8  ;;  %v1948_v38 = vshrl.u32 %v1947_v32, 23  ;;  %v1951_v39 = vand.u32 8388607, %v1944_v31  ;;  %v5057_v7 = vmov 920167782   ;;  %v4931_v16 = vld [vmem:[%s5156_s15 + $0x20] sm:$0xff]  }
  0x31   : > { %4576 = vmatprep.subr.bf16.mxu0 %v4922_v11  ;;  %v4182_v40 = vadd.s32 4294967169, %v2051_v34  ;;  %v2055_v43 = vor.u32 8388608, %v2054_v35  ;;  %v1845_v52 = vshrl.u32 %v1844_v48, 23  ;;  %vm2049_vm14 = vcmp.lt.s32.totalorder %v5200_v24, 0 }
  0x32   : > { %2615 = vperm.xlu1 %4918, %v2584_v12   ;;  %2612 = vperm.xlu0 %4917, %v2583_v13   ;;  %v4178_v42 = vadd.s32 4294967169, %v1948_v38  ;;  %v1952_v46 = vor.u32 8388608, %v1951_v39 }
  0x33   : > { %v2057_v44 = vadd.s32 1, %v4182_v40  ;;  %v5230_v55 = vshll.u32 %v2055_v43, 8  ;;  %v5238_v60 = vadd.s32 4294967169, %v1845_v52 }
  0x34   : > { %4577 = vmatpush3.bf16.msra.mxu0 %v4922_v11  ;;  %v1954_v47 = vadd.s32 1, %v4178_v42  ;;  %v5236_v59 = vshll.u32 %v1952_v46, 8 }
  0x35   : > { %4578 = vmatprep.subr.bf16.mxu0 %v4923_v15  ;;  %vm2058_vm0 = vcmp.gt.s32.totalorder %v2057_v44, 0 }
  0x36   : > { %2621 = vperm.xlu1 %4918, %v2586_v14   ;;  %2618 = vperm.xlu0 %4917, %v2585_v17   ;;  %v2059_v50 = vsel %vm2058_vm0, %v2057_v44, 0  ;;  %vm1955_vm1 = vcmp.gt.s32.totalorder %v1954_v47, 0  ;;  %v5058_v14 = vmov 1326507024   ;;  %v4932_v44 = vld [vmem:[%s5156_s15 + $0x28] sm:$0xff]  }
  0x37   : > { %v2060_v53 = vshrl.u32 %v2059_v50, 5  ;;  %v2061_v54 = vand.u32 31, %v2059_v50  ;;  %v1956_v56 = vsel %vm1955_vm1, %v1954_v47, 0 }
  0x38   : > { %4579 = vmatpush3.bf16.msra.mxu0 %v4923_v15  ;;  %v5232_v57 = vshrl.u32 %v1956_v56, 5  ;;  %v5234_v58 = vand.u32 31, %v1956_v56 }
  0x39   : > { %4580 = vmatprep.subr.bf16.mxu0 %v4924_v18  ;;  %v2062_v61 = vsub.s32 32, %v2061_v54  ;;  %v2064_v63 = vshll.u32 %v5053_v62, %v2061_v54  ;;  %v2067_v1 = vshll.u32 %v5054_v0, %v2061_v54  ;;  %v2070_v3 = vshll.u32 %v5055_v2, %v2061_v54 }
  0x3a   : > { %2627 = vperm.xlu1 %4918, %v2588_v19   ;;  %2624 = vperm.xlu0 %4917, %v2587_v20   ;;  %v2073_v6 = vshll.u32 %v5056_v5, %v2061_v54  ;;  %v2076_v8 = vshll.u32 %v5057_v7, %v2061_v54  ;;  %vm2079_vm2 = vcmp.lt.s32.totalorder %v2060_v53, 1  ;;  %vm2080_vm3 = vcmp.lt.s32.totalorder %v2060_v53, 2 }
  0x3b   : > { %v2063_v9 = vshrl.u32 %v5053_v62, %v2062_v61  ;;  %v2065_v10 = vshrl.u32 %v5054_v0, %v2062_v61  ;;  %v2068_v11 = vshrl.u32 %v5055_v2, %v2062_v61  ;;  %v2071_v12 = vshrl.u32 %v5056_v5, %v2062_v61 }
  0x3c   : > { %4581 = vmatpush3.bf16.msra.mxu0 %v4924_v18  ;;  %v2074_v13 = vshrl.u32 %v5057_v7, %v2062_v61  ;;  %v2077_v15 = vshrl.u32 %v5058_v14, %v2062_v61  ;;  %vm2081_vm4 = vcmp.lt.s32.totalorder %v2060_v53, 3  ;;  %vm2082_vm5 = vcmp.lt.s32.totalorder %v2060_v53, 4  ;;  %v4933_v53 = vld [vmem:[%s5156_s15 + $0x30] sm:$0xff]  }
  0x3d   : > { %4582 = vmatprep.subr.bf16.mxu0 %v4925_v21  ;;  %v2066_v17 = vor.u32 %v2065_v10, %v2064_v63  ;;  %v2069_v18 = vor.u32 %v2068_v11, %v2067_v1  ;;  %v2072_v19 = vor.u32 %v2071_v12, %v2070_v3  ;;  %v1959_v20 = vsub.s32 32, %v5234_v58 }
  0x3e   : > { %2633 = vperm.xlu1 %4918, %v2590_v26   ;;  %2630 = vperm.xlu0 %4917, %v2589_v27   ;;  %v2078_v26 = vor.u32 %v2077_v15, %v2076_v8  ;;  %v1961_v27 = vshll.u32 %v5053_v62, %v5234_v58  ;;  %v1964_v38 = vshll.u32 %v5054_v0, %v5234_v58  ;;  %vm1976_vm6 = vcmp.lt.s32.totalorder %v5232_v57, 1 }
  0x3f   : > { %v2084_v30 = vsel %vm2082_vm5, %v2072_v19, 2102212464  ;;  %v2087_v32 = vsel %vm2079_vm2, %v2066_v17, %v2069_v18  ;;  %v2091_v34 = vsel %vm2079_vm2, %v2069_v18, %v2072_v19  ;;  %v1960_v42 = vshrl.u32 %v5053_v62, %v1959_v20 }
  0x40   : > { %4583 = vmatpush3.bf16.msra.mxu0 %v4925_v21  ;;  %v2075_v21 = vor.u32 %v2074_v13, %v2073_v6  ;;  %v2085_v35 = vsel %vm2081_vm4, %v2069_v18, %v2084_v30  ;;  %v1962_v43 = vshrl.u32 %v5054_v0, %v1959_v20  ;;  %v1965_v48 = vshrl.u32 %v5055_v2, %v1959_v20 }
  0x41   : > { %4584 = vmatprep.subr.bf16.mxu0 %v4926_v28  ;;  %v1967_v63 = vshll.u32 %v5055_v2, %v5234_v58  ;;  %v1968_v1 = vshrl.u32 %v5056_v5, %v1959_v20  ;;  %v1970_v3 = vshll.u32 %v5056_v5, %v5234_v58  ;;  %v1973_v6 = vshll.u32 %v5057_v7, %v5234_v58 }
  0x42   : > { %2639 = vperm.xlu1 %4918, %v2592_v36   ;;  %2636 = vperm.xlu0 %4917, %v2591_v37   ;;  %v2088_v36 = vsel %vm2082_vm5, %v2075_v21, 920167782  ;;  %v2092_v37 = vsel %vm2082_vm5, %v2078_v26, 1326507024  ;;  %v1963_v56 = vor.u32 %v1962_v43, %v1961_v27  ;;  %v1966_v61 = vor.u32 %v1965_v48, %v1964_v38 }
  0x43   : > { %v2089_v39 = vsel %vm2081_vm4, %v2072_v19, %v2088_v36  ;;  %v2093_v40 = vsel %vm2081_vm4, %v2075_v21, %v2092_v37  ;;  %v1974_v8 = vshrl.u32 %v5058_v14, %v1959_v20  ;;  %v1969_v10 = vor.u32 %v1968_v1, %v1967_v63 }
  0x44   : > { %4585 = vmatpush3.bf16.msra.mxu0 %v4926_v28  ;;  %v2083_v28 = vsel %vm2079_vm2, %v2063_v9, %v2066_v17  ;;  %v2090_v46 = vsel %vm2080_vm3, %v2087_v32, %v2089_v39  ;;  %v2094_v47 = vsel %vm2080_vm3, %v2091_v34, %v2093_v40  ;;  %vm1977_vm7 = vcmp.lt.s32.totalorder %v5232_v57, 2  ;;  %v4934_v34 = vld [vmem:[%s5156_s15 + $0x38] sm:$0xff]  }
  0x45   : > { %v5279_v52 = vmul.u32.u64.low %v5230_v55, %v2090_v46  ;;  %v5280_v54 = vmul.u32.u64.high %v5230_v55, %v2090_v46, %v5279_v52  ;;  %vm1978_vm9 = vcmp.lt.s32.totalorder %v5232_v57, 3  ;;  %v1975_v13 = vor.u32 %v1974_v8, %v1973_v6 }
  0x46   : > { %vm1979_vm10 = vcmp.lt.s32.totalorder %v5232_v57, 4  ;;  %v1980_v58 = vsel %vm1976_vm6, %v1960_v42, %v1963_v56  ;;  %v1988_v18 = vsel %vm1976_vm6, %v1966_v61, %v1969_v10  ;;  %v1851_v32 = vadd.s32 1, %v5238_v60 }
  0x47   : > { %4587 = vmatmul.mubr.bf16.vlgmr.msra.gmra.mxu0 %v4928_v45  ;;  %v2086_v45 = vsel %vm2080_vm3, %v2083_v28, %v2085_v35  ;;  %v2105_v11 = vadd.s32 1, %v5280_v54  ;;  %v1989_v26 = vsel %vm1979_vm10, %v1975_v13, 1326507024  ;;  %vm5382_vm4 = vcmp.le.f32.partialorder %v2047_v29, 0.7853982 }
  0x48   : > { %4590 = vmatprep.mubr.bf16.mxu0 %v4929_v49  ;;  %v5275_v49 = vmul.u32.u64.low %v5230_v55, %v2094_v47  ;;  %v5276_v50 = vmul.u32.u64.high %v5230_v55, %v2094_v47, %v5275_v49  ;;  %v2102_v9 = vmul.u32 %v5230_v55, %v2086_v45  ;;  %v1984_v55 = vsel %vm1976_vm6, %v1963_v56, %v1966_v61  ;;  %v5336_v47 = vld [vmem:[%s5151_s12 + $0x60] sm:$0xff] }
  0x49   : > { %vm1852_vm11 = vcmp.gt.s32.totalorder %v1851_v32, 0  ;;  %v5348_v22 = vmul.f32 0.62831855, %v5336_v47 }
  0x4a   : > { %vm2104_vm8 = vc.u32 %v5276_v50, %v5279_v52  ;;  %v1853_v43 = vsel %vm1852_vm11, %v1851_v32, 0 }
  0x4b   : > { %v2106_v15 = vsel %vm2104_vm8, %v2105_v11, %v5280_v54  ;;  %v1855_v57 = vand.u32 31, %v1853_v43  ;;  %v5059_v54 = vmov 0.0   ;;  %v2103_v11 = vadd.s32 %v5279_v52, %v5276_v50 }
  0x4c   : > { %v2107_v19 = vadd.s32 %v2106_v15, %v2102_v9  ;;  %v5344_v56 = vsel %vm2197_vm12, 1.0, %v5059_v54  ;;  %v1854_v13 = vshrl.u32 %v1853_v43, 5  ;;  %vm5419_vm8 = vcmp.le.f32.partialorder %v1944_v31, 0.7853982 }
  0x4d   : > { %v1856_v48 = vsub.s32 32, %v1855_v57  ;;  %v1864_v9 = vshll.u32 %v5055_v2, %v1855_v57 }
  0x4e   : > { %v2108_v35 = vadd.s32 536870912, %v2107_v19  ;;  %vm1873_vm15 = vcmp.lt.s32.totalorder %v1854_v13, 1  ;;  %vm1876_vm0 = vcmp.lt.s32.totalorder %v1854_v13, 4  ;;  %vm1874_vm1 = vcmp.lt.s32.totalorder %v1854_v13, 2 }
  0x4f   : > { %4591 = vmatmul.mubr.bf16.gmra.mxu0 %v4930_v4  ;;  %v1971_v4 = vshrl.u32 %v5057_v7, %v1959_v20  ;;  %v1862_v8 = vshrl.u32 %v5055_v2, %v1856_v48  ;;  %v1871_v50 = vshrl.u32 %v5058_v14, %v1856_v48  ;;  %vm1875_vm3 = vcmp.lt.s32.totalorder %v1854_v13, 3 }
  0x50   : > { %4594 = vmatprep.mubr.bf16.mxu0 %v4931_v16  ;;  %v1981_v16 = vsel %vm1979_vm10, %v1969_v10, 2102212464  ;;  %v5325_v42 = vshrl.u32 %v2108_v35, 30 }
  0x51   : > { %v1972_v12 = vor.u32 %v1971_v4, %v1970_v3  ;;  %v1982_v20 = vsel %vm1978_vm9, %v1966_v61, %v1981_v16  ;;  %v1859_v3 = vshrl.u32 %v5054_v0, %v1856_v48  ;;  %v1861_v4 = vshll.u32 %v5054_v0, %v1855_v57 }
  0x52   : > { %v1983_v27 = vsel %vm1977_vm7, %v1980_v58, %v1982_v20  ;;  %v2110_v45 = vshll.u32 %v5325_v42, 30  ;;  %v1867_v58 = vshll.u32 %v5056_v5, %v1855_v57  ;;  %v1868_v16 = vshrl.u32 %v5057_v7, %v1856_v48 }
  0x53   : > { %v1985_v17 = vsel %vm1979_vm10, %v1972_v12, 920167782  ;;  %v1990_v30 = vsel %vm1978_vm9, %v1972_v12, %v1989_v26  ;;  %v1999_v60 = vmul.u32 %v5236_v59, %v1983_v27  ;;  %v1870_v20 = vshll.u32 %v5057_v7, %v1855_v57 }
  0x54   : > { %v1986_v21 = vsel %vm1978_vm9, %v1969_v10, %v1985_v17  ;;  %v1991_v36 = vsel %vm1977_vm7, %v1988_v18, %v1990_v30  ;;  %v5340_v49 = vsub.s32 %v2107_v19, %v2110_v45  ;;  %v1865_v10 = vshrl.u32 %v5056_v5, %v1856_v48 }
  0x55   : > { %v1987_v28 = vsel %vm1977_vm7, %v1984_v55, %v1986_v21  ;;  %v5322_v39 = vmul.u32.u64.low %v5236_v59, %v1991_v36  ;;  %v5323_v40 = vmul.u32.u64.high %v5236_v59, %v1991_v36, %v5322_v39  ;;  %v2133_v55 = vsub.s32 4, %v5325_v42 }
  0x56   : > { %v5317_v37 = vmul.u32.u64.low %v5236_v59, %v1987_v28  ;;  %v5318_v38 = vmul.u32.u64.high %v5236_v59, %v1987_v28, %v5317_v37  ;;  %v2113_v1 = vsub.s32 0, %v5340_v49  ;;  %v1741_v17 = vand.u32 2139095040, %v5348_v22 }
  0x57   : > { %4595 = vmatmul.mubr.bf16.gmra.mxu0 %v4932_v44  ;;  %v5330_v44 = vand.u32 8388607, %v1841_v51  ;;  %v1857_v19 = vshrl.u32 %v5053_v62, %v1856_v48  ;;  %v1863_v26 = vor.u32 %v1862_v8, %v1861_v4  ;;  %v1866_v27 = vor.u32 %v1865_v10, %v1864_v9 }
  0x58   : > { %4598 = vmatprep.mubr.bf16.mxu0 %v4933_v53  ;;  %v2002_v46 = vadd.s32 1, %v5318_v38  ;;  %vm2001_vm13 = vc.u32 %v5323_v40, %v5317_v37  ;;  %v1858_v53 = vshll.u32 %v5053_v62, %v1855_v57  ;;  %v4183_v12 = vmin.u32 %v2113_v1, %v5340_v49 }
  0x59   : > { %v1849_v63 = vor.u32 8388608, %v5330_v44  ;;  %v1869_v30 = vor.u32 %v1868_v16, %v1867_v58  ;;  %v1742_v35 = vshrl.u32 %v1741_v17, 23  ;;  %v1872_v36 = vor.u32 %v1871_v50, %v1870_v20 }
  0x5a   : > { %v2003_v59 = vsel %vm2001_vm13, %v2002_v46, %v5318_v38  ;;  %v2115_v18 = vclz %v4183_v12  ;;  %v1860_v21 = vor.u32 %v1859_v3, %v1858_v53  ;;  %vm1946_vm9 = vcmp.lt.s32.totalorder %v5203_v25, 0 }
  0x5b   : > { %v2004_v61 = vadd.s32 %v2003_v59, %v1999_v60  ;;  %v1882_v48 = vsel %vm1876_vm0, %v1869_v30, 920167782  ;;  %v1889_v53 = vshll.u32 %v1849_v63, 8  ;;  %v1886_v10 = vsel %vm1876_vm0, %v1872_v36, 1326507024  ;;  %v5440_v59 = vld [vmem:[%s5151_s12 + $0x58] sm:$0xff] }
  0x5c   : > { %v4184_v28 = vadd.s32 4294967294, %v2115_v18  ;;  %v1877_v38 = vsel %vm1873_vm15, %v1857_v19, %v1860_v21  ;;  %v1881_v44 = vsel %vm1873_vm15, %v1860_v21, %v1863_v26  ;;  %v1738_v21 = vand.u32 2147483647, %v5348_v22 }
  0x5d   : > { %v2005_v6 = vadd.s32 536870912, %v2004_v61 }
  0x5e   : > { %vm4185_vm2 = vcmp.lt.s32.totalorder %v4184_v28, 0 }
  0x5f   : > { %4599 = vmatmul.mubr.bf16.gmra.mxu0 %v4934_v34  ;;  %v5363_v15 = vshrl.u32 %v2005_v6, 30  ;;  %v1878_v34 = vsel %vm1876_vm0, %v1866_v27, 2102212464  ;;  %v2118_v39 = vsel %vm4185_vm2, 0, %v4184_v28  ;;  %v1885_v6 = vsel %vm1873_vm15, %v1863_v26, %v1866_v27 }
  0x60   : > { %v1879_v60 = vsel %vm1875_vm3, %v1863_v26, %v1878_v34  ;;  %v2119_v57 = vsub.s32 32, %v2118_v39  ;;  %v2120_v45 = vshll.u32 %v5340_v49, %v2118_v39  ;;  %v2123_v46 = vsub.s32 4294967266, %v2118_v39 }
  0x61   : > { %v2007_v52 = vshll.u32 %v5363_v15, 30  ;;  %v1883_v49 = vsel %vm1875_vm3, %v1866_v27, %v1882_v48  ;;  %v1880_v9 = vsel %vm1874_vm1, %v1877_v38, %v1879_v60  ;;  %vm1843_vm2 = vcmp.lt.s32.totalorder %v5224_v41, 0 }
  0x62   : > { %v2121_v3 = vshrl.u32 %v2103_v11, %v2119_v57  ;;  %v2124_v4 = vadd.s32 127, %v2123_v46  ;;  %v1884_v29 = vsel %vm1874_vm1, %v1881_v44, %v1883_v49 }
  0x63   : > { %v5371_v32 = vsub.s32 %v2004_v61, %v2007_v52  ;;  %v2134_v61 = vsel %vm2049_vm14, %v2133_v55, %v5325_v42  ;;  %v1887_v42 = vsel %vm1875_vm3, %v1869_v30, %v1886_v10  ;;  %v4170_v55 = vadd.s32 4294967169, %v1742_v35 }
  0x64   : > { %v2122_v12 = vor.u32 %v2121_v3, %v2120_v45  ;;  %v2125_v58 = vshll.u32 %v2124_v4, 23  ;;  %v1888_v63 = vsel %vm1874_vm1, %v1885_v6, %v1887_v42  ;;  %v2000_v52 = vadd.s32 %v5317_v37, %v5323_v40 }
  0x65   : > { %v2010_v43 = vsub.s32 0, %v5371_v32  ;;  %v5397_v11 = vmul.u32.u64.low %v1889_v53, %v1884_v29  ;;  %v5398_v17 = vmul.u32.u64.high %v1889_v53, %v1884_v29, %v5397_v11  ;;  %v1748_v26 = vadd.s32 1, %v4170_v55 }
  0x66   : > { %v2126_v18 = vor.u32 4788187, %v2125_v58  ;;  %v2129_v19 = vcvt.s32.f32 %v2122_v12  ;;  %v5401_v20 = vmul.u32.u64.low %v1889_v53, %v1888_v63  ;;  %v5402_v50 = vmul.u32.u64.high %v1889_v53, %v1888_v63, %v5401_v20 }
  0x67   : > { %v4179_v1 = vmin.u32 %v2010_v43, %v5371_v32  ;;  %v2136_v13 = vsel %vm5382_vm4, 0, %v2134_v61  ;;  %v1896_v30 = vmul.u32 %v1889_v53, %v1880_v9  ;;  %v1899_v38 = vadd.s32 1, %v5398_v17 }
  0x68   : > { %v2127_v27 = vand.u32 2147483647, %v2126_v18  ;;  %v2030_v43 = vsub.s32 4, %v5363_v15  ;;  %vm1898_vm6 = vc.u32 %v5402_v50, %v5397_v11  ;;  %vm1749_vm7 = vcmp.gt.s32.totalorder %v1748_v26, 0 }
  0x69   : > { %v2012_v8 = vclz %v4179_v1  ;;  %v1900_v60 = vsel %vm1898_vm6, %v1899_v38, %v5398_v17  ;;  %v1750_v44 = vsel %vm1749_vm7, %v1748_v26, 0  ;;  %v5426_v3 = vand.u32 3, %v2136_v13 }
  0x6a   : > { %v2130_v39 = vmul.f32 %v2129_v19, %v2127_v27  ;;  %v1901_v45 = vadd.s32 %v1900_v60, %v1896_v30  ;;  %v1752_v46 = vand.u32 31, %v1750_v44  ;;  %v2031_v9 = vsel %vm1946_vm9, %v2030_v43, %v5363_v15 }
  0x6b   : > { %v4180_v16 = vadd.s32 4294967294, %v2012_v8  ;;  %v1751_v19 = vshrl.u32 %v1750_v44, 5  ;;  %v2033_v26 = vsel %vm5419_vm8, 0, %v2031_v9  ;;  %vm2145_vm10 = vcmp.eq.s32.totalorder %v5426_v3, 2 }
  0x6c   : > { %v2131_v57 = vxor.u32 2147483648, %v2130_v39  ;;  %v1902_v4 = vadd.s32 536870912, %v1901_v45  ;;  %v1753_v49 = vsub.s32 32, %v1752_v46  ;;  %v1755_v12 = vshll.u32 %v5053_v62, %v1752_v46 }
  0x6d   : > { %vm4181_vm5 = vcmp.lt.s32.totalorder %v4180_v16, 0  ;;  %v1758_v55 = vshll.u32 %v5054_v0, %v1752_v46  ;;  %v1761_v15 = vshll.u32 %v5055_v2, %v1752_v46  ;;  %v1764_v20 = vshll.u32 %v5056_v5, %v1752_v46 }
  0x6e   : > { %v2015_v28 = vsel %vm4181_vm5, 0, %v4180_v16  ;;  %v2132_v53 = vsel %vm2049_vm14, %v2131_v57, %v2130_v39  ;;  %v5434_v29 = vshrl.u32 %v1902_v4, 30  ;;  %v1756_v42 = vshrl.u32 %v5054_v0, %v1753_v49 }
  0x6f   : > { %v2016_v34 = vsub.s32 32, %v2015_v28  ;;  %v2017_v35 = vshll.u32 %v5371_v32, %v2015_v28  ;;  %v2020_v36 = vsub.s32 4294967266, %v2015_v28  ;;  %v1745_v32 = vand.u32 8388607, %v1738_v21 }
  0x70   : > { %v2135_v6 = vsel %vm5382_vm4, %v5200_v24, %v2132_v53  ;;  %v1904_v16 = vshll.u32 %v5434_v29, 30  ;;  %v1759_v63 = vshrl.u32 %v5055_v2, %v1753_v49  ;;  %v1762_v17 = vshrl.u32 %v5056_v5, %v1753_v49 }
  0x71   : > { %v2018_v37 = vshrl.u32 %v2000_v52, %v2016_v34  ;;  %v2021_v40 = vadd.s32 127, %v2020_v36  ;;  %4951 = vcosq.f32 %v2135_v6  ;;  %v1746_v10 = vor.u32 8388608, %v1745_v32  ;;  %v4935_v32 = vld [vmem:[%s7313_s1 + $0x78] sm:$0xff]  }
  0x72   : > { %4953 = vsinq.f32 %v2135_v6  ;;  %v1765_v52 = vshrl.u32 %v5057_v7, %v1753_v49  ;;  %v5450_v27 = vsub.s32 %v1901_v45, %v1904_v16  ;;  %v1767_v13 = vshll.u32 %v5057_v7, %v1752_v46  ;;  %4386 = vmatprep.subr.bf16.mxu1 %v4935_v32 }
  0x73   : > { %v2019_v61 = vor.u32 %v2018_v37, %v2017_v35  ;;  %v2022_v1 = vshll.u32 %v2021_v40, 23  ;;  %v5454_v28 = vmul.f32 0.62831855, %v5440_v59  ;;  %v1754_v34 = vshrl.u32 %v5053_v62, %v1753_v49 }
  0x74   : > { %v1768_v35 = vshrl.u32 %v5058_v14, %v1753_v49  ;;  %v5459_v36 = vshll.u32 %v1746_v10, 8  ;;  %vm2142_vm11 = vcmp.eq.s32.totalorder %v5426_v3, 0  ;;  %v1907_v38 = vsub.s32 0, %v5450_v27 }
  0x75   : > { %v2023_v31 = vor.u32 4788187, %v2022_v1  ;;  %v2026_v8 = vcvt.s32.f32 %v2019_v61  ;;  %v1757_v39 = vor.u32 %v1756_v42, %v1755_v12  ;;  %v1760_v43 = vor.u32 %v1759_v63, %v1758_v55  ;;  %v4936_v1 = vld [vmem:[%s7313_s1 + $0x38] sm:$0xff]  }
  0x76   : > { %v1763_v37 = vor.u32 %v1762_v17, %v1761_v15  ;;  %vm2141_vm12 = vcmp.lt.s32.totalorder %v5426_v3, 2  ;;  %v1766_v60 = vor.u32 %v1765_v52, %v1764_v20  ;;  %v1769_v44 = vor.u32 %v1768_v35, %v1767_v13  ;;  %4387 = vmatpush3.bf16.msra.mxu1 %v4936_v1 }
  0x77   : > { %v2024_v58 = vand.u32 2147483647, %v2023_v31  ;;  %vm1770_vm13 = vcmp.lt.s32.totalorder %v1751_v19, 1  ;;  %vm2139_vm14 = vweird.f32 %v5200_v24  ;;  %v4175_v45 = vmin.u32 %v1907_v38, %v5450_v27 }
  0x78   : > { %vm1771_vm15 = vcmp.lt.s32.totalorder %v1751_v19, 2  ;;  %vm1773_vm0 = vcmp.lt.s32.totalorder %v1751_v19, 4  ;;  %vm1772_vm1 = vcmp.lt.s32.totalorder %v1751_v19, 3  ;;  %v1774_v46 = vsel %vm1770_vm13, %v1754_v34, %v1757_v39 }
  0x79   : > { %v2027_v18 = vmul.f32 %v2026_v8, %v2024_v58  ;;  %v1775_v61 = vsel %vm1773_vm0, %v1763_v37, 2102212464  ;;  %v1909_v48 = vclz %v4175_v45  ;;  %v1778_v4 = vsel %vm1770_vm13, %v1757_v39, %v1760_v43 }
  0x7a   : > { %v1776_v53 = vsel %vm1772_vm1, %v1760_v43, %v1775_v61  ;;  %v5480_v49 = vand.u32 3, %v2033_v26  ;;  %v1779_v6 = vsel %vm1773_vm0, %v1766_v60, 920167782  ;;  %v1782_v31 = vsel %vm1770_vm13, %v1760_v43, %v1763_v37 }
  0x7b   : > { %v2028_v30 = vxor.u32 2147483648, %v2027_v18  ;;  %v1783_v8 = vsel %vm1773_vm0, %v1769_v44, 1326507024  ;;  %v1897_v9 = vadd.s32 %v5397_v11, %v5402_v50  ;;  %v4176_v10 = vadd.s32 4294967294, %v1909_v48 }
  0x7c   : > { %v1780_v12 = vsel %vm1772_vm1, %v1763_v37, %v1779_v6  ;;  %v1784_v58 = vsel %vm1772_vm1, %v1766_v60, %v1783_v8  ;;  %v1777_v55 = vsel %vm1771_vm15, %v1774_v46, %v1776_v53  ;;  %v1638_v15 = vand.u32 2139095040, %v5454_v28 }
  0x7d   : > { %v2029_v40 = vsel %vm1946_vm9, %v2028_v30, %v2027_v18  ;;  %v1781_v16 = vsel %vm1771_vm15, %v1778_v4, %v1780_v12  ;;  %v1785_v63 = vsel %vm1771_vm15, %v1782_v31, %v1784_v58  ;;  %vm4177_vm3 = vcmp.lt.s32.totalorder %v4176_v10, 0 }
  0x7e   : > { %v2032_v57 = vsel %vm5419_vm8, %v5203_v25, %v2029_v40  ;;  %v4952_v42 = vpop.eup %4951  ;;  %v5493_v20 = vmul.u32.u64.low %v5459_v36, %v1785_v63  ;;  %v5494_v11 = vmul.u32.u64.high %v5459_v36, %v1785_v63, %v5493_v20  ;;  %v1912_v52 = vsel %vm4177_vm3, 0, %v4176_v10 }
  0x7f   : > { %4955 = vcosq.f32 %v2032_v57  ;;  %v4954_v17 = vpop.eup %4953  ;;  %v2146_v18 = vxor.u32 2147483648, %v4952_v42  ;;  %v5497_v26 = vmul.u32.u64.low %v5459_v36, %v1781_v16  ;;  %v5498_v13 = vmul.u32.u64.high %v5459_v36, %v1781_v16, %v5497_v26 }
  0x80   : > { %4957 = vsinq.f32 %v2032_v57  ;;  %v2143_v50 = vxor.u32 2147483648, %v4954_v17  ;;  %vm2196_vm4 = vcmp.lt.f32.partialorder %v5197_v23, 5.0  ;;  %v1913_v30 = vsub.s32 32, %v1912_v52 }
  0x81   : > { %v2147_v19 = vsel %vm2145_vm10, %v2146_v18, %v4954_v17  ;;  %v1914_v34 = vshll.u32 %v5450_v27, %v1912_v52  ;;  %v1917_v35 = vsub.s32 4294967266, %v1912_v52  ;;  %vm2036_vm5 = vweird.f32 %v5203_v25  ;;  %v5542_v18 = vld [vmem:[%s5151_s12 + $0x50] sm:$0xff] }
  0x82   : > { %v2144_v38 = vsel %vm2142_vm11, %v4952_v42, %v2143_v50  ;;  %vm5510_vm6 = vcmp.le.f32.partialorder %v1841_v51, 0.7853982  ;;  %v1927_v43 = vsub.s32 4, %v5434_v29  ;;  %v1639_v37 = vshrl.u32 %v1638_v15, 23 }
  0x83   : > { %v2148_v40 = vsel %vm2141_vm12, %v2144_v38, %v2147_v19  ;;  %v1915_v60 = vshrl.u32 %v1897_v9, %v1913_v30  ;;  %v1918_v27 = vadd.s32 127, %v1917_v35  ;;  %v1793_v44 = vmul.u32 %v5459_v36, %v1777_v55 }
  0x84   : > { %v2149_v57 = vsel %vm2139_vm14, nan, %v2148_v40  ;;  %vm1795_vm7 = vc.u32 %v5494_v11, %v5497_v26  ;;  %v1796_v51 = vadd.s32 1, %v5498_v13  ;;  %v4166_v45 = vadd.s32 4294967169, %v1639_v37 }
  0x85   : > { %v2165_v32 = vadd.f32 1.0, %v2149_v57  ;;  %vm2042_vm8 = vcmp.eq.s32.totalorder %v5480_v49, 2  ;;  %v1916_v46 = vor.u32 %v1915_v60, %v1914_v34  ;;  %v1919_v61 = vshll.u32 %v1918_v27, 23 }
  0x86   : > { %v1928_v3 = vsel %vm1843_vm2, %v1927_v43, %v5434_v29  ;;  %v1797_v36 = vsel %vm1795_vm7, %v1796_v51, %v5498_v13  ;;  %v1635_v24 = vand.u32 2147483647, %v5454_v28  ;;  %v1645_v1 = vadd.s32 1, %v4166_v45 }
  0x87   : > { %v2181_v53 = vmul.f32 0.5, %v2165_v32  ;;  %v1920_v4 = vor.u32 4788187, %v1919_v61  ;;  %v1923_v6 = vcvt.s32.f32 %v1916_v46  ;;  %v1798_v31 = vadd.s32 %v1797_v36, %v1793_v44 }
  0x88   : > { %vm2038_vm9 = vcmp.lt.s32.totalorder %v5480_v49, 2  ;;  %vm2039_vm10 = vcmp.eq.s32.totalorder %v5480_v49, 0  ;;  %vm1646_vm11 = vcmp.gt.s32.totalorder %v1645_v1, 0  ;;  %v1930_v55 = vsel %vm5510_vm6, 0, %v1928_v3 }
  0x89   : > { %v2245_v29 = vmul.f32 %v5344_v56, %v2181_v53  ;;  %v1921_v12 = vand.u32 2147483647, %v1920_v4  ;;  %v1799_v58 = vadd.s32 536870912, %v1798_v31  ;;  %vm2195_vm12 = vcmp.lt.f32.partialorder %v5215_v33, 5.0 }
  0x8a   : > { %v1647_v16 = vsel %vm1646_vm11, %v1645_v1, 0  ;;  %v1642_v56 = vand.u32 8388607, %v1635_v24  ;;  %v4200_v50 = vsel %vm2196_vm4, 1.0, %v5059_v54  ;;  %v5552_v19 = vsel %vm2195_vm12, 1.0, %v5059_v54 }
  0x8b   : > { %2555 = vperm.xlu1 %4918, %v2245_v29   ;;  %v1924_v15 = vmul.f32 %v1923_v6, %v1921_v12  ;;  %v5537_v17 = vshrl.u32 %v1799_v58, 30  ;;  %v1649_v52 = vand.u32 31, %v1647_v16  ;;  %v5555_v35 = vand.u32 3, %v1930_v55 }
  0x8c   : > { %v4956_v48 = vpop.eup %4955  ;;  %v5558_v49 = vmul.f32 0.62831855, %v5542_v18  ;;  %v1643_v25 = vor.u32 8388608, %v1642_v56  ;;  %v1648_v51 = vshrl.u32 %v1647_v16, 5  ;;  %v1794_v39 = vadd.s32 %v5497_v26, %v5494_v11 }
  0x8d   : > { %v4958_v8 = vpop.eup %4957  ;;  %v2043_v9 = vxor.u32 2147483648, %v4956_v48  ;;  %v1925_v13 = vxor.u32 2147483648, %v1924_v15  ;;  %v1801_v30 = vshll.u32 %v5537_v17, 30  ;;  %v1650_v38 = vsub.s32 32, %v1649_v52 }
  0x8e   : > { %v2040_v10 = vxor.u32 2147483648, %v4958_v8  ;;  %v1652_v37 = vshll.u32 %v5053_v62, %v1649_v52  ;;  %v1655_v27 = vshll.u32 %v5054_v0, %v1649_v52  ;;  %v1658_v44 = vshll.u32 %v5055_v2, %v1649_v52 }
  0x8f   : > { %v2044_v42 = vsel %vm2042_vm8, %v2043_v9, %v4958_v8  ;;  %v1926_v23 = vsel %vm1843_vm2, %v1925_v13, %v1924_v15  ;;  %v5562_v43 = vsub.s32 %v1798_v31, %v1801_v30  ;;  %v1653_v45 = vshrl.u32 %v5054_v0, %v1650_v38 }
  0x90   : > { %v2041_v63 = vsel %vm2039_vm10, %v4956_v48, %v2040_v10  ;;  %v1929_v60 = vsel %vm5510_vm6, %v5224_v41, %v1926_v23  ;;  %v1656_v46 = vshrl.u32 %v5055_v2, %v1650_v38  ;;  %v1659_v61 = vshrl.u32 %v5056_v5, %v1650_v38 }
  0x91   : > { %v2045_v20 = vsel %vm2038_vm9, %v2041_v63, %v2044_v42  ;;  %4959 = vcosq.f32 %v1929_v60  ;;  %v1804_v57 = vsub.s32 0, %v5562_v43  ;;  %v1651_v36 = vshrl.u32 %v5053_v62, %v1650_v38 }
  0x92   : > { %v2046_v33 = vsel %vm2036_vm5, nan, %v2045_v20  ;;  %4961 = vsinq.f32 %v1929_v60  ;;  %v5578_v1 = vshll.u32 %v1643_v25, 8  ;;  %v1654_v48 = vor.u32 %v1653_v45, %v1652_v37 }
  0x93   : > { %v2164_v34 = vadd.f32 1.0, %v2046_v33  ;;  %v4171_v3 = vmin.u32 %v1804_v57, %v5562_v43  ;;  %v1657_v53 = vor.u32 %v1656_v46, %v1655_v27  ;;  %v1660_v4 = vor.u32 %v1659_v61, %v1658_v44 }
  0x94   : > { %v1661_v6 = vshll.u32 %v5056_v5, %v1649_v52  ;;  %v1662_v8 = vshrl.u32 %v5057_v7, %v1650_v38  ;;  %v1664_v9 = vshll.u32 %v5057_v7, %v1649_v52  ;;  %v1665_v29 = vshrl.u32 %v5058_v14, %v1650_v38 }
  0x95   : > { %v2180_v40 = vmul.f32 0.5, %v2164_v34  ;;  %v1806_v31 = vclz %v4171_v3  ;;  %vm1667_vm13 = vcmp.lt.s32.totalorder %v1648_v51, 1  ;;  %vm1668_vm14 = vcmp.lt.s32.totalorder %v1648_v51, 2 }
  0x96   : > { %vm1670_vm15 = vcmp.lt.s32.totalorder %v1648_v51, 4  ;;  %v1535_v11 = vand.u32 2139095040, %v5558_v49  ;;  %v1663_v10 = vor.u32 %v1662_v8, %v1661_v6  ;;  %v1666_v12 = vor.u32 %v1665_v29, %v1664_v9 }
  0x97   : > { %v2244_v32 = vmul.f32 %v4200_v50, %v2180_v40  ;;  %v4172_v26 = vadd.s32 4294967294, %v1806_v31  ;;  %vm1669_vm0 = vcmp.lt.s32.totalorder %v1648_v51, 3  ;;  %v1671_v58 = vsel %vm1667_vm13, %v1651_v36, %v1654_v48 }
  0x98   : > { %v1672_v42 = vsel %vm1670_vm15, %v1660_v4, 2102212464  ;;  %v1675_v55 = vsel %vm1667_vm13, %v1654_v48, %v1657_v53  ;;  %v1679_v16 = vsel %vm1667_vm13, %v1657_v53, %v1660_v4  ;;  %vm1933_vm1 = vweird.f32 %v5224_v41 }
  0x99   : > { %2550 = vperm.xlu0 %4917, %v2244_v32   ;;  %vm4173_vm2 = vcmp.lt.s32.totalorder %v4172_v26, 0  ;;  %v1673_v63 = vsel %vm1669_vm0, %v1657_v53, %v1672_v42  ;;  %v1676_v15 = vsel %vm1670_vm15, %v1663_v10, 920167782  ;;  %v1680_v56 = vsel %vm1670_vm15, %v1666_v12, 1326507024 }
  0x9a   : > { %v1809_v20 = vsel %vm4173_vm2, 0, %v4172_v26  ;;  %v1677_v50 = vsel %vm1669_vm0, %v1660_v4, %v1676_v15  ;;  %v1681_v52 = vsel %vm1669_vm0, %v1663_v10, %v1680_v56  ;;  %v1536_v33 = vshrl.u32 %v1535_v11, 23 }
  0x9b   : > { %v1810_v13 = vsub.s32 32, %v1809_v20  ;;  %v1811_v30 = vshll.u32 %v5562_v43, %v1809_v20  ;;  %v1814_v34 = vsub.s32 4294967266, %v1809_v20  ;;  %v1678_v38 = vsel %vm1668_vm14, %v1675_v55, %v1677_v50 }
  0x9c   : > { %v1674_v23 = vsel %vm1668_vm14, %v1671_v58, %v1673_v63  ;;  %v1682_v25 = vsel %vm1668_vm14, %v1679_v16, %v1681_v52  ;;  %v5591_v37 = vmul.u32.u64.low %v5578_v1, %v1678_v38  ;;  %v5592_v40 = vmul.u32.u64.high %v5578_v1, %v1678_v38, %v5591_v37 }
  0x9d   : > { %v1812_v60 = vshrl.u32 %v1794_v39, %v1810_v13  ;;  %v1815_v27 = vadd.s32 127, %v1814_v34  ;;  %v5596_v44 = vmul.u32.u64.low %v5578_v1, %v1682_v25  ;;  %v5597_v57 = vmul.u32.u64.high %v5578_v1, %v1682_v25, %v5596_v44 }
  0x9e   : > { %v4960_v45 = vpop.eup %4959  ;;  %vm1935_vm3 = vcmp.lt.s32.totalorder %v5555_v35, 2  ;;  %vm1936_vm4 = vcmp.eq.s32.totalorder %v5555_v35, 0  ;;  %vm1939_vm5 = vcmp.eq.s32.totalorder %v5555_v35, 2  ;;  %v4162_v43 = vadd.s32 4294967169, %v1536_v33 }
  0x9f   : > { %v4962_v51 = vpop.eup %4961  ;;  %v1940_v32 = vxor.u32 2147483648, %v4960_v45  ;;  %v1813_v46 = vor.u32 %v1812_v60, %v1811_v30  ;;  %v1816_v61 = vshll.u32 %v1815_v27, 23  ;;  %v1532_v3 = vand.u32 2147483647, %v5558_v49 }
  0xa0   : > { %v1937_v39 = vxor.u32 2147483648, %v4962_v51  ;;  %v1690_v36 = vmul.u32 %v5578_v1, %v1674_v23  ;;  %v1693_v48 = vadd.s32 1, %v5592_v40  ;;  %v1542_v53 = vadd.s32 1, %v4162_v43 }
  0xa1   : > { %v1941_v4 = vsel %vm1939_vm5, %v1940_v32, %v4962_v51  ;;  %v1817_v6 = vor.u32 4788187, %v1816_v61  ;;  %v1820_v31 = vcvt.s32.f32 %v1813_v46  ;;  %v1824_v8 = vsub.s32 4, %v5537_v17 }
  0xa2   : > { %v1938_v9 = vsel %vm1936_vm4, %v4960_v45, %v1937_v39  ;;  %vm1740_vm6 = vcmp.lt.s32.totalorder %v5348_v22, 0  ;;  %vm1692_vm7 = vc.u32 %v5597_v57, %v5591_v37  ;;  %vm1543_vm8 = vcmp.gt.s32.totalorder %v1542_v53, 0 }
  0xa3   : > { %v1942_v1 = vsel %vm1935_vm3, %v1938_v9, %v1941_v4  ;;  %v1818_v29 = vand.u32 2147483647, %v1817_v6  ;;  %v1694_v11 = vsel %vm1692_vm7, %v1693_v48, %v5592_v40  ;;  %v1544_v26 = vsel %vm1543_vm8, %v1542_v53, 0  ;;  %v5655_v48 = vld [vmem:[%s5151_s12 + $0x48] sm:$0xff]  ;;  %v4937_v53 = vld [vmem:[%s7313_s1 + $0x70] sm:$0xff]  }
  0xa4   : > { %v1943_v10 = vsel %vm1933_vm1, nan, %v1942_v1  ;;  %vm5618_vm9 = vcmp.le.f32.partialorder %v1738_v21, 0.7853982  ;;  %v1695_v58 = vadd.s32 %v1694_v11, %v1690_v36  ;;  %v1546_v42 = vand.u32 31, %v1544_v26  ;;  %4388 = vmatprep.subr.bf16.mxu1 %v4937_v53 }
  0xa5   : > { %v2163_v55 = vadd.f32 1.0, %v1943_v10  ;;  %v1821_v16 = vmul.f32 %v1820_v31, %v1818_v29  ;;  %v1825_v35 = vsel %vm1740_vm6, %v1824_v8, %v5537_v17  ;;  %v1539_v63 = vand.u32 8388607, %v1532_v3  ;;  %v4938_v31 = vld [vmem:[%s7313_s1 + $0x30] sm:$0xff]  }
  0xa6   : > { %v1696_v15 = vadd.s32 536870912, %v1695_v58  ;;  %v5627_v41 = vshrl.u32 %v1544_v26, 5  ;;  %v1547_v56 = vsub.s32 32, %v1546_v42  ;;  %v1549_v21 = vshll.u32 %v5053_v62, %v1546_v42  ;;  %4389 = vmatpush3.bf16.msra.mxu1 %v4938_v31 }
  0xa7   : > { %v2179_v20 = vmul.f32 0.5, %v2163_v55  ;;  %v1822_v50 = vxor.u32 2147483648, %v1821_v16  ;;  %v1552_v52 = vshll.u32 %v5054_v0, %v1546_v42  ;;  %v1555_v33 = vshll.u32 %v5055_v2, %v1546_v42 }
  0xa8   : > { %v5632_v13 = vshrl.u32 %v1696_v15, 30  ;;  %v1550_v30 = vshrl.u32 %v5054_v0, %v1547_v56  ;;  %v1553_v17 = vshrl.u32 %v5055_v2, %v1547_v56  ;;  %v1558_v34 = vshll.u32 %v5056_v5, %v1546_v42 }
  0xa9   : > { %v2243_v38 = vmul.f32 %v5552_v19, %v2179_v20  ;;  %v1823_v23 = vsel %vm1740_vm6, %v1822_v50, %v1821_v16  ;;  %v1556_v25 = vshrl.u32 %v5056_v5, %v1547_v56  ;;  %v1559_v40 = vshrl.u32 %v5057_v7, %v1547_v56 }
  0xaa   : > { %v1826_v60 = vsel %vm5618_vm9, %v5348_v22, %v1823_v23  ;;  %v1827_v27 = vsel %vm5618_vm9, 0, %v1825_v35  ;;  %v1698_v44 = vshll.u32 %v5632_v13, 30  ;;  %v1540_v19 = vor.u32 8388608, %v1539_v63 }
  0xab   : > { %2545 = vperm.xlu1 %4918, %v2243_v38   ;;  %4963 = vcosq.f32 %v1826_v60  ;;  %v1548_v45 = vshrl.u32 %v5053_v62, %v1547_v56  ;;  %v1551_v43 = vor.u32 %v1550_v30, %v1549_v21  ;;  %v1554_v32 = vor.u32 %v1553_v17, %v1552_v52 }
  0xac   : > { %4965 = vsinq.f32 %v1826_v60  ;;  %v5649_v51 = vsub.s32 %v1695_v58, %v1698_v44  ;;  %v1561_v46 = vshll.u32 %v5057_v7, %v1546_v42  ;;  %v1557_v61 = vor.u32 %v1556_v25, %v1555_v33 }
  0xad   : > { %v1560_v39 = vor.u32 %v1559_v40, %v1558_v34  ;;  %v1562_v36 = vshrl.u32 %v5058_v14, %v1547_v56  ;;  %vm1564_vm10 = vcmp.lt.s32.totalorder %v5627_v41, 1  ;;  %v5660_v4 = vand.u32 3, %v1827_v27 }
  0xae   : > { %vm2194_vm11 = vcmp.lt.f32.partialorder %v5336_v47, 5.0  ;;  %v1701_v6 = vsub.s32 0, %v5649_v51  ;;  %vm1567_vm12 = vcmp.lt.s32.totalorder %v5627_v41, 4  ;;  %vm1566_vm13 = vcmp.lt.s32.totalorder %v5627_v41, 3 }
  0xaf   : > { %v1563_v8 = vor.u32 %v1562_v36, %v1561_v46  ;;  %v1569_v9 = vsel %vm1567_vm12, %v1557_v61, 2102212464  ;;  %v1580_v1 = vshll.u32 %v1540_v19, 8  ;;  %vm1565_vm14 = vcmp.lt.s32.totalorder %v5627_v41, 2 }
  0xb0   : > { %v4167_v29 = vmin.u32 %v1701_v6, %v5649_v51  ;;  %v1572_v11 = vsel %vm1564_vm10, %v1551_v43, %v1554_v32  ;;  %v5674_v26 = vmul.f32 0.62831855, %v5655_v48  ;;  %v1568_v10 = vsel %vm1564_vm10, %v1548_v45, %v1551_v43 }
  0xb1   : > { %v1573_v12 = vsel %vm1567_vm12, %v1560_v39, 920167782  ;;  %v1576_v58 = vsel %vm1564_vm10, %v1554_v32, %v1557_v61  ;;  %v1577_v42 = vsel %vm1567_vm12, %v1563_v8, 1326507024  ;;  %v1570_v16 = vsel %vm1566_vm13, %v1554_v32, %v1569_v9  ;;  %v5720_v9 = vld [vmem:[%s5151_s12 + $0x40] sm:$0xff] }
  0xb2   : > { %v1703_v55 = vclz %v4167_v29  ;;  %v1574_v35 = vsel %vm1566_vm13, %v1557_v61, %v1573_v12  ;;  %v1578_v63 = vsel %vm1566_vm13, %v1560_v39, %v1577_v42  ;;  %vm1830_vm15 = vweird.f32 %v5348_v22 }
  0xb3   : > { %v1575_v15 = vsel %vm1565_vm14, %v1572_v11, %v1574_v35  ;;  %v1579_v56 = vsel %vm1565_vm14, %v1576_v58, %v1578_v63  ;;  %v1432_v52 = vand.u32 2139095040, %v5674_v26  ;;  %v4198_v33 = vsel %vm2194_vm11, 1.0, %v5059_v54 }
  0xb4   : > { %v4168_v21 = vadd.s32 4294967294, %v1703_v55  ;;  %v5691_v20 = vmul.u32.u64.low %v1580_v1, %v1579_v56  ;;  %v5692_v50 = vmul.u32.u64.high %v1580_v1, %v1579_v56, %v5691_v20  ;;  %v1571_v30 = vsel %vm1565_vm14, %v1568_v10, %v1570_v16 }
  0xb5   : > { %v5700_v17 = vmul.u32.u64.low %v1580_v1, %v1575_v15  ;;  %v5701_v34 = vmul.u32.u64.high %v1580_v1, %v1575_v15, %v5700_v17  ;;  %vm1833_vm0 = vcmp.eq.s32.totalorder %v5660_v4, 0  ;;  %v1691_v38 = vadd.s32 %v5591_v37, %v5597_v57 }
  0xb6   : > { %vm4169_vm1 = vcmp.lt.s32.totalorder %v4168_v21, 0  ;;  %v1433_v23 = vshrl.u32 %v1432_v52, 23  ;;  %vm1836_vm2 = vcmp.eq.s32.totalorder %v5660_v4, 2  ;;  %v1721_v40 = vsub.s32 4, %v5632_v13 }
  0xb7   : > { %v1706_v25 = vsel %vm4169_vm1, 0, %v4168_v21  ;;  %v1429_v47 = vand.u32 2147483647, %v5674_v26  ;;  %v1587_v19 = vmul.u32 %v1580_v1, %v1571_v30  ;;  %vm1589_vm3 = vc.u32 %v5692_v50, %v5700_v17 }
  0xb8   : > { %v4964_v60 = vpop.eup %4963  ;;  %v1707_v41 = vsub.s32 32, %v1706_v25  ;;  %v1708_v27 = vshll.u32 %v5649_v51, %v1706_v25  ;;  %v1711_v44 = vsub.s32 4294967266, %v1706_v25  ;;  %v1590_v37 = vadd.s32 1, %v5701_v34 }
  0xb9   : > { %v4966_v45 = vpop.eup %4965  ;;  %v1837_v43 = vxor.u32 2147483648, %v4964_v60  ;;  %v4158_v57 = vadd.s32 4294967169, %v1433_v23  ;;  %vm1832_vm4 = vcmp.lt.s32.totalorder %v5660_v4, 2  ;;  %vm1637_vm5 = vcmp.lt.s32.totalorder %v5454_v28, 0 }
  0xba   : > { %v1834_v32 = vxor.u32 2147483648, %v4966_v45  ;;  %v1709_v46 = vshrl.u32 %v1691_v38, %v1707_v41  ;;  %v1712_v61 = vadd.s32 127, %v1711_v44  ;;  %v1591_v51 = vsel %vm1589_vm3, %v1590_v37, %v5701_v34 }
  0xbb   : > { %v1838_v39 = vsel %vm1836_vm2, %v1837_v43, %v4966_v45  ;;  %v1439_v36 = vadd.s32 1, %v4158_v57  ;;  %v1592_v8 = vadd.s32 %v1591_v51, %v1587_v19  ;;  %v1722_v29 = vsel %vm1637_vm5, %v1721_v40, %v5632_v13 }
  0xbc   : > { %v1835_v53 = vsel %vm1833_vm0, %v4964_v60, %v1834_v32  ;;  %v1710_v6 = vor.u32 %v1709_v46, %v1708_v27  ;;  %v1713_v31 = vshll.u32 %v1712_v61, 23  ;;  %v1436_v11 = vand.u32 8388607, %v1429_v47 }
  0xbd   : > { %v1839_v1 = vsel %vm1832_vm4, %v1835_v53, %v1838_v39  ;;  %vm1440_vm6 = vcmp.gt.s32.totalorder %v1439_v36, 0  ;;  %v1593_v58 = vadd.s32 536870912, %v1592_v8  ;;  %vm5731_vm7 = vcmp.le.f32.partialorder %v1635_v24, 0.7853982 }
  0xbe   : > { %v1840_v10 = vsel %vm1830_vm15, nan, %v1839_v1  ;;  %v1714_v12 = vor.u32 4788187, %v1713_v31  ;;  %v1717_v4 = vcvt.s32.f32 %v1710_v6  ;;  %v1441_v16 = vsel %vm1440_vm6, %v1439_v36, 0 }
  0xbf   : > { %v2162_v42 = vadd.f32 1.0, %v1840_v10  ;;  %v5736_v13 = vmul.f32 0.62831855, %v5720_v9  ;;  %v1724_v63 = vsel %vm5731_vm7, 0, %v1722_v29  ;;  %v5740_v22 = vshrl.u32 %v1593_v58, 30 }
  0xc0   : > { %v1715_v35 = vand.u32 2147483647, %v1714_v12  ;;  %v1443_v15 = vand.u32 31, %v1441_v16  ;;  %v1437_v52 = vor.u32 8388608, %v1436_v11  ;;  %v5743_v34 = vand.u32 3, %v1724_v63 }
  0xc1   : > { %v2178_v56 = vmul.f32 0.5, %v2162_v42  ;;  %v1595_v20 = vshll.u32 %v5740_v22, 30  ;;  %v1588_v38 = vadd.s32 %v5700_v17, %v5692_v50  ;;  %v1329_v23 = vand.u32 2139095040, %v5736_v13 }
  0xc2   : > { %v1718_v21 = vmul.f32 %v1717_v4, %v1715_v35  ;;  %v1444_v24 = vsub.s32 32, %v1443_v15  ;;  %v1446_v60 = vshll.u32 %v5053_v62, %v1443_v15  ;;  %v1449_v41 = vshll.u32 %v5054_v0, %v1443_v15 }
  0xc3   : > { %v2242_v30 = vmul.f32 %v4198_v33, %v2178_v56  ;;  %v5747_v40 = vsub.s32 %v1592_v8, %v1595_v20  ;;  %v1452_v33 = vshll.u32 %v5055_v2, %v1443_v15  ;;  %v1442_v45 = vshrl.u32 %v1441_v16, 5 }
  0xc4   : > { %v1719_v25 = vxor.u32 2147483648, %v1718_v21  ;;  %v1447_v27 = vshrl.u32 %v5054_v0, %v1444_v24  ;;  %v1450_v44 = vshrl.u32 %v5055_v2, %v1444_v24  ;;  %v1453_v19 = vshrl.u32 %v5056_v5, %v1444_v24 }
  0xc5   : > { %2540 = vperm.xlu0 %4917, %v2242_v30   ;;  %v1598_v17 = vsub.s32 0, %v5747_v40  ;;  %v5758_v43 = vshll.u32 %v1437_v52, 8  ;;  %v1445_v57 = vshrl.u32 %v5053_v62, %v1444_v24  ;;  %v1455_v32 = vshll.u32 %v5056_v5, %v1443_v15 }
  0xc6   : > { %v1720_v50 = vsel %vm1637_vm5, %v1719_v25, %v1718_v21  ;;  %v1330_v46 = vshrl.u32 %v1329_v23, 23  ;;  %vm2193_vm8 = vcmp.lt.f32.partialorder %v5440_v59, 5.0  ;;  %v1448_v39 = vor.u32 %v1447_v27, %v1446_v60 }
  0xc7   : > { %v1723_v37 = vsel %vm5731_vm7, %v5454_v28, %v1720_v50  ;;  %v4163_v61 = vmin.u32 %v1598_v17, %v5747_v40  ;;  %v1451_v51 = vor.u32 %v1450_v44, %v1449_v41  ;;  %v1454_v36 = vor.u32 %v1453_v19, %v1452_v33 }
  0xc8   : > { %4967 = vcosq.f32 %v1723_v37  ;;  %v1456_v53 = vshrl.u32 %v5057_v7, %v1444_v24  ;;  %v1458_v6 = vshll.u32 %v5057_v7, %v1443_v15  ;;  %v1459_v8 = vshrl.u32 %v5058_v14, %v1444_v24 }
  0xc9   : > { %4969 = vsinq.f32 %v1723_v37  ;;  %v1600_v31 = vclz %v4163_v61  ;;  %vm1461_vm9 = vcmp.lt.s32.totalorder %v1442_v45, 1  ;;  %vm1462_vm10 = vcmp.lt.s32.totalorder %v1442_v45, 2 }
  0xca   : > { %v1457_v1 = vor.u32 %v1456_v53, %v1455_v32  ;;  %vm1463_vm11 = vcmp.lt.s32.totalorder %v1442_v45, 3  ;;  %vm1464_vm12 = vcmp.lt.s32.totalorder %v1442_v45, 4  ;;  %v1465_v29 = vsel %vm1461_vm9, %v1445_v57, %v1448_v39 }
  0xcb   : > { %v4164_v11 = vadd.s32 4294967294, %v1600_v31  ;;  %v1460_v10 = vor.u32 %v1459_v8, %v1458_v6  ;;  %v1466_v12 = vsel %vm1464_vm12, %v1454_v36, 2102212464  ;;  %v1469_v4 = vsel %vm1461_vm9, %v1448_v39, %v1451_v51 }
  0xcc   : > { %v1467_v58 = vsel %vm1463_vm11, %v1451_v51, %v1466_v12  ;;  %v1470_v42 = vsel %vm1464_vm12, %v1457_v1, 920167782  ;;  %v1473_v55 = vsel %vm1461_vm9, %v1451_v51, %v1454_v36  ;;  %v1326_v16 = vand.u32 2147483647, %v5736_v13 }
  0xcd   : > { %vm4165_vm13 = vcmp.lt.s32.totalorder %v4164_v11, 0  ;;  %v1471_v35 = vsel %vm1463_vm11, %v1454_v36, %v1470_v42  ;;  %v1474_v63 = vsel %vm1464_vm12, %v1460_v10, 1326507024  ;;  %v4154_v15 = vadd.s32 4294967169, %v1330_v46 }
  0xce   : > { %v1603_v56 = vsel %vm4165_vm13, 0, %v4164_v11  ;;  %v1468_v21 = vsel %vm1462_vm10, %v1465_v29, %v1467_v58  ;;  %v1472_v20 = vsel %vm1462_vm10, %v1469_v4, %v1471_v35  ;;  %v1475_v52 = vsel %vm1463_vm11, %v1457_v1, %v1474_v63 }
  0xcf   : > { %vm1727_vm14 = vweird.f32 %v5454_v28  ;;  %v1604_v24 = vsub.s32 32, %v1603_v56  ;;  %v1605_v30 = vshll.u32 %v5747_v40, %v1603_v56  ;;  %v1608_v23 = vsub.s32 4294967266, %v1603_v56 }
  0xd0   : > { %v1476_v25 = vsel %vm1462_vm10, %v1473_v55, %v1475_v52  ;;  %v5784_v27 = vmul.u32.u64.low %v5758_v43, %v1472_v20  ;;  %v5785_v44 = vmul.u32.u64.high %v5758_v43, %v1472_v20, %v5784_v27  ;;  %v1618_v50 = vsub.s32 4, %v5740_v22 }
  0xd1   : > { %v5780_v60 = vmul.u32.u64.low %v5758_v43, %v1476_v25  ;;  %v5781_v41 = vmul.u32.u64.high %v5758_v43, %v1476_v25, %v5780_v60  ;;  %v1606_v33 = vshrl.u32 %v1588_v38, %v1604_v24  ;;  %v1609_v19 = vadd.s32 127, %v1608_v23 }
  0xd2   : > { %v1336_v17 = vadd.s32 1, %v4154_v15  ;;  %vm1730_vm15 = vcmp.eq.s32.totalorder %v5743_v34, 0  ;;  %vm1733_vm0 = vcmp.eq.s32.totalorder %v5743_v34, 2  ;;  %v4197_v40 = vsel %vm2193_vm8, 1.0, %v5059_v54 }
  0xd3   : > { %vm1534_vm1 = vcmp.lt.s32.totalorder %v5558_v49, 0  ;;  %v1607_v45 = vor.u32 %v1606_v33, %v1605_v30  ;;  %v1610_v37 = vshll.u32 %v1609_v19, 23  ;;  %v1484_v57 = vmul.u32 %v5758_v43, %v1468_v21 }
  0xd4   : > { %vm1337_vm2 = vcmp.gt.s32.totalorder %v1336_v17, 0  ;;  %vm1486_vm3 = vc.u32 %v5781_v41, %v5784_v27  ;;  %v1487_v32 = vadd.s32 1, %v5785_v44  ;;  %v5801_v46 = vand.u32 8388607, %v1326_v16 }
  0xd5   : > { %v4968_v38 = vpop.eup %4967  ;;  %v1338_v61 = vsel %vm1337_vm2, %v1336_v17, 0  ;;  %v1611_v51 = vor.u32 4788187, %v1610_v37  ;;  %v1614_v36 = vcvt.s32.f32 %v1607_v45  ;;  %v1619_v43 = vsel %vm1534_vm1, %v1618_v50, %v5740_v22  ;;  %v4939_v45 = vld [vmem:[%s7313_s1 + $0x68] sm:$0xff]  }
  0xd6   : > { %v4970_v59 = vpop.eup %4969  ;;  %v1734_v39 = vxor.u32 2147483648, %v4968_v38  ;;  %vm1729_vm4 = vcmp.lt.s32.totalorder %v5743_v34, 2  ;;  %v1488_v6 = vsel %vm1486_vm3, %v1487_v32, %v5785_v44  ;;  %v1340_v31 = vand.u32 31, %v1338_v61  ;;  %v4940_v32 = vld [vmem:[%s7313_s1 + $0x28] sm:$0xff]   ;;  %4390 = vmatprep.subr.bf16.mxu1 %v4939_v45 }
  0xd7   : > { %v1731_v53 = vxor.u32 2147483648, %v4970_v59  ;;  %vm5812_vm5 = vcmp.le.f32.partialorder %v1532_v3, 0.7853982  ;;  %v1612_v29 = vand.u32 2147483647, %v1611_v51  ;;  %v1489_v11 = vadd.s32 %v1488_v6, %v1484_v57  ;;  %4391 = vmatpush3.bf16.msra.mxu1 %v4940_v32 }
  0xd8   : > { %v1735_v8 = vsel %vm1733_vm0, %v1734_v39, %v4970_v59  ;;  %v1621_v10 = vsel %vm5812_vm5, 0, %v1619_v43  ;;  %v1334_v12 = vor.u32 8388608, %v5801_v46  ;;  %v1341_v4 = vsub.s32 32, %v1340_v31  ;;  %v5854_v39 = vld [vmem:[%s5151_s12 + $0x38] sm:$0xff] }
  0xd9   : > { %v1732_v22 = vsel %vm1730_vm15, %v4968_v38, %v1731_v53  ;;  %v1615_v42 = vmul.f32 %v1614_v36, %v1612_v29  ;;  %v1490_v55 = vadd.s32 536870912, %v1489_v11  ;;  %v5821_v35 = vshrl.u32 %v1338_v61, 5 }
  0xda   : > { %v1736_v58 = vsel %vm1729_vm4, %v1732_v22, %v1735_v8  ;;  %v1343_v63 = vshll.u32 %v5053_v62, %v1340_v31  ;;  %v1344_v15 = vshrl.u32 %v5054_v0, %v1341_v4  ;;  %v1346_v34 = vshll.u32 %v5054_v0, %v1340_v31 }
  0xdb   : > { %v1737_v3 = vsel %vm1727_vm14, nan, %v1736_v58  ;;  %v1616_v21 = vxor.u32 2147483648, %v1615_v42  ;;  %v5828_v20 = vshrl.u32 %v1490_v55, 30  ;;  %v1347_v52 = vshrl.u32 %v5055_v2, %v1341_v4 }
  0xdc   : > { %v2161_v56 = vadd.f32 1.0, %v1737_v3  ;;  %v1349_v24 = vshll.u32 %v5055_v2, %v1340_v31  ;;  %v1350_v30 = vshrl.u32 %v5056_v5, %v1341_v4  ;;  %v1352_v23 = vshll.u32 %v5056_v5, %v1340_v31 }
  0xdd   : > { %v1353_v28 = vshrl.u32 %v5057_v7, %v1341_v4  ;;  %v1617_v60 = vsel %vm1534_vm1, %v1616_v21, %v1615_v42  ;;  %v1492_v44 = vshll.u32 %v5828_v20, 30  ;;  %vm1358_vm6 = vcmp.lt.s32.totalorder %v5821_v35, 1  ;;  %v5890_v21 = vld [vmem:[%s5151_s12 + $0x30] sm:$0xff] }
  0xde   : > { %v2177_v25 = vmul.f32 0.5, %v2161_v56  ;;  %v1620_v33 = vsel %vm5812_vm5, %v5558_v49, %v1617_v60  ;;  %v1342_v19 = vshrl.u32 %v5053_v62, %v1341_v4  ;;  %v1345_v50 = vor.u32 %v1344_v15, %v1343_v63 }
  0xdf   : > { %v1355_v17 = vshll.u32 %v5057_v7, %v1340_v31  ;;  %4971 = vcosq.f32 %v1620_v33  ;;  %v5847_v57 = vsub.s32 %v1489_v11, %v1492_v44  ;;  %v1348_v38 = vor.u32 %v1347_v52, %v1346_v34 }
  0xe0   : > { %v2241_v37 = vmul.f32 %v4197_v40, %v2177_v25  ;;  %4973 = vsinq.f32 %v1620_v33  ;;  %v1351_v46 = vor.u32 %v1350_v30, %v1349_v24  ;;  %v1354_v61 = vor.u32 %v1353_v28, %v1352_v23 }
  0xe1   : > { %v1356_v59 = vshrl.u32 %v5058_v14, %v1341_v4  ;;  %v5856_v51 = vand.u32 3, %v1621_v10  ;;  %v1495_v40 = vsub.s32 0, %v5847_v57  ;;  %vm1361_vm7 = vcmp.lt.s32.totalorder %v5821_v35, 4 }
  0xe2   : > { %2535 = vperm.xlu1 %4918, %v2241_v37   ;;  %vm1360_vm8 = vcmp.lt.s32.totalorder %v5821_v35, 3  ;;  %v1363_v43 = vsel %vm1361_vm7, %v1351_v46, 2102212464  ;;  %v1374_v53 = vshll.u32 %v1334_v12, 8  ;;  %vm1359_vm9 = vcmp.lt.s32.totalorder %v5821_v35, 2 }
  0xe3   : > { %v1357_v36 = vor.u32 %v1356_v59, %v1355_v17  ;;  %v4159_v6 = vmin.u32 %v1495_v40, %v5847_v57  ;;  %v1366_v31 = vsel %vm1358_vm6, %v1345_v50, %v1348_v38  ;;  %v5866_v8 = vmul.f32 0.62831855, %v5854_v39 }
  0xe4   : > { %v1362_v1 = vsel %vm1358_vm6, %v1342_v19, %v1345_v50  ;;  %v1367_v29 = vsel %vm1361_vm7, %v1354_v61, 920167782  ;;  %v1370_v11 = vsel %vm1358_vm6, %v1348_v38, %v1351_v46  ;;  %v1364_v12 = vsel %vm1360_vm8, %v1348_v38, %v1363_v43 }
  0xe5   : > { %v1371_v22 = vsel %vm1361_vm7, %v1357_v36, 1326507024  ;;  %v1497_v10 = vclz %v4159_v6  ;;  %v1368_v4 = vsel %vm1360_vm8, %v1351_v46, %v1367_v29  ;;  %vm1626_vm10 = vcmp.lt.s32.totalorder %v5856_v51, 2 }
  0xe6   : > { %v1372_v58 = vsel %vm1360_vm8, %v1354_v61, %v1371_v22  ;;  %vm1431_vm11 = vcmp.lt.s32.totalorder %v5674_v26, 0  ;;  %v1369_v42 = vsel %vm1359_vm9, %v1366_v31, %v1368_v4  ;;  %vm1624_vm12 = vweird.f32 %v5558_v49 }
  0xe7   : > { %v1373_v55 = vsel %vm1359_vm9, %v1370_v11, %v1372_v58  ;;  %vm5881_vm13 = vcmp.le.f32.partialorder %v1429_v47, 0.7853982  ;;  %v4160_v63 = vadd.s32 4294967294, %v1497_v10  ;;  %v1515_v15 = vsub.s32 4, %v5828_v20 }
  0xe8   : > { %v5886_v34 = vmul.u32.u64.low %v1374_v53, %v1373_v55  ;;  %v5887_v56 = vmul.u32.u64.high %v1374_v53, %v1373_v55, %v5886_v34  ;;  %v1365_v52 = vsel %vm1359_vm9, %v1362_v1, %v1364_v12  ;;  %v1226_v23 = vand.u32 2139095040, %v5866_v8 }
  0xe9   : > { %v5894_v24 = vmul.u32.u64.low %v1374_v53, %v1369_v42  ;;  %v5895_v30 = vmul.u32.u64.high %v1374_v53, %v1369_v42, %v5894_v24  ;;  %vm1627_vm14 = vcmp.eq.s32.totalorder %v5856_v51, 0  ;;  %vm2192_vm15 = vcmp.lt.f32.partialorder %v5542_v18, 5.0 }
  0xea   : > { %v1485_v47 = vadd.s32 %v5784_v27, %v5781_v41  ;;  %vm4161_vm0 = vcmp.lt.s32.totalorder %v4160_v63, 0  ;;  %v1223_v28 = vand.u32 2147483647, %v5866_v8  ;;  %vm1630_vm1 = vcmp.eq.s32.totalorder %v5856_v51, 2 }
  0xeb   : > { %v1500_v25 = vsel %vm4161_vm0, 0, %v4160_v63  ;;  %v1227_v35 = vshrl.u32 %v1226_v23, 23  ;;  %v5905_v60 = vmul.f32 0.62831855, %v5890_v21  ;;  %v1381_v50 = vmul.u32 %v1374_v53, %v1365_v52 }
  0xec   : > { %v1501_v44 = vsub.s32 32, %v1500_v25  ;;  %v1502_v33 = vshll.u32 %v5847_v57, %v1500_v25  ;;  %v1505_v19 = vsub.s32 4294967266, %v1500_v25  ;;  %v4972_v17 = vpop.eup %4971  ;;  %v1516_v41 = vsel %vm1431_vm11, %v1515_v15, %v5828_v20 }
  0xed   : > { %vm1383_vm2 = vc.u32 %v5887_v56, %v5894_v24  ;;  %v1384_v27 = vadd.s32 1, %v5895_v30  ;;  %v4150_v45 = vadd.s32 4294967169, %v1227_v35  ;;  %v4974_v37 = vpop.eup %4973  ;;  %v1631_v38 = vxor.u32 2147483648, %v4972_v17 }
  0xee   : > { %v1503_v32 = vshrl.u32 %v1485_v47, %v1501_v44  ;;  %v1506_v46 = vadd.s32 127, %v1505_v19  ;;  %v1230_v61 = vand.u32 8388607, %v1223_v28  ;;  %v1628_v57 = vxor.u32 2147483648, %v4974_v37 }
  0xef   : > { %v1385_v59 = vsel %vm1383_vm2, %v1384_v27, %v5895_v30  ;;  %v1233_v40 = vadd.s32 1, %v4150_v45  ;;  %v1123_v36 = vand.u32 2139095040, %v5905_v60  ;;  %v1632_v20 = vsel %vm1630_vm1, %v1631_v38, %v4974_v37 }
  0xf0   : > { %v1504_v43 = vor.u32 %v1503_v32, %v1502_v33  ;;  %v1507_v53 = vshll.u32 %v1506_v46, 23  ;;  %v1386_v6 = vadd.s32 %v1385_v59, %v1381_v50  ;;  %v1629_v31 = vsel %vm1627_vm14, %v4972_v17, %v1628_v57 }
  0xf1   : > { %v1518_v1 = vsel %vm5881_vm13, 0, %v1516_v41  ;;  %vm2191_vm3 = vcmp.lt.f32.partialorder %v5655_v48, 5.0  ;;  %vm1234_vm4 = vcmp.gt.s32.totalorder %v1233_v40, 0  ;;  %v1633_v29 = vsel %vm1626_vm10, %v1629_v31, %v1632_v20 }
  0xf2   : > { %v1508_v11 = vor.u32 4788187, %v1507_v53  ;;  %v1511_v22 = vcvt.s32.f32 %v1504_v43  ;;  %v1387_v10 = vadd.s32 536870912, %v1386_v6  ;;  %v1634_v12 = vsel %vm1624_vm12, nan, %v1633_v29 }
  0xf3   : > { %v1231_v4 = vor.u32 8388608, %v1230_v61  ;;  %v1235_v58 = vsel %vm1234_vm4, %v1233_v40, 0  ;;  %v1124_v42 = vshrl.u32 %v1123_v36, 23  ;;  %v2160_v55 = vadd.f32 1.0, %v1634_v12 }
  0xf4   : > { %v1509_v63 = vand.u32 2147483647, %v1508_v11  ;;  %v5928_v15 = vshrl.u32 %v1387_v10, 30  ;;  %v4196_v48 = vsel %vm2192_vm15, 1.0, %v5059_v54  ;;  %v5933_v34 = vand.u32 3, %v1518_v1 }
  0xf5   : > { %v5936_v51 = vsel %vm2191_vm3, 1.0, %v5059_v54  ;;  %v1237_v52 = vand.u32 31, %v1235_v58  ;;  %v2176_v30 = vmul.f32 0.5, %v2160_v55  ;;  %v1120_v47 = vand.u32 2147483647, %v5905_v60 }
  0xf6   : > { %v1512_v49 = vmul.f32 %v1511_v22, %v1509_v63  ;;  %v1389_v23 = vshll.u32 %v5928_v15, 30  ;;  %v1382_v25 = vadd.s32 %v5894_v24, %v5887_v56  ;;  %v5941_v44 = vshll.u32 %v1231_v4, 8 }
  0xf7   : > { %v1238_v35 = vsub.s32 32, %v1237_v52  ;;  %v4146_v33 = vadd.s32 4294967169, %v1124_v42  ;;  %v2240_v18 = vmul.f32 %v4196_v48, %v2176_v30  ;;  %v1240_v17 = vshll.u32 %v5053_v62, %v1237_v52 }
  0xf8   : > { %v1513_v19 = vxor.u32 2147483648, %v1512_v49  ;;  %v5943_v50 = vsub.s32 %v1386_v6, %v1389_v23  ;;  %v1243_v27 = vshll.u32 %v5054_v0, %v1237_v52  ;;  %v1246_v37 = vshll.u32 %v5055_v2, %v1237_v52 }
  0xf9   : > { %v1241_v41 = vshrl.u32 %v5054_v0, %v1238_v35  ;;  %v1244_v45 = vshrl.u32 %v5055_v2, %v1238_v35  ;;  %2530 = vperm.xlu0 %4917, %v2240_v18   ;;  %v1236_v38 = vshrl.u32 %v1235_v58, 5  ;;  %v1247_v32 = vshrl.u32 %v5056_v5, %v1238_v35 }
  0xfa   : > { %v1514_v56 = vsel %vm1431_vm11, %v1513_v19, %v1512_v49  ;;  %v1392_v24 = vsub.s32 0, %v5943_v50  ;;  %v1249_v61 = vshll.u32 %v5056_v5, %v1237_v52  ;;  %v5960_v57 = vand.u32 8388607, %v1120_v47 }
  0xfb   : > { %v1517_v46 = vsel %vm5881_vm13, %v5674_v26, %v1514_v56  ;;  %v1130_v59 = vadd.s32 1, %v4146_v33  ;;  %v1239_v36 = vshrl.u32 %v5053_v62, %v1238_v35  ;;  %v1242_v20 = vor.u32 %v1241_v41, %v1240_v17 }
  0xfc   : > { %4975 = vcosq.f32 %v1517_v46  ;;  %v4155_v40 = vmin.u32 %v1392_v24, %v5943_v50  ;;  %v1245_v43 = vor.u32 %v1244_v45, %v1243_v27  ;;  %v1248_v53 = vor.u32 %v1247_v32, %v1246_v37 }
  0xfd   : > { %4977 = vsinq.f32 %v1517_v46  ;;  %v1250_v6 = vshrl.u32 %v5057_v7, %v1238_v35  ;;  %v1252_v31 = vshll.u32 %v5057_v7, %v1237_v52  ;;  %v1253_v1 = vshrl.u32 %v5058_v14, %v1238_v35 }
  0xfe   : > { %v1394_v3 = vclz %v4155_v40  ;;  %vm1255_vm5 = vcmp.lt.s32.totalorder %v1236_v38, 1  ;;  %vm1256_vm6 = vcmp.lt.s32.totalorder %v1236_v38, 2  ;;  %vm1257_vm7 = vcmp.lt.s32.totalorder %v1236_v38, 3 }
  0xff   : > { %v1251_v29 = vor.u32 %v1250_v6, %v1249_v61  ;;  %vm1258_vm8 = vcmp.lt.s32.totalorder %v1236_v38, 4  ;;  %v1254_v22 = vor.u32 %v1253_v1, %v1252_v31  ;;  %v1259_v10 = vsel %vm1255_vm5, %v1239_v36, %v1242_v20 }
 0x100   : > { %v4156_v11 = vadd.s32 4294967294, %v1394_v3  ;;  %v1260_v12 = vsel %vm1258_vm8, %v1248_v53, 2102212464  ;;  %v1263_v58 = vsel %vm1255_vm5, %v1242_v20, %v1245_v43  ;;  %v1267_v55 = vsel %vm1255_vm5, %v1245_v43, %v1248_v53 }
 0x101   : > { %v1261_v4 = vsel %vm1257_vm7, %v1245_v43, %v1260_v12  ;;  %v1264_v42 = vsel %vm1258_vm8, %v1251_v29, 920167782  ;;  %v1268_v48 = vsel %vm1258_vm8, %v1254_v22, 1326507024  ;;  %vm1131_vm10 = vcmp.gt.s32.totalorder %v1130_v59, 0 }
 0x102   : > { %vm4157_vm9 = vcmp.lt.s32.totalorder %v4156_v11, 0  ;;  %v1265_v63 = vsel %vm1257_vm7, %v1248_v53, %v1264_v42  ;;  %v1262_v30 = vsel %vm1256_vm6, %v1259_v10, %v1261_v4  ;;  %v1269_v23 = vsel %vm1257_vm7, %v1251_v29, %v1268_v48 }
 0x103   : > { %v1397_v52 = vsel %vm4157_vm9, 0, %v4156_v11  ;;  %v1266_v49 = vsel %vm1256_vm6, %v1263_v58, %v1265_v63  ;;  %vm1521_vm11 = vweird.f32 %v5674_v26  ;;  %v1270_v19 = vsel %vm1256_vm6, %v1267_v55, %v1269_v23 }
 0x104   : > { %v1398_v35 = vsub.s32 32, %v1397_v52  ;;  %v1399_v33 = vshll.u32 %v5943_v50, %v1397_v52  ;;  %v1402_v18 = vsub.s32 4294967266, %v1397_v52  ;;  %v1128_v24 = vor.u32 8388608, %v5960_v57 }
 0x105   : > { %v5976_v17 = vmul.u32.u64.low %v5941_v44, %v1270_v19  ;;  %v5977_v41 = vmul.u32.u64.high %v5941_v44, %v1270_v19, %v5976_v17  ;;  %v5980_v27 = vmul.u32.u64.low %v5941_v44, %v1266_v49  ;;  %v5981_v45 = vmul.u32.u64.high %v5941_v44, %v1266_v49, %v5980_v27 }
 0x106   : > { %v1400_v37 = vshrl.u32 %v1382_v25, %v1398_v35  ;;  %v1403_v56 = vadd.s32 127, %v1402_v18  ;;  %v1132_v32 = vsel %vm1131_vm10, %v1130_v59, 0  ;;  %vm1523_vm12 = vcmp.lt.s32.totalorder %v5933_v34, 2 }
 0x107   : > { %vm1328_vm13 = vcmp.lt.s32.totalorder %v5736_v13, 0  ;;  %v1412_v50 = vsub.s32 4, %v5928_v15  ;;  %v1134_v38 = vand.u32 31, %v1132_v32  ;;  %vm1524_vm14 = vcmp.eq.s32.totalorder %v5933_v34, 0 }
 0x108   : > { %vm5991_vm15 = vcmp.le.f32.partialorder %v1326_v16, 0.7853982  ;;  %v1401_v25 = vor.u32 %v1400_v37, %v1399_v33  ;;  %v1404_v61 = vshll.u32 %v1403_v56, 23  ;;  %v1278_v57 = vmul.u32 %v5941_v44, %v1262_v30  ;;  %v4942_v56 = vld [vmem:[%s7313_s1 + $0x20] sm:$0xff]  }
 0x109   : > { %v4976_v59 = vpop.eup %4975  ;;  %vm1527_vm0 = vcmp.eq.s32.totalorder %v5933_v34, 2  ;;  %vm1280_vm1 = vc.u32 %v5977_v41, %v5980_v27  ;;  %v1281_v40 = vadd.s32 1, %v5981_v45  ;;  %v1135_v36 = vsub.s32 32, %v1134_v38  ;;  %v4941_v34 = vld [vmem:[%s7313_s1 + $0x60] sm:$0xff]  }
 0x10a   : > { %v4978_v20 = vpop.eup %4977  ;;  %v1528_v43 = vxor.u32 2147483648, %v4976_v59  ;;  %v1405_v53 = vor.u32 4788187, %v1404_v61  ;;  %v1408_v16 = vcvt.s32.f32 %v1401_v25  ;;  %v6000_v6 = vshll.u32 %v1128_v24, 8  ;;  %4392 = vmatprep.subr.bf16.mxu1 %v4941_v34 }
 0x10b   : > { %v1525_v3 = vxor.u32 2147483648, %v4978_v20  ;;  %v1413_v44 = vsel %vm1328_vm13, %v1412_v50, %v5928_v15  ;;  %v1282_v31 = vsel %vm1280_vm1, %v1281_v40, %v5981_v45  ;;  %v1137_v1 = vshll.u32 %v5053_v62, %v1134_v38  ;;  %4393 = vmatpush3.bf16.msra.mxu1 %v4942_v56 }
 0x10c   : > { %v1529_v29 = vsel %vm1527_vm0, %v1528_v43, %v4978_v20  ;;  %v1406_v11 = vand.u32 2147483647, %v1405_v53  ;;  %v1283_v22 = vadd.s32 %v1282_v31, %v1278_v57  ;;  %v1138_v10 = vshrl.u32 %v5054_v0, %v1135_v36  ;;  %v6043_v20 = vld [vmem:[%s5151_s12 + $0x28] sm:$0xff] }
 0x10d   : > { %v1526_v12 = vsel %vm1524_vm14, %v4976_v59, %v1525_v3  ;;  %v1140_v4 = vshll.u32 %v5054_v0, %v1134_v38  ;;  %v1141_v58 = vshrl.u32 %v5055_v2, %v1135_v36  ;;  %v1143_v42 = vshll.u32 %v5055_v2, %v1134_v38  ;;  %v6049_v3 = vld [vmem:[%s5151_s12 + $0x20] sm:$0xff] }
 0x10e   : > { %v1530_v15 = vsel %vm1523_vm12, %v1526_v12, %v1529_v29  ;;  %v1409_v55 = vmul.f32 %v1408_v16, %v1406_v11  ;;  %v1284_v63 = vadd.s32 536870912, %v1283_v22  ;;  %v1144_v48 = vshrl.u32 %v5056_v5, %v1135_v36 }
 0x10f   : > { %v1531_v52 = vsel %vm1521_vm11, nan, %v1530_v15  ;;  %v1133_v30 = vshrl.u32 %v1132_v32, 5  ;;  %v1146_v49 = vshll.u32 %v5056_v5, %v1134_v38  ;;  %v1147_v23 = vshrl.u32 %v5057_v7, %v1135_v36 }
 0x110   : > { %v2159_v35 = vadd.f32 1.0, %v1531_v52  ;;  %v1410_v33 = vxor.u32 2147483648, %v1409_v55  ;;  %v6020_v18 = vshrl.u32 %v1284_v63, 30  ;;  %v1136_v19 = vshrl.u32 %v5053_v62, %v1135_v36 }
 0x111   : > { %v1139_v17 = vor.u32 %v1138_v10, %v1137_v1  ;;  %v1142_v45 = vor.u32 %v1141_v58, %v1140_v4  ;;  %v1149_v26 = vshll.u32 %v5057_v7, %v1134_v38  ;;  %v1150_v37 = vshrl.u32 %v5058_v14, %v1135_v36 }
 0x112   : > { %v2175_v24 = vmul.f32 0.5, %v2159_v35  ;;  %v1411_v32 = vsel %vm1328_vm13, %v1410_v33, %v1409_v55  ;;  %v1286_v50 = vshll.u32 %v6020_v18, 30  ;;  %v1145_v25 = vor.u32 %v1144_v48, %v1143_v42 }
 0x113   : > { %v1414_v61 = vsel %vm5991_vm15, %v5736_v13, %v1411_v32  ;;  %v1148_v38 = vor.u32 %v1147_v23, %v1146_v49  ;;  %v1151_v57 = vor.u32 %v1150_v37, %v1149_v26  ;;  %vm1152_vm2 = vcmp.lt.s32.totalorder %v1133_v30, 1 }
 0x114   : > { %v2239_v59 = vmul.f32 %v5936_v51, %v2175_v24  ;;  %v1415_v40 = vsel %vm5991_vm15, 0, %v1413_v44  ;;  %4979 = vcosq.f32 %v1414_v61  ;;  %v6040_v36 = vsub.s32 %v1283_v22, %v1286_v50 }
 0x115   : > { %4981 = vsinq.f32 %v1414_v61  ;;  %vm1153_vm3 = vcmp.lt.s32.totalorder %v1133_v30, 2  ;;  %vm1154_vm4 = vcmp.lt.s32.totalorder %v1133_v30, 3  ;;  %vm1155_vm5 = vcmp.lt.s32.totalorder %v1133_v30, 4 }
 0x116   : > { %2525 = vperm.xlu1 %4918, %v2239_v59   ;;  %v1289_v43 = vsub.s32 0, %v6040_v36  ;;  %v1156_v53 = vsel %vm1152_vm2, %v1136_v19, %v1139_v17  ;;  %v1157_v16 = vsel %vm1155_vm5, %v1145_v25, 2102212464  ;;  %v1160_v51 = vsel %vm1152_vm2, %v1139_v17, %v1142_v45 }
 0x117   : > { %v1158_v46 = vsel %vm1154_vm4, %v1142_v45, %v1157_v16  ;;  %v1161_v44 = vsel %vm1155_vm5, %v1148_v38, 920167782  ;;  %v1164_v31 = vsel %vm1152_vm2, %v1142_v45, %v1145_v25  ;;  %v1165_v1 = vsel %vm1155_vm5, %v1151_v57, 1326507024 }
 0x118   : > { %v4151_v29 = vmin.u32 %v1289_v43, %v6040_v36  ;;  %v6055_v11 = vmul.f32 0.62831855, %v6043_v20  ;;  %v1419_v22 = vand.u32 3, %v1415_v40  ;;  %v1162_v10 = vsel %vm1154_vm4, %v1145_v25, %v1161_v44 }
 0x119   : > { %v1166_v12 = vsel %vm1154_vm4, %v1148_v38, %v1165_v1  ;;  %v6060_v4 = vmul.f32 0.62831855, %v6049_v3  ;;  %v1159_v42 = vsel %vm1153_vm3, %v1156_v53, %v1158_v46  ;;  %v1163_v15 = vsel %vm1153_vm3, %v1160_v51, %v1162_v10 }
 0x11a   : > { %v1291_v58 = vclz %v4151_v29  ;;  %v1167_v55 = vsel %vm1153_vm3, %v1164_v31, %v1166_v12  ;;  %v6070_v52 = vmul.u32.u64.low %v6000_v6, %v1163_v15  ;;  %v6071_v49 = vmul.u32.u64.high %v6000_v6, %v1163_v15, %v6070_v52 }
 0x11b   : > { %v6066_v63 = vmul.u32.u64.low %v6000_v6, %v1167_v55  ;;  %v6067_v48 = vmul.u32.u64.high %v6000_v6, %v1167_v55, %v6066_v63  ;;  %vm1418_vm6 = vweird.f32 %v5736_v13  ;;  %vm2190_vm7 = vcmp.lt.f32.partialorder %v5720_v9, 5.0 }
 0x11c   : > { %v4152_v23 = vadd.s32 4294967294, %v1291_v58  ;;  %v1020_v35 = vand.u32 2139095040, %v6055_v11  ;;  %vm1420_vm8 = vcmp.lt.s32.totalorder %v1419_v22, 2  ;;  %vm1225_vm9 = vcmp.lt.s32.totalorder %v5866_v8, 0 }
 0x11d   : > { %v1279_v30 = vadd.s32 %v5980_v27, %v5977_v41  ;;  %v1309_v33 = vsub.s32 4, %v6020_v18  ;;  %vm6083_vm10 = vcmp.le.f32.partialorder %v1223_v28, 0.7853982  ;;  %vm2189_vm12 = vcmp.lt.f32.partialorder %v5854_v39, 5.0 }
 0x11e   : > { %vm4153_vm11 = vcmp.lt.s32.totalorder %v4152_v23, 0  ;;  %v1175_v34 = vmul.u32 %v6000_v6, %v1159_v42  ;;  %v1021_v17 = vshrl.u32 %v1020_v35, 23  ;;  %v917_v45 = vand.u32 2139095040, %v6060_v4 }
 0x11f   : > { %v1294_v26 = vsel %vm4153_vm11, 0, %v4152_v23  ;;  %vm1177_vm13 = vc.u32 %v6067_v48, %v6070_v52  ;;  %v1178_v41 = vadd.s32 1, %v6071_v49  ;;  %v1017_v27 = vand.u32 2147483647, %v6055_v11 }
 0x120   : > { %v1295_v28 = vsub.s32 32, %v1294_v26  ;;  %v1296_v37 = vshll.u32 %v6040_v36, %v1294_v26  ;;  %v1299_v56 = vsub.s32 4294967266, %v1294_v26  ;;  %v4142_v24 = vadd.s32 4294967169, %v1021_v17 }
 0x121   : > { %v4980_v32 = vpop.eup %4979  ;;  %vm1421_vm14 = vcmp.eq.s32.totalorder %v1419_v22, 0  ;;  %vm1424_vm15 = vcmp.eq.s32.totalorder %v1419_v22, 2  ;;  %v1179_v6 = vsel %vm1177_vm13, %v1178_v41, %v6071_v49  ;;  %v918_v50 = vshrl.u32 %v917_v45, 23 }
 0x122   : > { %v4982_v25 = vpop.eup %4981  ;;  %v1425_v61 = vxor.u32 2147483648, %v4980_v32  ;;  %v1297_v38 = vshrl.u32 %v1279_v30, %v1295_v28  ;;  %v1300_v57 = vadd.s32 127, %v1299_v56  ;;  %v1180_v59 = vadd.s32 %v1179_v6, %v1175_v34 }
 0x123   : > { %v1422_v40 = vxor.u32 2147483648, %v4982_v25  ;;  %v1310_v43 = vsel %vm1225_vm9, %v1309_v33, %v6020_v18  ;;  %v1024_v36 = vand.u32 8388607, %v1017_v27  ;;  %v1027_v53 = vadd.s32 1, %v4142_v24 }
 0x124   : > { %v1426_v16 = vsel %vm1424_vm15, %v1425_v61, %v4982_v25  ;;  %v1298_v51 = vor.u32 %v1297_v38, %v1296_v37  ;;  %v1301_v46 = vshll.u32 %v1300_v57, 23  ;;  %v1181_v44 = vadd.s32 536870912, %v1180_v59 }
 0x125   : > { %v1423_v31 = vsel %vm1421_vm14, %v4980_v32, %v1422_v40  ;;  %vm1028_vm0 = vcmp.gt.s32.totalorder %v1027_v53, 0  ;;  %v914_v1 = vand.u32 2147483647, %v6060_v4  ;;  %v4138_v29 = vadd.s32 4294967169, %v918_v50 }
 0x126   : > { %v1427_v10 = vsel %vm1420_vm8, %v1423_v31, %v1426_v16  ;;  %v1302_v12 = vor.u32 4788187, %v1301_v46  ;;  %v1305_v58 = vcvt.s32.f32 %v1298_v51  ;;  %v6104_v42 = vshrl.u32 %v1181_v44, 30 }
 0x127   : > { %v1428_v18 = vsel %vm1418_vm6, nan, %v1427_v10  ;;  %v4194_v15 = vsel %vm2190_vm7, 1.0, %v5059_v54  ;;  %v1312_v55 = vsel %vm6083_vm10, 0, %v1310_v43  ;;  %v1029_v63 = vsel %vm1028_vm0, %v1027_v53, 0 }
 0x128   : > { %v2158_v49 = vadd.f32 1.0, %v1428_v18  ;;  %v1303_v23 = vand.u32 2147483647, %v1302_v12  ;;  %v1183_v22 = vshll.u32 %v6104_v42, 30  ;;  %v1025_v35 = vor.u32 8388608, %v1024_v36 }
 0x129   : > { %v6117_v30 = vsel %vm2189_vm12, 1.0, %v5059_v54  ;;  %v1031_v13 = vand.u32 31, %v1029_v63  ;;  %v6121_v33 = vand.u32 8388607, %v914_v1  ;;  %v924_v9 = vadd.s32 1, %v4138_v29 }
 0x12a   : > { %v2174_v34 = vmul.f32 0.5, %v2158_v49  ;;  %v1306_v17 = vmul.f32 %v1305_v58, %v1303_v23  ;;  %v6123_v45 = vand.u32 3, %v1312_v55  ;;  %v6125_v26 = vsub.s32 %v1180_v59, %v1183_v22 }
 0x12b   : > { %v1176_v41 = vadd.s32 %v6070_v52, %v6067_v48  ;;  %v1032_v28 = vsub.s32 32, %v1031_v13  ;;  %v1034_v39 = vshll.u32 %v5053_v62, %v1031_v13  ;;  %v1037_v37 = vshll.u32 %v5054_v0, %v1031_v13 }
 0x12c   : > { %v2238_v56 = vmul.f32 %v4194_v15, %v2174_v34  ;;  %v1307_v24 = vxor.u32 2147483648, %v1306_v17  ;;  %v1186_v32 = vsub.s32 0, %v6125_v26  ;;  %v6132_v6 = vshll.u32 %v1025_v35, 8 }
 0x12d   : > { %v1035_v50 = vshrl.u32 %v5054_v0, %v1032_v28  ;;  %v1038_v25 = vshrl.u32 %v5055_v2, %v1032_v28  ;;  %v922_v61 = vor.u32 8388608, %v6121_v33  ;;  %vm925_vm1 = vcmp.gt.s32.totalorder %v924_v9, 0 }
 0x12e   : > { %2520 = vperm.xlu0 %4917, %v2238_v56   ;;  %v1308_v48 = vsel %vm1225_vm9, %v1307_v24, %v1306_v17  ;;  %v4147_v52 = vmin.u32 %v1186_v32, %v6125_v26  ;;  %v1030_v38 = vshrl.u32 %v1029_v63, 5  ;;  %v1040_v57 = vshll.u32 %v5055_v2, %v1031_v13 }
 0x12f   : > { %v1311_v59 = vsel %vm6083_vm10, %v5866_v8, %v1308_v48  ;;  %v1033_v40 = vshrl.u32 %v5053_v62, %v1032_v28  ;;  %v1036_v43 = vor.u32 %v1035_v50, %v1034_v39  ;;  %v1039_v36 = vor.u32 %v1038_v25, %v1037_v37 }
 0x130   : > { %4983 = vcosq.f32 %v1311_v59  ;;  %v1188_v53 = vclz %v4147_v52  ;;  %v1041_v16 = vshrl.u32 %v5056_v5, %v1032_v28  ;;  %v1043_v51 = vshll.u32 %v5056_v5, %v1031_v13 }
 0x131   : > { %4985 = vsinq.f32 %v1311_v59  ;;  %v1044_v46 = vshrl.u32 %v5057_v7, %v1032_v28  ;;  %v1046_v44 = vshll.u32 %v5057_v7, %v1031_v13  ;;  %v1047_v31 = vshrl.u32 %v5058_v14, %v1032_v28 }
 0x132   : > { %vm1122_vm2 = vcmp.lt.s32.totalorder %v5905_v60, 0  ;;  %v4148_v19 = vadd.s32 4294967294, %v1188_v53  ;;  %v1042_v29 = vor.u32 %v1041_v16, %v1040_v57  ;;  %vm1049_vm3 = vcmp.lt.s32.totalorder %v1030_v38, 1 }
 0x133   : > { %v926_v10 = vsel %vm925_vm1, %v924_v9, 0  ;;  %v1045_v12 = vor.u32 %v1044_v46, %v1043_v51  ;;  %v1048_v58 = vor.u32 %v1047_v31, %v1046_v44  ;;  %vm1050_vm4 = vcmp.lt.s32.totalorder %v1030_v38, 2 }
 0x134   : > { %vm1052_vm5 = vcmp.lt.s32.totalorder %v1030_v38, 4  ;;  %vm4149_vm6 = vcmp.lt.s32.totalorder %v4148_v19, 0  ;;  %vm1051_vm7 = vcmp.lt.s32.totalorder %v1030_v38, 3  ;;  %v1053_v18 = vsel %vm1049_vm3, %v1033_v40, %v1036_v43 }
 0x135   : > { %v1054_v15 = vsel %vm1052_vm5, %v1042_v29, 2102212464  ;;  %vm1321_vm8 = vcmp.eq.s32.totalorder %v6123_v45, 2  ;;  %v1191_v55 = vsel %vm4149_vm6, 0, %v4148_v19  ;;  %v1057_v49 = vsel %vm1049_vm3, %v1036_v43, %v1039_v36 }
 0x136   : > { %v1055_v63 = vsel %vm1051_vm7, %v1039_v36, %v1054_v15  ;;  %v1058_v23 = vsel %vm1052_vm5, %v1045_v12, 920167782  ;;  %vm1318_vm9 = vcmp.eq.s32.totalorder %v6123_v45, 0  ;;  %v1192_v22 = vsub.s32 32, %v1191_v55 }
 0x137   : > { %v1193_v35 = vshll.u32 %v6125_v26, %v1191_v55  ;;  %v1196_v13 = vsub.s32 4294967266, %v1191_v55  ;;  %v1061_v33 = vsel %vm1049_vm3, %v1039_v36, %v1042_v29  ;;  %vm1317_vm10 = vcmp.lt.s32.totalorder %v6123_v45, 2 }
 0x138   : > { %v1206_v9 = vsub.s32 4, %v6104_v42  ;;  %v1056_v34 = vsel %vm1050_vm4, %v1053_v18, %v1055_v63  ;;  %v1059_v17 = vsel %vm1051_vm7, %v1042_v29, %v1058_v23  ;;  %v1062_v28 = vsel %vm1052_vm5, %v1048_v58, 1326507024 }
 0x139   : > { %vm1315_vm11 = vweird.f32 %v5866_v8  ;;  %v1194_v39 = vshrl.u32 %v1176_v41, %v1192_v22  ;;  %v1197_v37 = vadd.s32 127, %v1196_v13  ;;  %v1060_v56 = vsel %vm1050_vm4, %v1057_v49, %v1059_v17 }
 0x13a   : > { %v1063_v26 = vsel %vm1051_vm7, %v1045_v12, %v1062_v28  ;;  %v6171_v32 = vmul.u32.u64.low %v6132_v6, %v1060_v56  ;;  %v6172_v50 = vmul.u32.u64.high %v6132_v6, %v1060_v56, %v6171_v32  ;;  %v928_v25 = vand.u32 31, %v926_v10 }
 0x13b   : > { %v1064_v24 = vsel %vm1050_vm4, %v1061_v33, %v1063_v26  ;;  %vm6177_vm12 = vcmp.le.f32.partialorder %v1120_v47, 0.7853982  ;;  %v1195_v41 = vor.u32 %v1194_v39, %v1193_v35  ;;  %v1198_v52 = vshll.u32 %v1197_v37, 23 }
 0x13c   : > { %v6182_v57 = vmul.u32.u64.low %v6132_v6, %v1064_v24  ;;  %v6183_v59 = vmul.u32.u64.high %v6132_v6, %v1064_v24, %v6182_v57  ;;  %v6188_v38 = vsel %vm1122_vm2, %v1206_v9, %v6104_v42  ;;  %v1072_v40 = vmul.u32 %v6132_v6, %v1056_v34 }
 0x13d   : > { %v929_v43 = vsub.s32 32, %v928_v25  ;;  %v6191_v36 = vshll.u32 %v922_v61, 8  ;;  %v1199_v47 = vor.u32 4788187, %v1198_v52  ;;  %v1202_v53 = vcvt.s32.f32 %v1195_v41  ;;  %v4984_v46 = vpop.eup %4983 }
 0x13e   : > { %v6193_v16 = vshrl.u32 %v926_v10, 5  ;;  %v931_v51 = vshll.u32 %v5053_v62, %v928_v25  ;;  %v1075_v44 = vadd.s32 1, %v6172_v50  ;;  %v934_v31 = vshll.u32 %v5054_v0, %v928_v25  ;;  %v4986_v29 = vpop.eup %4985 }
 0x13f   : > { %v937_v19 = vshll.u32 %v5055_v2, %v928_v25  ;;  %v940_v42 = vshll.u32 %v5056_v5, %v928_v25  ;;  %v1322_v6 = vxor.u32 2147483648, %v4984_v46  ;;  %v1200_v12 = vand.u32 2147483647, %v1199_v47  ;;  %v4943_v47 = vld [vmem:[%s7313_s1 + $0x58] sm:$0xff]  }
 0x140   : > { %vm1074_vm13 = vc.u32 %v6183_v59, %v6171_v32  ;;  %v932_v61 = vshrl.u32 %v5054_v0, %v929_v43  ;;  %v1319_v10 = vxor.u32 2147483648, %v4986_v29  ;;  %v935_v18 = vshrl.u32 %v5055_v2, %v929_v43  ;;  %4394 = vmatprep.subr.bf16.mxu1 %v4943_v47 }
 0x141   : > { %v1076_v58 = vsel %vm1074_vm13, %v1075_v44, %v6172_v50  ;;  %v943_v15 = vshll.u32 %v5057_v7, %v928_v25  ;;  %v1323_v55 = vsel %vm1321_vm8, %v1322_v6, %v4986_v29  ;;  %v1203_v63 = vmul.f32 %v1202_v53, %v1200_v12  ;;  %v4944_v44 = vld [vmem:[%s7313_s1 + $0x18] sm:$0xff]  }
 0x142   : > { %v1077_v49 = vadd.s32 %v1076_v58, %v1072_v40  ;;  %v938_v23 = vshrl.u32 %v5056_v5, %v929_v43  ;;  %v1320_v22 = vsel %vm1318_vm9, %v4984_v46, %v1319_v10  ;;  %v930_v35 = vshrl.u32 %v5053_v62, %v929_v43  ;;  %4395 = vmatpush3.bf16.msra.mxu1 %v4944_v44 }
 0x143   : > { %v941_v13 = vshrl.u32 %v5057_v7, %v929_v43  ;;  %v944_v33 = vshrl.u32 %v5058_v14, %v929_v43  ;;  %v1324_v9 = vsel %vm1317_vm10, %v1320_v22, %v1323_v55  ;;  %v1204_v34 = vxor.u32 2147483648, %v1203_v63 }
 0x144   : > { %v1078_v17 = vadd.s32 536870912, %v1077_v49  ;;  %v933_v28 = vor.u32 %v932_v61, %v931_v51  ;;  %v1325_v39 = vsel %vm1315_vm11, nan, %v1324_v9  ;;  %v936_v37 = vor.u32 %v935_v18, %v934_v31 }
 0x145   : > { %v942_v56 = vor.u32 %v941_v13, %v940_v42  ;;  %vm946_vm14 = vcmp.lt.s32.totalorder %v6193_v16, 1  ;;  %v2157_v26 = vadd.f32 1.0, %v1325_v39  ;;  %v1205_v24 = vsel %vm1122_vm2, %v1204_v34, %v1203_v63 }
 0x146   : > { %v1079_v50 = vshrl.u32 %v1078_v17, 30  ;;  %v939_v25 = vor.u32 %v938_v23, %v937_v19  ;;  %v1208_v45 = vsel %vm6177_vm12, %v5905_v60, %v1205_v24  ;;  %v945_v41 = vor.u32 %v944_v33, %v943_v15  ;;  %v6268_v15 = vld [vmem:[%s5151_s12 + $0x18] sm:$0xff] }
 0x147   : > { %vm947_vm15 = vcmp.lt.s32.totalorder %v6193_v16, 2  ;;  %vm949_vm0 = vcmp.lt.s32.totalorder %v6193_v16, 4  ;;  %v2173_v8 = vmul.f32 0.5, %v2157_v26  ;;  %4987 = vcosq.f32 %v1208_v45 }
 0x148   : > { %v1080_v52 = vshll.u32 %v1079_v50, 30  ;;  %vm948_vm1 = vcmp.lt.s32.totalorder %v6193_v16, 3  ;;  %4989 = vsinq.f32 %v1208_v45  ;;  %v951_v57 = vsel %vm949_vm0, %v939_v25, 2102212464 }
 0x149   : > { %v954_v40 = vsel %vm946_vm14, %v933_v28, %v936_v37  ;;  %v955_v43 = vsel %vm949_vm0, %v942_v56, 920167782  ;;  %v2237_v53 = vmul.f32 %v6117_v30, %v2173_v8  ;;  %v958_v46 = vsel %vm946_vm14, %v936_v37, %v939_v25 }
 0x14a   : > { %v6237_v51 = vsub.s32 %v1077_v49, %v1080_v52  ;;  %v950_v31 = vsel %vm946_vm14, %v930_v35, %v933_v28  ;;  %v952_v19 = vsel %vm948_vm1, %v936_v37, %v951_v57  ;;  %v956_v42 = vsel %vm948_vm1, %v939_v25, %v955_v43 }
 0x14b   : > { %v959_v30 = vsel %vm949_vm0, %v945_v41, 1326507024  ;;  %2515 = vperm.xlu1 %4918, %v2237_v53   ;;  %v1209_v29 = vsel %vm6177_vm12, 0, %v6188_v38  ;;  %v957_v12 = vsel %vm947_vm15, %v954_v40, %v956_v42  ;;  %v953_v38 = vsel %vm947_vm15, %v950_v31, %v952_v19  ;;  %v6298_v40 = vld [vmem:[%s5151_s12 + $0x10] sm:$0xff] }
 0x14c   : > { %v1083_v6 = vsub.s32 0, %v6237_v51  ;;  %v960_v61 = vsel %vm948_vm1, %v942_v56, %v959_v30  ;;  %v6263_v58 = vmul.u32.u64.low %v6191_v36, %v957_v12  ;;  %v6264_v18 = vmul.u32.u64.high %v6191_v36, %v957_v12, %v6263_v58 }
 0x14d   : > { %v961_v10 = vsel %vm947_vm15, %v958_v46, %v960_v61  ;;  %v1213_v55 = vand.u32 3, %v1209_v29  ;;  %v6278_v22 = vmul.f32 0.62831855, %v6268_v15  ;;  %vm1212_vm2 = vweird.f32 %v5905_v60 }
 0x14e   : > { %v4143_v48 = vmin.u32 %v1083_v6, %v6237_v51  ;;  %v6274_v63 = vmul.u32.u64.low %v6191_v36, %v961_v10  ;;  %v6275_v49 = vmul.u32.u64.high %v6191_v36, %v961_v10, %v6274_v63  ;;  %v1103_v35 = vsub.s32 4, %v1079_v50 }
 0x14f   : > { %v969_v13 = vmul.u32 %v6191_v36, %v953_v38  ;;  %v972_v33 = vadd.s32 1, %v6264_v18  ;;  %vm2188_vm3 = vcmp.lt.f32.partialorder %v5890_v21, 5.0  ;;  %vm1019_vm4 = vcmp.lt.s32.totalorder %v6055_v11, 0 }
 0x150   : > { %v1085_v23 = vclz %v4143_v48  ;;  %v814_v9 = vand.u32 2139095040, %v6278_v22  ;;  %vm1214_vm5 = vcmp.lt.s32.totalorder %v1213_v55, 2  ;;  %vm1215_vm6 = vcmp.eq.s32.totalorder %v1213_v55, 0 }
 0x151   : > { %vm971_vm7 = vc.u32 %v6275_v49, %v6263_v58  ;;  %v811_v34 = vand.u32 2147483647, %v6278_v22  ;;  %v1073_v17 = vadd.s32 %v6171_v32, %v6183_v59  ;;  %vm1218_vm9 = vcmp.eq.s32.totalorder %v1213_v55, 2 }
 0x152   : > { %v4144_v16 = vadd.s32 4294967294, %v1085_v23  ;;  %v973_v36 = vsel %vm971_vm7, %v972_v33, %v6264_v18  ;;  %v815_v28 = vshrl.u32 %v814_v9, 23  ;;  %v1104_v56 = vsel %vm1019_vm4, %v1103_v35, %v1079_v50 }
 0x153   : > { %v974_v26 = vadd.s32 %v973_v36, %v969_v13  ;;  %v818_v57 = vand.u32 8388607, %v811_v34  ;;  %vm6302_vm10 = vcmp.le.f32.partialorder %v1017_v27, 0.7853982  ;;  %v6313_v29 = vmul.f32 0.62831855, %v6298_v40 }
 0x154   : > { %vm4145_vm8 = vcmp.lt.s32.totalorder %v4144_v16, 0  ;;  %v4988_v39 = vpop.eup %4987  ;;  %v4134_v59 = vadd.s32 4294967169, %v815_v28  ;;  %v1106_v46 = vsel %vm6302_vm10, 0, %v1104_v56  ;;  %v4192_v38 = vsel %vm2188_vm3, 1.0, %v5059_v54 }
 0x155   : > { %v1088_v37 = vsel %vm4145_vm8, 0, %v4144_v16  ;;  %v4990_v24 = vpop.eup %4989  ;;  %v1219_v25 = vxor.u32 2147483648, %v4988_v39  ;;  %v975_v32 = vadd.s32 536870912, %v974_v26  ;;  %v819_v12 = vor.u32 8388608, %v818_v57 }
 0x156   : > { %v1089_v45 = vsub.s32 32, %v1088_v37  ;;  %v1090_v41 = vshll.u32 %v6237_v51, %v1088_v37  ;;  %v1093_v8 = vsub.s32 4294967266, %v1088_v37  ;;  %v1216_v52 = vxor.u32 2147483648, %v4990_v24 }
 0x157   : > { %v1220_v43 = vsel %vm1218_vm9, %v1219_v25, %v4990_v24  ;;  %v6309_v44 = vshrl.u32 %v975_v32, 30  ;;  %v821_v31 = vadd.s32 1, %v4134_v59  ;;  %v6323_v13 = vand.u32 3, %v1106_v46 }
 0x158   : > { %v1091_v47 = vshrl.u32 %v1073_v17, %v1089_v45  ;;  %v1094_v53 = vadd.s32 127, %v1093_v8  ;;  %v1217_v51 = vsel %vm1215_vm6, %v4988_v39, %v1216_v52  ;;  %v711_v60 = vand.u32 2139095040, %v6313_v29 }
 0x159   : > { %v1221_v19 = vsel %vm1214_vm5, %v1217_v51, %v1220_v43  ;;  %v977_v6 = vshll.u32 %v6309_v44, 30  ;;  %vm822_vm11 = vcmp.gt.s32.totalorder %v821_v31, 0  ;;  %v970_v33 = vadd.s32 %v6263_v58, %v6275_v49 }
 0x15a   : > { %v1092_v42 = vor.u32 %v1091_v47, %v1090_v41  ;;  %v1095_v30 = vshll.u32 %v1094_v53, 23  ;;  %v1222_v27 = vsel %vm1212_vm2, nan, %v1221_v19  ;;  %v823_v48 = vsel %vm822_vm11, %v821_v31, 0 }
 0x15b   : > { %v2156_v61 = vadd.f32 1.0, %v1222_v27  ;;  %v6321_v55 = vsub.s32 %v974_v26, %v977_v6  ;;  %v825_v63 = vand.u32 31, %v823_v48  ;;  %v708_v17 = vand.u32 2147483647, %v6313_v29 }
 0x15c   : > { %v1096_v10 = vor.u32 4788187, %v1095_v30  ;;  %v1099_v18 = vcvt.s32.f32 %v1092_v42  ;;  %v6331_v39 = vshll.u32 %v819_v12, 8  ;;  %v824_v56 = vshrl.u32 %v823_v48, 5 }
 0x15d   : > { %v2172_v23 = vmul.f32 0.5, %v2156_v61  ;;  %v980_v16 = vsub.s32 0, %v6321_v55  ;;  %v826_v9 = vsub.s32 32, %v825_v63  ;;  %v828_v28 = vshll.u32 %v5053_v62, %v825_v63 }
 0x15e   : > { %v1097_v35 = vand.u32 2147483647, %v1096_v10  ;;  %v831_v26 = vshll.u32 %v5054_v0, %v825_v63  ;;  %v834_v24 = vshll.u32 %v5055_v2, %v825_v63  ;;  %v712_v45 = vshrl.u32 %v711_v60, 23 }
 0x15f   : > { %v2236_v36 = vmul.f32 %v4192_v38, %v2172_v23  ;;  %v4139_v37 = vmin.u32 %v980_v16, %v6321_v55  ;;  %v829_v49 = vshrl.u32 %v5054_v0, %v826_v9  ;;  %v832_v25 = vshrl.u32 %v5055_v2, %v826_v9 }
 0x160   : > { %v1100_v21 = vmul.f32 %v1099_v18, %v1097_v35  ;;  %v835_v8 = vshrl.u32 %v5056_v5, %v826_v9  ;;  %v837_v52 = vshll.u32 %v5056_v5, %v825_v63  ;;  %v838_v32 = vshrl.u32 %v5057_v7, %v826_v9 }
 0x161   : > { %2510 = vperm.xlu0 %4917, %v2236_v36   ;;  %v982_v41 = vclz %v4139_v37  ;;  %v827_v57 = vshrl.u32 %v5053_v62, %v826_v9  ;;  %v830_v43 = vor.u32 %v829_v49, %v828_v28  ;;  %v840_v47 = vshll.u32 %v5057_v7, %v825_v63 }
 0x162   : > { %v1101_v58 = vxor.u32 2147483648, %v1100_v21  ;;  %vm2187_vm12 = vcmp.lt.f32.partialorder %v6043_v20, 5.0  ;;  %v833_v46 = vor.u32 %v832_v25, %v831_v26  ;;  %v836_v31 = vor.u32 %v835_v8, %v834_v24 }
 0x163   : > { %v4140_v51 = vadd.s32 4294967294, %v982_v41  ;;  %v839_v19 = vor.u32 %v838_v32, %v837_v52  ;;  %v841_v42 = vshrl.u32 %v5058_v14, %v826_v9  ;;  %vm843_vm13 = vcmp.lt.s32.totalorder %v824_v56, 1 }
 0x164   : > { %v1102_v59 = vsel %vm1019_vm4, %v1101_v58, %v1100_v21  ;;  %vm844_vm15 = vcmp.lt.s32.totalorder %v824_v56, 2  ;;  %vm846_vm0 = vcmp.lt.s32.totalorder %v824_v56, 4  ;;  %vm845_vm1 = vcmp.lt.s32.totalorder %v824_v56, 3 }
 0x165   : > { %v1105_v53 = vsel %vm6302_vm10, %v6055_v11, %v1102_v59  ;;  %vm4141_vm14 = vcmp.lt.s32.totalorder %v4140_v51, 0  ;;  %v842_v27 = vor.u32 %v841_v42, %v840_v47  ;;  %v848_v50 = vsel %vm846_vm0, %v836_v31, 2102212464 }
 0x166   : > { %4991 = vcosq.f32 %v1105_v53  ;;  %v985_v30 = vsel %vm4141_vm14, 0, %v4140_v51  ;;  %v847_v10 = vsel %vm843_vm13, %v827_v57, %v830_v43  ;;  %v849_v18 = vsel %vm845_vm1, %v833_v46, %v848_v50 }
 0x167   : > { %4993 = vsinq.f32 %v1105_v53  ;;  %v986_v6 = vsub.s32 32, %v985_v30  ;;  %v987_v12 = vshll.u32 %v6321_v55, %v985_v30  ;;  %v990_v61 = vsub.s32 4294967266, %v985_v30 }
 0x168   : > { %v851_v48 = vsel %vm843_vm13, %v830_v43, %v833_v46  ;;  %v852_v38 = vsel %vm846_vm0, %v839_v19, 920167782  ;;  %v855_v63 = vsel %vm843_vm13, %v833_v46, %v836_v31  ;;  %v856_v16 = vsel %vm846_vm0, %v842_v27, 1326507024 }
 0x169   : > { %v988_v23 = vshrl.u32 %v970_v33, %v986_v6  ;;  %v991_v35 = vadd.s32 127, %v990_v61  ;;  %v853_v60 = vsel %vm845_vm1, %v836_v31, %v852_v38  ;;  %v1000_v9 = vsub.s32 4, %v6309_v44 }
 0x16a   : > { %v854_v55 = vsel %vm844_vm15, %v851_v48, %v853_v60  ;;  %v857_v36 = vsel %vm845_vm1, %v839_v19, %v856_v16  ;;  %v4130_v21 = vadd.s32 4294967169, %v712_v45  ;;  %v850_v26 = vsel %vm844_vm15, %v847_v10, %v849_v18 }
 0x16b   : > { %v989_v28 = vor.u32 %v988_v23, %v987_v12  ;;  %v992_v37 = vshll.u32 %v991_v35, 23  ;;  %v858_v24 = vsel %vm844_vm15, %v855_v63, %v857_v36  ;;  %vm1109_vm2 = vweird.f32 %v6055_v11 }
 0x16c   : > { %v6366_v33 = vmul.u32.u64.low %v6331_v39, %v858_v24  ;;  %v6367_v58 = vmul.u32.u64.high %v6331_v39, %v858_v24, %v6366_v33  ;;  %v6370_v49 = vmul.u32.u64.low %v6331_v39, %v854_v55  ;;  %v6371_v25 = vmul.u32.u64.high %v6331_v39, %v854_v55, %v6370_v49 }
 0x16d   : > { %vm916_vm3 = vcmp.lt.s32.totalorder %v6060_v4, 0  ;;  %v993_v45 = vor.u32 4788187, %v992_v37  ;;  %v996_v41 = vcvt.s32.f32 %v989_v28  ;;  %v718_v8 = vadd.s32 1, %v4130_v21  ;;  %v6425_v28 = vld [vmem:[%s5151_s12 + $0x8] sm:$0xff] }
 0x16e   : > { %vm1111_vm4 = vcmp.lt.s32.totalorder %v6323_v13, 2  ;;  %v6379_v56 = vsel %vm2187_vm12, 1.0, %v5059_v54  ;;  %vm6383_vm5 = vcmp.le.f32.partialorder %v914_v1, 0.7853982  ;;  %v1001_v32 = vsel %vm916_vm3, %v1000_v9, %v6309_v44 }
 0x16f   : > { %v994_v59 = vand.u32 2147483647, %v993_v45  ;;  %vm2186_vm6 = vcmp.lt.f32.partialorder %v6049_v3, 5.0  ;;  %v866_v57 = vmul.u32 %v6331_v39, %v850_v26  ;;  %vm719_vm7 = vcmp.gt.s32.totalorder %v718_v8, 0 }
 0x170   : > { %vm868_vm8 = vc.u32 %v6367_v58, %v6370_v49  ;;  %v869_v20 = vadd.s32 1, %v6371_v25  ;;  %v715_v1 = vand.u32 8388607, %v708_v17  ;;  %v720_v43 = vsel %vm719_vm7, %v718_v8, 0  ;;  %v4945_v8 = vld [vmem:[%s7313_s1 + $0x50] sm:$0xff]  }
 0x171   : > { %vm1115_vm9 = vcmp.eq.s32.totalorder %v6323_v13, 2  ;;  %v997_v53 = vmul.f32 %v996_v41, %v994_v59  ;;  %v1003_v44 = vsel %vm6383_vm5, 0, %v1001_v32  ;;  %v722_v3 = vand.u32 31, %v720_v43  ;;  %4396 = vmatprep.subr.bf16.mxu1 %v4945_v8 }
 0x172   : > { %vm1112_vm10 = vcmp.eq.s32.totalorder %v6323_v13, 0  ;;  %v6402_v46 = vsel %vm2186_vm6, 1.0, %v5059_v54  ;;  %v870_v31 = vsel %vm868_vm8, %v869_v20, %v6371_v25  ;;  %v6405_v6 = vand.u32 3, %v1003_v44  ;;  %v4947_v20 = vld [vmem:[%s7313_s1 + $0x48] sm:$0xff]  }
 0x173   : > { %v4992_v47 = vpop.eup %4991  ;;  %v998_v42 = vxor.u32 2147483648, %v997_v53  ;;  %v871_v30 = vadd.s32 %v870_v31, %v866_v57  ;;  %v723_v27 = vsub.s32 32, %v722_v3  ;;  %v716_v12 = vor.u32 8388608, %v715_v1  ;;  %v4946_v57 = vld [vmem:[%s7313_s1 + $0x10] sm:$0xff]  }
 0x174   : > { %v4994_v51 = vpop.eup %4993  ;;  %v1116_v39 = vxor.u32 2147483648, %v4992_v47  ;;  %v725_v61 = vshll.u32 %v5053_v62, %v722_v3  ;;  %v728_v38 = vshll.u32 %v5054_v0, %v722_v3  ;;  %v721_v55 = vshrl.u32 %v720_v43, 5  ;;  %4397 = vmatpush3.bf16.msra.mxu1 %v4946_v57 }
 0x175   : > { %v1113_v19 = vxor.u32 2147483648, %v4994_v51  ;;  %v999_v18 = vsel %vm916_vm3, %v998_v42, %v997_v53  ;;  %v872_v48 = vadd.s32 536870912, %v871_v30  ;;  %v726_v35 = vshrl.u32 %v5054_v0, %v723_v27  ;;  %4398 = vmatprep.subr.bf16.mxu1 %v4947_v20 }
 0x176   : > { %v1117_v50 = vsel %vm1115_vm9, %v1116_v39, %v4994_v51  ;;  %v1002_v23 = vsel %vm6383_vm5, %v6060_v4, %v999_v18  ;;  %v729_v60 = vshrl.u32 %v5055_v2, %v723_v27  ;;  %v731_v13 = vshll.u32 %v5055_v2, %v722_v3  ;;  %v4948_v51 = vld [vmem:[%s7313_s1 + $0x8] sm:$0xff]  }
 0x177   : > { %v1114_v10 = vsel %vm1112_vm10, %v4992_v47, %v1113_v19  ;;  %4995 = vcosq.f32 %v1002_v23  ;;  %v6420_v9 = vshrl.u32 %v872_v48, 30  ;;  %v732_v21 = vshrl.u32 %v5056_v5, %v723_v27  ;;  %v4949_v19 = vld [vmem:[%s7313_s1 + $0x40] sm:$0xff]  }
 0x178   : > { %v1118_v63 = vsel %vm1111_vm4, %v1114_v10, %v1117_v50  ;;  %4997 = vsinq.f32 %v1002_v23  ;;  %v727_v26 = vor.u32 %v726_v35, %v725_v61  ;;  %v730_v24 = vor.u32 %v729_v60, %v728_v38  ;;  %4399 = vmatpush3.bf16.msra.mxu1 %v4948_v51 }
 0x179   : > { %v1119_v16 = vsel %vm1109_vm2, nan, %v1118_v63  ;;  %v874_v37 = vshll.u32 %v6420_v9, 30  ;;  %v734_v33 = vshll.u32 %v5056_v5, %v722_v3  ;;  %v735_v25 = vshrl.u32 %v5057_v7, %v723_v27  ;;  %v4950_v63 = vld [vmem:[%s7313_s1] sm:$0xff]   ;;  %4400 = vmatprep.subr.bf16.mxu1 %v4949_v19 }
 0x17a   : > { %v2155_v36 = vadd.f32 1.0, %v1119_v16  ;;  %v737_v45 = vshll.u32 %v5057_v7, %v722_v3  ;;  %v738_v41 = vshrl.u32 %v5058_v14, %v723_v27  ;;  %v724_v32 = vshrl.u32 %v5053_v62, %v723_v27 }
 0x17b   : > { %v6435_v52 = vsub.s32 %v871_v30, %v874_v37  ;;  %vm740_vm11 = vcmp.lt.s32.totalorder %v721_v55, 1  ;;  %v6439_v59 = vmul.f32 0.62831855, %v6425_v28  ;;  %v733_v43 = vor.u32 %v732_v21, %v731_v13 }
 0x17c   : > { %v2171_v11 = vmul.f32 0.5, %v2155_v36  ;;  %v736_v47 = vor.u32 %v735_v25, %v734_v33  ;;  %v739_v53 = vor.u32 %v738_v41, %v737_v45  ;;  %vm742_vm12 = vcmp.lt.s32.totalorder %v721_v55, 3  ;;  %4401 = vmatpush3.bf16.msra.mxu1 %v4950_v63 }
 0x17d   : > { %v877_v44 = vsub.s32 0, %v6435_v52  ;;  %vm743_vm13 = vcmp.lt.s32.totalorder %v721_v55, 4  ;;  %v6449_v3 = vshll.u32 %v716_v12, 8  ;;  %vm741_vm14 = vcmp.lt.s32.totalorder %v721_v55, 2 }
 0x17e   : > { %v2235_v1 = vmul.f32 %v6379_v56, %v2171_v11  ;;  %v745_v39 = vsel %vm743_vm13, %v733_v43, 2102212464  ;;  %v748_v56 = vsel %vm740_vm11, %v727_v26, %v730_v24  ;;  %v749_v31 = vsel %vm743_vm13, %v736_v47, 920167782 }
 0x17f   : > { %vm1006_vm15 = vweird.f32 %v6060_v4  ;;  %vm813_vm0 = vcmp.lt.s32.totalorder %v6278_v22, 0  ;;  %v4135_v42 = vmin.u32 %v877_v44, %v6435_v52  ;;  %v744_v30 = vsel %vm740_vm11, %v724_v32, %v727_v26 }
 0x180   : > { %2505 = vperm.xlu1 %4918, %v2235_v1   ;;  %v608_v27 = vand.u32 2139095040, %v6439_v59  ;;  %v746_v50 = vsel %vm742_vm12, %v730_v24, %v745_v39  ;;  %v750_v12 = vsel %vm742_vm12, %v733_v43, %v749_v31  ;;  %v752_v61 = vsel %vm740_vm11, %v730_v24, %v733_v43  ;;  %v6508_v39 = vld [vmem:[%s5151_s12] sm:$0xff] }
 0x181   : > { %v753_v10 = vsel %vm743_vm13, %v739_v53, 1326507024  ;;  %vm1008_vm1 = vcmp.lt.s32.totalorder %v6405_v6, 2  ;;  %v879_v18 = vclz %v4135_v42  ;;  %v751_v48 = vsel %vm741_vm14, %v748_v56, %v750_v12 }
 0x182   : > { %v754_v38 = vsel %vm742_vm12, %v736_v47, %v753_v10  ;;  %v747_v23 = vsel %vm741_vm14, %v744_v30, %v746_v50  ;;  %v6478_v60 = vmul.u32.u64.low %v6449_v3, %v751_v48  ;;  %v6479_v16 = vmul.u32.u64.high %v6449_v3, %v751_v48, %v6478_v60 }
 0x183   : > { %v755_v35 = vsel %vm741_vm14, %v752_v61, %v754_v38  ;;  %vm1009_vm2 = vcmp.eq.s32.totalorder %v6405_v6, 0  ;;  %v4136_v36 = vadd.s32 4294967294, %v879_v18  ;;  %vm1012_vm3 = vcmp.eq.s32.totalorder %v6405_v6, 2 }
 0x184   : > { %v6483_v13 = vmul.u32.u64.low %v6449_v3, %v755_v35  ;;  %v6484_v21 = vmul.u32.u64.high %v6449_v3, %v755_v35, %v6483_v13  ;;  %v4996_v37 = vpop.eup %4995  ;;  %v897_v26 = vsub.s32 4, %v6420_v9  ;;  %v605_v55 = vand.u32 2147483647, %v6439_v59 }
 0x185   : > { %v609_v24 = vshrl.u32 %v608_v27, 23  ;;  %v4998_v33 = vpop.eup %4997  ;;  %v1013_v11 = vxor.u32 2147483648, %v4996_v37  ;;  %v867_v25 = vadd.s32 %v6370_v49, %v6367_v58  ;;  %vm4137_vm4 = vcmp.lt.s32.totalorder %v4136_v36, 0 }
 0x186   : > { %v763_v45 = vmul.u32 %v6449_v3, %v747_v23  ;;  %v1010_v41 = vxor.u32 2147483648, %v4998_v33  ;;  %v882_v8 = vsel %vm4137_vm4, 0, %v4136_v36  ;;  %v766_v32 = vadd.s32 1, %v6479_v16 }
 0x187   : > { %v4126_v57 = vadd.s32 4294967169, %v609_v24  ;;  %v1014_v20 = vsel %vm1012_vm3, %v1013_v11, %v4998_v33  ;;  %v883_v1 = vsub.s32 32, %v882_v8  ;;  %v884_v43 = vshll.u32 %v6435_v52, %v882_v8 }
 0x188   : > { %v887_v47 = vsub.s32 4294967266, %v882_v8  ;;  %v1011_v58 = vsel %vm1009_vm2, %v4996_v37, %v1010_v41  ;;  %v898_v49 = vsel %vm813_vm0, %v897_v26, %v6420_v9  ;;  %vm765_vm5 = vc.u32 %v6484_v21, %v6478_v60 }
 0x189   : > { %v612_v53 = vand.u32 8388607, %v605_v55  ;;  %v1015_v44 = vsel %vm1008_vm1, %v1011_v58, %v1014_v20  ;;  %v885_v3 = vshrl.u32 %v867_v25, %v883_v1  ;;  %v767_v52 = vsel %vm765_vm5, %v766_v32, %v6479_v16 }
 0x18a   : > { %v888_v51 = vadd.s32 127, %v887_v47  ;;  %v1016_v56 = vsel %vm1006_vm15, nan, %v1015_v44  ;;  %vm6514_vm6 = vcmp.le.f32.partialorder %v811_v34, 0.7853982  ;;  %v768_v31 = vadd.s32 %v767_v52, %v763_v45 }
 0x18b   : > { %v615_v19 = vadd.s32 1, %v4126_v57  ;;  %v2154_v42 = vadd.f32 1.0, %v1016_v56  ;;  %v886_v6 = vor.u32 %v885_v3, %v884_v43  ;;  %v900_v27 = vsel %vm6514_vm6, 0, %v898_v49 }
 0x18c   : > { %v889_v30 = vshll.u32 %v888_v51, 23  ;;  %v769_v50 = vadd.s32 536870912, %v768_v31  ;;  %v613_v12 = vor.u32 8388608, %v612_v53  ;;  %v6521_v4 = vmul.f32 0.62831855, %v6508_v39 }
 0x18d   : > { %vm616_vm7 = vcmp.gt.s32.totalorder %v615_v19, 0  ;;  %v2170_v61 = vmul.f32 0.5, %v2154_v42  ;;  %v893_v34 = vcvt.s32.f32 %v886_v6  ;;  %v6526_v35 = vand.u32 3, %v900_v27 }
 0x18e   : > { %v890_v10 = vor.u32 4788187, %v889_v30  ;;  %v617_v18 = vsel %vm616_vm7, %v615_v19, 0  ;;  %v6523_v48 = vshrl.u32 %v769_v50, 30  ;;  %v6529_v16 = vadd.s32 %v6478_v60, %v6484_v21 }
 0x18f   : > { %v619_v38 = vand.u32 31, %v617_v18  ;;  %v2234_v63 = vmul.f32 %v6402_v46, %v2170_v61  ;;  %v6533_v24 = vshll.u32 %v613_v12, 8  ;;  %v505_v33 = vand.u32 2139095040, %v6521_v4 }
 0x190   : > { %v891_v23 = vand.u32 2147483647, %v890_v10  ;;  %v771_v36 = vshll.u32 %v6523_v48, 30  ;;  %v618_v57 = vshrl.u32 %v617_v18, 5  ;;  %v502_v1 = vand.u32 2147483647, %v6521_v4 }
 0x191   : > { %v620_v13 = vsub.s32 32, %v619_v38  ;;  %2500 = vperm.xlu0 %4917, %v2234_v63   ;;  %v622_v26 = vshll.u32 %v5053_v62, %v619_v38  ;;  %v625_v25 = vshll.u32 %v5054_v0, %v619_v38  ;;  %v628_v60 = vshll.u32 %v5055_v2, %v619_v38 }
 0x192   : > { %v894_v37 = vmul.f32 %v893_v34, %v891_v23  ;;  %v6536_v11 = vsub.s32 %v768_v31, %v771_v36  ;;  %v631_v8 = vshll.u32 %v5056_v5, %v619_v38  ;;  %v634_v58 = vshll.u32 %v5057_v7, %v619_v38 }
 0x193   : > { %v623_v46 = vshrl.u32 %v5054_v0, %v620_v13  ;;  %v626_v45 = vshrl.u32 %v5055_v2, %v620_v13  ;;  %v629_v41 = vshrl.u32 %v5056_v5, %v620_v13  ;;  %v632_v20 = vshrl.u32 %v5057_v7, %v620_v13 }
 0x194   : > { %v895_v21 = vxor.u32 2147483648, %v894_v37  ;;  %v774_v32 = vsub.s32 0, %v6536_v11  ;;  %v621_v47 = vshrl.u32 %v5053_v62, %v620_v13  ;;  %v506_v49 = vshrl.u32 %v505_v33, 23 }
 0x195   : > { %v624_v3 = vor.u32 %v623_v46, %v622_v26  ;;  %v627_v51 = vor.u32 %v626_v45, %v625_v25  ;;  %v630_v52 = vor.u32 %v629_v41, %v628_v60  ;;  %v633_v56 = vor.u32 %v632_v20, %v631_v8 }
 0x196   : > { %v896_v43 = vsel %vm813_vm0, %v895_v21, %v894_v37  ;;  %v4131_v44 = vmin.u32 %v774_v32, %v6536_v11  ;;  %v635_v31 = vshrl.u32 %v5058_v14, %v620_v13  ;;  %vm637_vm8 = vcmp.lt.s32.totalorder %v618_v57, 1 }
 0x197   : > { %v899_v53 = vsel %vm6514_vm6, %v6278_v22, %v896_v43  ;;  %vm638_vm9 = vcmp.lt.s32.totalorder %v618_v57, 2  ;;  %vm639_vm10 = vcmp.lt.s32.totalorder %v618_v57, 3  ;;  %vm640_vm11 = vcmp.lt.s32.totalorder %v618_v57, 4 }
 0x198   : > { %4999 = vcosq.f32 %v899_v53  ;;  %v776_v19 = vclz %v4131_v44  ;;  %v636_v42 = vor.u32 %v635_v31, %v634_v58  ;;  %v641_v6 = vsel %vm637_vm8, %v621_v47, %v624_v3 }
 0x199   : > { %5001 = vsinq.f32 %v899_v53  ;;  %v642_v9 = vsel %vm640_vm11, %v630_v52, 2102212464  ;;  %v645_v27 = vsel %vm637_vm8, %v624_v3, %v627_v51  ;;  %v646_v50 = vsel %vm640_vm11, %v633_v56, 920167782 }
 0x19a   : > { %v4132_v30 = vadd.s32 4294967294, %v776_v19  ;;  %v643_v12 = vsel %vm639_vm10, %v627_v51, %v642_v9  ;;  %v647_v61 = vsel %vm639_vm10, %v630_v52, %v646_v50  ;;  %v649_v10 = vsel %vm637_vm8, %v627_v51, %v630_v52 }
 0x19b   : > { %v650_v34 = vsel %vm640_vm11, %v636_v42, 1326507024  ;;  %v794_v18 = vsub.s32 4, %v6523_v48  ;;  %v648_v38 = vsel %vm638_vm9, %v645_v27, %v647_v61  ;;  %v644_v25 = vsel %vm638_vm9, %v641_v6, %v643_v12 }
 0x19c   : > { %vm4133_vm12 = vcmp.lt.s32.totalorder %v4132_v30, 0  ;;  %v651_v63 = vsel %vm639_vm10, %v633_v56, %v650_v34  ;;  %v6560_v13 = vmul.u32.u64.low %v6533_v24, %v648_v38  ;;  %v6561_v37 = vmul.u32.u64.high %v6533_v24, %v648_v38, %v6560_v13 }
 0x19d   : > { %v779_v23 = vsel %vm4133_vm12, 0, %v4132_v30  ;;  %v652_v36 = vsel %vm638_vm9, %v649_v10, %v651_v63  ;;  %vm710_vm13 = vcmp.lt.s32.totalorder %v6313_v29, 0  ;;  %v4122_v45 = vadd.s32 4294967169, %v506_v49 }
 0x19e   : > { %v780_v26 = vsub.s32 32, %v779_v23  ;;  %v781_v33 = vshll.u32 %v6536_v11, %v779_v23  ;;  %v784_v46 = vsub.s32 4294967266, %v779_v23  ;;  %vm2185_vm14 = vcmp.lt.f32.partialorder %v6268_v15, 5.0 }
 0x19f   : > { %v6568_v60 = vmul.u32.u64.low %v6533_v24, %v652_v36  ;;  %v6569_v21 = vmul.u32.u64.high %v6533_v24, %v652_v36, %v6568_v60  ;;  %v795_v32 = vsel %vm710_vm13, %v794_v18, %v6523_v48  ;;  %v660_v11 = vmul.u32 %v6533_v24, %v644_v25 }
 0x1a0   : > { %v782_v41 = vshrl.u32 %v6529_v16, %v780_v26  ;;  %v785_v8 = vadd.s32 127, %v784_v46  ;;  %v663_v57 = vadd.s32 1, %v6561_v37  ;;  %v509_v20 = vand.u32 8388607, %v502_v1 }
 0x1a1   : > { %v512_v43 = vadd.s32 1, %v4122_v45  ;;  %vm906_vm15 = vcmp.eq.s32.totalorder %v6526_v35, 0  ;;  %vm6583_vm0 = vcmp.le.f32.partialorder %v708_v17, 0.7853982  ;;  %vm909_vm1 = vcmp.eq.s32.totalorder %v6526_v35, 2 }
 0x1a2   : > { %v783_v16 = vor.u32 %v782_v41, %v781_v33  ;;  %v786_v58 = vshll.u32 %v785_v8, 23  ;;  %v797_v48 = vsel %vm6583_vm0, 0, %v795_v32  ;;  %vm662_vm2 = vc.u32 %v6569_v21, %v6560_v13 }
 0x1a3   : > { %vm513_vm3 = vcmp.gt.s32.totalorder %v512_v43, 0  ;;  %v664_v44 = vsel %vm662_vm2, %v663_v57, %v6561_v37  ;;  %v510_v56 = vor.u32 8388608, %v509_v20  ;;  %vm905_vm4 = vcmp.lt.s32.totalorder %v6526_v35, 2 }
 0x1a4   : > { %v787_v49 = vor.u32 4788187, %v786_v58  ;;  %v790_v53 = vcvt.s32.f32 %v783_v16  ;;  %v514_v17 = vsel %vm513_vm3, %v512_v43, 0  ;;  %v665_v52 = vadd.s32 %v664_v44, %v660_v11  ;;  %v2595_v16 = vpop.permute.xlu0 %2594 }
 0x1a5   : > { %v5000_v24 = vpop.eup %4999  ;;  %v516_v31 = vand.u32 31, %v514_v17  ;;  %v4189_v42 = vsel %vm2185_vm14, 1.0, %v5059_v54  ;;  %vm903_vm5 = vweird.f32 %v6278_v22  ;;  %v6602_v61 = vand.u32 3, %v797_v48 }
 0x1a6   : > { %v5002_v3 = vpop.eup %5001  ;;  %v910_v51 = vxor.u32 2147483648, %v5000_v24  ;;  %v788_v6 = vand.u32 2147483647, %v787_v49  ;;  %v666_v9 = vadd.s32 536870912, %v665_v52  ;;  %v2574_v10 = vlaneseq  ;;  %v6634_v49 = vpop.permute.xlu1 %2600 }
 0x1a7   : > { %v907_v19 = vxor.u32 2147483648, %v5002_v3  ;;  %v517_v27 = vsub.s32 32, %v516_v31  ;;  %v515_v15 = vshrl.u32 %v514_v17, 5  ;;  %v6606_v38 = vshll.u32 %v510_v56, 8 }
 0x1a8   : > { %v911_v30 = vsel %vm909_vm1, %v910_v51, %v5002_v3  ;;  %v791_v12 = vmul.f32 %v790_v53, %v788_v6  ;;  %v6604_v18 = vshrl.u32 %v666_v9, 30  ;;  %v519_v23 = vshll.u32 %v5053_v62, %v516_v31 }
 0x1a9   : > { %v908_v50 = vsel %vm906_vm15, %v5000_v24, %v907_v19  ;;  %v520_v36 = vshrl.u32 %v5054_v0, %v517_v27  ;;  %v522_v26 = vshll.u32 %v5054_v0, %v516_v31  ;;  %v523_v33 = vshrl.u32 %v5055_v2, %v517_v27 }
 0x1aa   : > { %v912_v34 = vsel %vm905_vm4, %v908_v50, %v911_v30  ;;  %v792_v22 = vxor.u32 2147483648, %v791_v12  ;;  %v668_v35 = vshll.u32 %v6604_v18, 30  ;;  %v525_v25 = vshll.u32 %v5055_v2, %v516_v31  ;;  %v2598_v30 = vpop.permute.xlu0 %2597 }
 0x1ab   : > { %v913_v63 = vsel %vm903_vm5, nan, %v912_v34  ;;  %v526_v60 = vshrl.u32 %v5056_v5, %v517_v27  ;;  %v528_v45 = vshll.u32 %v5056_v5, %v516_v31  ;;  %v518_v0 = vshrl.u32 %v5053_v62, %v517_v27 }
 0x1ac   : > { %v2153_v37 = vadd.f32 1.0, %v913_v63  ;;  %v793_v46 = vsel %vm710_vm13, %v792_v22, %v791_v12  ;;  %v6621_v32 = vsub.s32 %v665_v52, %v668_v35  ;;  %v521_v11 = vor.u32 %v520_v36, %v519_v23  ;;  %v2604_v22 = vpop.permute.xlu1 %2603 }
 0x1ad   : > { %v796_v8 = vsel %vm6583_vm0, %v6313_v29, %v793_v46  ;;  %v529_v57 = vshrl.u32 %v5057_v7, %v517_v27  ;;  %v531_v20 = vshll.u32 %v5057_v7, %v516_v31  ;;  %v524_v5 = vor.u32 %v523_v33, %v522_v26 }
 0x1ae   : > { %v2169_v41 = vmul.f32 0.5, %v2153_v37  ;;  %5003 = vcosq.f32 %v796_v8  ;;  %v671_v43 = vsub.s32 0, %v6621_v32  ;;  %v527_v58 = vor.u32 %v526_v60, %v525_v25 }
 0x1af   : > { %5005 = vsinq.f32 %v796_v8  ;;  %v530_v48 = vor.u32 %v529_v57, %v528_v45  ;;  %v532_v47 = vshrl.u32 %v5058_v14, %v517_v27  ;;  %vm534_vm6 = vcmp.lt.s32.totalorder %v515_v15, 1 }
 0x1b0   : > { %v2233_v2 = vmul.f32 %v4189_v42, %v2169_v41  ;;  %v661_v62 = vadd.s32 %v6560_v13, %v6569_v21  ;;  %v4127_v24 = vmin.u32 %v671_v43, %v6621_v32  ;;  %vm535_vm7 = vcmp.lt.s32.totalorder %v515_v15, 2 }
 0x1b1   : > { %v6632_v7 = vand.u32 127, %v2574_v10  ;;  %v533_v53 = vor.u32 %v532_v47, %v531_v20  ;;  %vm536_vm8 = vcmp.lt.s32.totalorder %v515_v15, 3  ;;  %vm537_vm9 = vcmp.lt.s32.totalorder %v515_v15, 4  ;;  %v2607_v47 = vpop.permute.xlu0 %2606 }
 0x1b2   : > { %2495 = vperm.xlu1 %4918, %v2233_v2   ;;  %v538_v44 = vsel %vm534_vm6, %v518_v0, %v521_v11  ;;  %v673_v17 = vclz %v4127_v24  ;;  %v539_v14 = vsel %vm537_vm9, %v527_v58, 2102212464  ;;  %v542_v3 = vsel %vm534_vm6, %v521_v11, %v524_v5 }
 0x1b3   : > { %v543_v51 = vsel %vm537_vm9, %v530_v48, 920167782  ;;  %v540_v52 = vsel %vm536_vm8, %v524_v5, %v539_v14  ;;  %v546_v21 = vsel %vm534_vm6, %v524_v5, %v527_v58  ;;  %v547_v56 = vsel %vm537_vm9, %v533_v53, 1326507024 }
 0x1b4   : > { %v544_v13 = vsel %vm536_vm8, %v527_v58, %v543_v51  ;;  %v4128_v31 = vadd.s32 4294967294, %v673_v17  ;;  %v548_v42 = vsel %vm536_vm8, %v530_v48, %v547_v56  ;;  %v6641_v6 = vadd.s32 128, %v6632_v7  ;;  %v2610_v48 = vpop.permute.xlu1 %2609 }
 0x1b5   : > { %v545_v19 = vsel %vm535_vm7, %v542_v3, %v544_v13  ;;  %v541_v9 = vsel %vm535_vm7, %v538_v44, %v540_v52  ;;  %v549_v27 = vsel %vm535_vm7, %v546_v21, %v548_v42  ;;  %vm806_vm12 = vcmp.eq.s32.totalorder %v6602_v61, 2 }
 0x1b6   : > { %v6646_v50 = vmul.u32.u64.low %v6606_v38, %v545_v19  ;;  %v6647_v12 = vmul.u32.u64.high %v6606_v38, %v545_v19, %v6646_v50  ;;  %vm4129_vm10 = vcmp.lt.s32.totalorder %v4128_v31, 0  ;;  %vm2646_vm11 = vcmp.eq.s32.totalorder %v6634_v49, %v6641_v6  ;;  %v2613_v19 = vpop.permute.xlu0 %2612 }
 0x1b7   : > { %v6651_v34 = vmul.u32.u64.low %v6606_v38, %v549_v27  ;;  %v6652_v63 = vmul.u32.u64.high %v6606_v38, %v549_v27, %v6651_v34  ;;  %v676_v23 = vsel %vm4129_vm10, 0, %v4128_v31  ;;  %vm2648_vm13 = vcmp.eq.s32.totalorder %v2604_v22, %v6641_v6 }
 0x1b8   : > { %vm2643_vm14 = vcmp.eq.s32.totalorder %v2598_v30, %v6632_v7  ;;  %v677_v15 = vsub.s32 32, %v676_v23  ;;  %v678_v36 = vshll.u32 %v6621_v32, %v676_v23  ;;  %v681_v37 = vsub.s32 4294967266, %v676_v23  ;;  %vm6663_vm0 = vmpackc.low %vm2648_vm13, %vm2646_vm11  ;;  %v2616_v31 = vpop.permute.xlu1 %2615 }
 0x1b9   : > { %v557_v35 = vmul.u32 %v6606_v38, %v541_v9  ;;  %v560_v26 = vadd.s32 1, %v6647_v12  ;;  %vm2641_vm15 = vcmp.eq.s32.totalorder %v2595_v16, %v6632_v7  ;;  %vm2644_vm1 = vcmp.eq.s32.totalorder %v2598_v30, %v6641_v6 }
 0x1ba   : > { %v679_v25 = vshrl.u32 %v661_v62, %v677_v15  ;;  %v682_v60 = vadd.s32 127, %v681_v37  ;;  %vm559_vm2 = vc.u32 %v6652_v63, %v6646_v50  ;;  %vm6670_vm3 = vmpackc.low %vm2643_vm14, %vm2641_vm15  ;;  %vm2642_vm4 = vcmp.eq.s32.totalorder %v2595_v16, %v6641_v6  ;;  %v2619_v15 = vpop.permute.xlu0 %2618 }
 0x1bb   : > { %v5004_v46 = vpop.eup %5003  ;;  %vm802_vm5 = vcmp.lt.s32.totalorder %v6602_v61, 2  ;;  %vm803_vm6 = vcmp.eq.s32.totalorder %v6602_v61, 0  ;;  %v561_v8 = vsel %vm559_vm2, %v560_v26, %v6647_v12  ;;  %vm4267_vm7 = vmpackc.low %vm2644_vm1, %vm2642_vm4  ;;  %v7324_v20 = vmov 1.0|1.0  }
 0x1bc   : > { %v5006_v38 = vpop.eup %5005  ;;  %v807_v41 = vxor.u32 2147483648, %v5004_v46  ;;  %v680_v0 = vor.u32 %v679_v25, %v678_v36  ;;  %v683_v11 = vshll.u32 %v682_v60, 23  ;;  %v562_v57 = vadd.s32 %v561_v8, %v557_v35  ;;  %4268 = vmatprep.mubr.msk.bf16.mxu1 %vm4267_vm7, %v7324_v20  ;;  %v2622_v23 = vpop.permute.xlu1 %2621 }
 0x1bd   : > { %v804_v32 = vxor.u32 2147483648, %v5006_v38  ;;  %vm800_vm8 = vweird.f32 %v6313_v29  ;;  %vm2184_vm9 = vcmp.lt.f32.partialorder %v6298_v40, 5.0  ;;  %4270 = vmatmul.mubr.msk.bf16.vlgmr.msra.gmra.mxu1 %vm6670_vm3, %v7324_v20  ;;  %vm2645_vm10 = vcmp.eq.s32.totalorder %v6634_v49, %v6632_v7 }
 0x1be   : > { %v808_v2 = vsel %vm806_vm12, %v807_v41, %v5006_v38  ;;  %v684_v5 = vor.u32 4788187, %v683_v11  ;;  %v687_v16 = vcvt.s32.f32 %v680_v0  ;;  %v563_v58 = vadd.s32 536870912, %v562_v57  ;;  %4272 = vmatprep.mubr.msk.bf16.mxu1 %vm6663_vm0, %v7324_v20 }
 0x1bf   : > { %v805_v43 = vsel %vm803_vm6, %v5004_v46, %v804_v32  ;;  %v4188_v44 = vsel %vm2184_vm9, 1.0, %v5059_v54  ;;  %vm2647_vm11 = vcmp.eq.s32.totalorder %v2604_v22, %v6632_v7  ;;  %vm2652_vm12 = vcmp.eq.s32.totalorder %v2610_v48, %v6641_v6  ;;  %v2625_v32 = vpop.permute.xlu0 %2624 }
 0x1c0   : > { %v809_v29 = vsel %vm802_vm5, %v805_v43, %v808_v2  ;;  %v685_v24 = vand.u32 2147483647, %v684_v5  ;;  %v6691_v40 = vshrl.u32 %v563_v58, 30  ;;  %vm2650_vm13 = vcmp.eq.s32.totalorder %v2607_v47, %v6641_v6  ;;  %vm4273_vm0 = vmpackc.low %vm2647_vm11, %vm2645_vm10  ;;  %v2628_v8 = vpop.permute.xlu1 %2627 }
 0x1c1   : > { %v810_v62 = vsel %vm800_vm8, nan, %v809_v29  ;;  %vm607_vm14 = vcmp.lt.s32.totalorder %v6439_v59, 0  ;;  %vm6703_vm15 = vcmp.le.f32.partialorder %v605_v55, 0.7853982  ;;  %vm4275_vm1 = vmpackc.low %vm2652_vm12, %vm2650_vm13  ;;  %v691_v56 = vsub.s32 4, %v6604_v18 }
 0x1c2   : > { %v2152_v53 = vadd.f32 1.0, %v810_v62  ;;  %v688_v17 = vmul.f32 %v687_v16, %v685_v24  ;;  %v565_v14 = vshll.u32 %v6691_v40, 30  ;;  %vm2651_vm2 = vcmp.eq.s32.totalorder %v2610_v48, %v6632_v7 }
 0x1c3   : > { %vm2649_vm3 = vcmp.eq.s32.totalorder %v2607_v47, %v6632_v7  ;;  %vm2656_vm4 = vcmp.eq.s32.totalorder %v2616_v31, %v6641_v6  ;;  %vm2654_vm5 = vcmp.eq.s32.totalorder %v2613_v19, %v6641_v6  ;;  %v692_v9 = vsel %vm607_vm14, %v691_v56, %v6604_v18  ;;  %v2631_v24 = vpop.permute.xlu0 %2630 }
 0x1c4   : > { %v2168_v61 = vmul.f32 0.5, %v2152_v53  ;;  %v689_v51 = vxor.u32 2147483648, %v688_v17  ;;  %v566_v49 = vsub.s32 %v562_v57, %v565_v14  ;;  %vm4277_vm6 = vmpackc.low %vm2651_vm2, %vm2649_vm3  ;;  %v694_v12 = vsel %vm6703_vm15, 0, %v692_v9  ;;  %v2634_v62 = vpop.permute.xlu1 %2633 }
 0x1c5   : > { %4274 = vmatmul.mubr.msk.bf16.gmra.mxu1 %vm4273_vm0, %v7324_v20  ;;  %vm4279_vm7 = vmpackc.low %vm2656_vm4, %vm2654_vm5  ;;  %v558_v34 = vadd.s32 %v6646_v50, %v6652_v63  ;;  %v698_v35 = vand.u32 3, %v694_v12  ;;  %vm2655_vm9 = vcmp.eq.s32.totalorder %v2616_v31, %v6632_v7  ;;  %vm2653_vm10 = vcmp.eq.s32.totalorder %v2613_v19, %v6632_v7 }
 0x1c6   : > { %v2232_v52 = vmul.f32 %v4188_v44, %v2168_v61  ;;  %v690_v13 = vsel %vm607_vm14, %v689_v51, %v688_v17  ;;  %v568_v21 = vsub.s32 0, %v566_v49  ;;  %4276 = vmatprep.mubr.msk.bf16.mxu1 %vm4275_vm1, %v7324_v20  ;;  %vm2660_vm11 = vcmp.eq.s32.totalorder %v2622_v23, %v6641_v6  ;;  %vm4281_vm13 = vmpackc.low %vm2655_vm9, %vm2653_vm10 }
 0x1c7   : > { %v693_v55 = vsel %vm6703_vm15, %v6439_v59, %v690_v13  ;;  %vm2658_vm12 = vcmp.eq.s32.totalorder %v2619_v15, %v6641_v6  ;;  %vm703_vm14 = vcmp.eq.s32.totalorder %v698_v35, 2  ;;  %vm700_vm0 = vcmp.eq.s32.totalorder %v698_v35, 0  ;;  %v2637_v61 = vpop.permute.xlu0 %2636 }
 0x1c8   : > { %2490 = vperm.xlu0 %4917, %v2232_v52   ;;  %5007 = vcosq.f32 %v693_v55  ;;  %v4123_v42 = vmin.u32 %v568_v21, %v566_v49  ;;  %vm4283_vm15 = vmpackc.low %vm2660_vm11, %vm2658_vm12  ;;  %vm699_vm1 = vcmp.lt.s32.totalorder %v698_v35, 2  ;;  %vm697_vm2 = vweird.f32 %v6439_v59  ;;  %v2640_v14 = vpop.permute.xlu1 %2639 }
 0x1c9   : > { %5009 = vsinq.f32 %v693_v55  ;;  %vm2183_vm3 = vcmp.lt.f32.partialorder %v6425_v28, 5.0  ;;  %vm2659_vm4 = vcmp.eq.s32.totalorder %v2622_v23, %v6632_v7  ;;  %vm2657_vm5 = vcmp.eq.s32.totalorder %v2619_v15, %v6632_v7 }
 0x1ca   : > { %v570_v30 = vclz %v4123_v42  ;;  %vm6743_vm9 = vcmp.le.f32.partialorder %v502_v1, 0.7853982  ;;  %vm4285_vm10 = vmpackc.low %vm2659_vm4, %vm2657_vm5  ;;  %v4187_v58 = vsel %vm2183_vm3, 1.0, %v5059_v54  ;;  %v588_v47 = vsub.s32 4, %v6691_v40 }
 0x1cb   : > { %vm2663_vm12 = vcmp.eq.s32.totalorder %v2628_v8, %v6632_v7  ;;  %vm2665_vm3 = vcmp.eq.s32.totalorder %v2631_v24, %v6632_v7  ;;  %vm2672_vm4 = vcmp.eq.s32.totalorder %v2640_v14, %v6641_v6  ;;  %vm2670_vm5 = vcmp.eq.s32.totalorder %v2637_v61, %v6641_v6 }
 0x1cc   : > { %v4124_v27 = vadd.s32 4294967294, %v570_v30  ;;  %v6781_v30 = vpop.permute.xlu0 %2550  ;;  %v7379_v35 = vmov 0 }
 0x1cd   : > { %4278 = vmatmul.mubr.msk.bf16.gmra.mxu1 %vm4277_vm6, %v7324_v20  ;;  %vm2664_vm6 = vcmp.eq.s32.totalorder %v2628_v8, %v6641_v6  ;;  %v7385_v8 = vmov 0 }
 0x1ce   : > { %vm4125_vm8 = vcmp.lt.s32.totalorder %v4124_v27, 0  ;;  %4280 = vmatprep.mubr.msk.bf16.mxu1 %vm4279_vm7, %v7324_v20  ;;  %vm2662_vm7 = vcmp.eq.s32.totalorder %v2625_v32, %v6641_v6 }
 0x1cf   : > { %v573_v22 = vsel %vm4125_vm8, 0, %v4124_v27  ;;  %vm504_vm8 = vcmp.lt.s32.totalorder %v6521_v4, 0  ;;  %vm4287_vm11 = vmpackc.low %vm2664_vm6, %vm2662_vm7 }
 0x1d0   : > { %v574_v36 = vsub.s32 32, %v573_v22  ;;  %v575_v37 = vshll.u32 %v566_v49, %v573_v22  ;;  %v578_v18 = vsub.s32 4294967266, %v573_v22  ;;  %v589_v44 = vsel %vm504_vm8, %v588_v47, %v6691_v40 }
 0x1d1   : > { %v591_v17 = vsel %vm6743_vm9, 0, %v589_v44 }
 0x1d2   : > { %v576_v26 = vshrl.u32 %v558_v34, %v574_v36  ;;  %v579_v33 = vadd.s32 127, %v578_v18  ;;  %v595_v3 = vand.u32 3, %v591_v17  ;;  %v7376_v36 = vmov 0 }
 0x1d4   : > { %v577_v50 = vor.u32 %v576_v26, %v575_v37  ;;  %v580_v63 = vshll.u32 %v579_v33, 23  ;;  %vm600_vm7 = vcmp.eq.s32.totalorder %v595_v3, 2  ;;  %v7382_v33 = vmov 0 }
 0x1d5   : > { %v5008_v46 = vpop.eup %5007  ;;  %4282 = vmatmul.mubr.msk.bf16.gmra.mxu1 %vm4281_vm13, %v7324_v20  ;;  %vm2661_vm13 = vcmp.eq.s32.totalorder %v2625_v32, %v6632_v7  ;;  %v7388_v32 = vmov 0 }
 0x1d6   : > { %v5010_v25 = vpop.eup %5009  ;;  %v704_v60 = vxor.u32 2147483648, %v5008_v46  ;;  %v581_v45 = vor.u32 4788187, %v580_v63  ;;  %v584_v38 = vcvt.s32.f32 %v577_v50  ;;  %4284 = vmatprep.mubr.msk.bf16.mxu1 %vm4283_vm15, %v7324_v20  ;;  %vm2666_vm15 = vcmp.eq.s32.totalorder %v2631_v24, %v6641_v6 }
 0x1d7   : > { %v701_v41 = vxor.u32 2147483648, %v5010_v25 }
 0x1d8   : > { %v705_v0 = vsel %vm703_vm14, %v704_v60, %v5010_v25  ;;  %v582_v11 = vand.u32 2147483647, %v581_v45  ;;  %vm2668_vm14 = vcmp.eq.s32.totalorder %v2634_v62, %v6641_v6  ;;  %v6838_v45 = vpop.f32.mrf.mxu0 }
 0x1d9   : > { %v702_v57 = vsel %vm700_vm0, %v5008_v46, %v701_v41  ;;  %vm4289_vm0 = vmpackc.low %vm2663_vm12, %vm2661_vm13  ;;  %vm2671_vm12 = vcmp.eq.s32.totalorder %v2640_v14, %v6632_v7  ;;  %vm2669_vm13 = vcmp.eq.s32.totalorder %v2637_v61, %v6632_v7 }
 0x1da   : > { %v706_v2 = vsel %vm699_vm1, %v702_v57, %v705_v0  ;;  %v585_v43 = vmul.f32 %v584_v38, %v582_v11  ;;  %vm4291_vm1 = vmpackc.low %vm2668_vm14, %vm2666_vm15  ;;  %vm2182_vm14 = vcmp.lt.f32.partialorder %v6508_v39, 5.0  ;;  %v6788_v39 = vpop.permute.xlu0 %2540  ;;  %v2415_v0 = vpop.f32.mrf.mxu0 }
 0x1db   : > { %v707_v5 = vsel %vm697_vm2, nan, %v706_v2  ;;  %vm2667_vm2 = vcmp.eq.s32.totalorder %v2634_v62, %v6632_v7  ;;  %vm4297_vm15 = vmpackc.low %vm2671_vm12, %vm2669_vm13  ;;  %v4186_v31 = vsel %vm2182_vm14, 1.0, %v5059_v54  ;;  %v6786_v7 = vshrl.u32 %v2574_v10, 7  ;;  %v6796_v54 = vld [vmem:[%s414_s23] ss:$0 sm:$0xff] }
 0x1dc   : > { %v2151_v16 = vadd.f32 1.0, %v707_v5  ;;  %v586_v28 = vxor.u32 2147483648, %v585_v43  ;;  %vm4293_vm6 = vmpackc.low %vm2667_vm2, %vm2665_vm3  ;;  %v6864_v59 = vpop.f32.mrf.mxu0 }
 0x1dd   : > { %4286 = vmatmul.mubr.msk.bf16.gmra.mxu1 %vm4285_vm10, %v7324_v20  ;;  %vm596_vm10 = vcmp.lt.s32.totalorder %v595_v3, 2  ;;  %v3004_v27 = vadd.s32 8, %v6786_v7  ;;  %v3005_v12 = vadd.s32 16, %v6786_v7  ;;  %v3006_v34 = vadd.s32 24, %v6786_v7 }
 0x1de   : > { %v2167_v29 = vmul.f32 0.5, %v2151_v16  ;;  %v587_v48 = vsel %vm504_vm8, %v586_v28, %v585_v43  ;;  %4288 = vmatprep.mubr.msk.bf16.mxu1 %vm4287_vm11, %v7324_v20  ;;  %vm4295_vm8 = vmpackc.low %vm2672_vm4, %vm2670_vm5  ;;  %vm594_vm11 = vweird.f32 %v6521_v4  ;;  %v6804_v10 = vpop.permute.xlu0 %2530  ;;  %v3007_v23 = vadd.s32 32, %v6786_v7 }
 0x1df   : > { %v590_v1 = vsel %vm6743_vm9, %v6521_v4, %v587_v48  ;;  %vm597_vm9 = vcmp.eq.s32.totalorder %v595_v3, 0  ;;  %v6779_v4 = vpop.permute.xlu1 %2555  ;;  %vm3042_vm2 = vcmp.eq.s32.totalorder %v6796_v54, %v3005_v12  ;;  %vm3043_vm3 = vcmp.eq.s32.totalorder %v6796_v54, %v3006_v34  ;;  %v2418_v48 = vpop.f32.mrf.mxu0 }
 0x1e0   : > { %v2231_v53 = vmul.f32 %v4187_v58, %v2167_v29  ;;  %5011 = vcosq.f32 %v590_v1  ;;  %v3008_v15 = vadd.s32 40, %v6786_v7  ;;  %vm6812_vm5 = vmpackc.low %vm3043_vm3, %vm3042_vm2  ;;  %v3009_v37 = vadd.s32 48, %v6786_v7  ;;  %v6881_v29 = vld [vmem:[%s7319_s7] ss:$0 sm:$0xff] }
 0x1e1   : > { %5013 = vsinq.f32 %v590_v1  ;;  %v7377_v36 = vsel %vm6812_vm5, 4294967295, %v7376_v36  ;;  %v3010_v18 = vadd.s32 56, %v6786_v7  ;;  %v3011_v63 = vadd.s32 64, %v6786_v7 }
 0x1e2   : > { %2485 = vperm.xlu1 %4918, %v2231_v53   ;;  %7378 = vst [vmem:[#allocation6_spill] sm:$0xff] %v7377_v36  ;;  %v6832_v50 = vpop.permute.xlu0 %2520  ;;  %v3012_v46 = vadd.s32 72, %v6786_v7  ;;  %v3013_v25 = vadd.s32 80, %v6786_v7  ;;  %v3014_v60 = vadd.s32 88, %v6786_v7  ;;  %v3015_v57 = vadd.s32 96, %v6786_v7 }
 0x1e3   : > { %v6783_v9 = vpop.permute.xlu1 %2545  ;;  %vm3048_vm12 = vcmp.eq.s32.totalorder %v6796_v54, %v3011_v63  ;;  %v3016_v2 = vadd.s32 104, %v6786_v7  ;;  %v3017_v5 = vadd.s32 112, %v6786_v7  ;;  %v3018_v16 = vadd.s32 120, %v6786_v7 }
 0x1e4   : > { %vm3049_vm13 = vcmp.eq.s32.totalorder %v6796_v54, %v3012_v46  ;;  %vm3052_vm2 = vcmp.eq.s32.totalorder %v6796_v54, %v3015_v57  ;;  %v7391_v28 = vmov 0  ;;  %v7394_v58 = vmov 0 }
 0x1e5   : > { %4290 = vmatmul.mubr.msk.bf16.gmra.mxu1 %vm4289_vm0, %v7324_v20  ;;  %vm3040_vm0 = vcmp.eq.s32.totalorder %v6796_v54, %v6786_v7  ;;  %vm6846_vm14 = vmpackc.low %vm3049_vm13, %vm3048_vm12  ;;  %vm3053_vm3 = vcmp.eq.s32.totalorder %v6796_v54, %v3016_v2  ;;  %v2419_v1 = vadd.f32 %v6881_v29, %v2418_v48  ;;  %v3027_v24 = vadd.s32 192, %v6786_v7 }
 0x1e6   : > { %4292 = vmatprep.mubr.msk.bf16.mxu1 %vm4291_vm1, %v7324_v20  ;;  %vm3041_vm1 = vcmp.eq.s32.totalorder %v6796_v54, %v3004_v27  ;;  %v6844_v41 = vpop.permute.xlu0 %2510  ;;  %v7386_v8 = vsel %vm6846_vm14, 4294967295, %v7385_v8  ;;  %v3028_v53 = vadd.s32 200, %v6786_v7  ;;  %v3029_v44 = vadd.s32 208, %v6786_v7 }
 0x1e7   : > { %v6800_v22 = vpop.permute.xlu1 %2535  ;;  %vm4332_vm4 = vmpackc.low %vm3041_vm1, %vm3040_vm0  ;;  %7387 = vst [vmem:[#allocation9_spill] sm:$0xff] %v7386_v8  ;;  %vm3051_vm0 = vcmp.eq.s32.totalorder %v6796_v54, %v3014_v60  ;;  %v3030_v17 = vadd.s32 216, %v6786_v7  ;;  %v3019_v14 = vadd.s32 128, %v6786_v7  ;;  %v3020_v61 = vadd.s32 136, %v6786_v7 }
 0x1e8   : > { %4618 = vmatprep.mubr.msk.bf16.mxu0 %vm4332_vm4, %v7324_v20  ;;  %vm6868_vm4 = vmpackc.low %vm3053_vm3, %vm3052_vm2  ;;  %v3021_v3 = vadd.s32 144, %v6786_v7  ;;  %vm3065_vm12 = vcmp.eq.s32.totalorder %v6796_v54, %v3028_v53  ;;  %vm3066_vm13 = vcmp.eq.s32.totalorder %v6796_v54, %v3029_v44  ;;  %v3031_v12 = vadd.s32 224, %v6786_v7 }
 0x1e9   : > { %v7392_v28 = vsel %vm6868_vm4, 4294967295, %v7391_v28  ;;  %vm3056_vm2 = vcmp.eq.s32.totalorder %v6796_v54, %v3019_v14  ;;  %vm3057_vm3 = vcmp.eq.s32.totalorder %v6796_v54, %v3020_v61  ;;  %v3032_v34 = vadd.s32 232, %v6786_v7  ;;  %v6956_v14 = vpop.f32.mrf.mxu0 }
 0x1ea   : > { %7393 = vst [vmem:[#allocation11_spill] sm:$0xff] %v7392_v28  ;;  %v3024_v63 = vadd.s32 168, %v6786_v7  ;;  %v3025_v46 = vadd.s32 176, %v6786_v7  ;;  %v3026_v57 = vadd.s32 184, %v6786_v7 }
 0x1eb   : > { %v6826_v26 = vpop.permute.xlu1 %2525 }
 0x1ed   : > { %v5012_v40 = vpop.eup %5011  ;;  %4294 = vmatmul.mubr.msk.bf16.gmra.mxu1 %vm4293_vm6, %v7324_v20  ;;  %vm3044_vm6 = vcmp.eq.s32.totalorder %v6796_v54, %v3007_v23  ;;  %v3033_v23 = vadd.s32 240, %v6786_v7 }
 0x1ee   : > { %v5014_v51 = vpop.eup %5013  ;;  %v601_v49 = vxor.u32 2147483648, %v5012_v40  ;;  %4296 = vmatprep.mubr.msk.bf16.mxu1 %vm4295_vm8, %v7324_v20 }
 0x1ef   : > { %v598_v52 = vxor.u32 2147483648, %v5014_v51  ;;  %v6840_v38 = vpop.permute.xlu1 %2515 }
 0x1f0   : > { %v602_v13 = vsel %vm600_vm7, %v601_v49, %v5014_v51  ;;  %vm3045_vm7 = vcmp.eq.s32.totalorder %v6796_v54, %v3008_v15  ;;  %v2416_v49 = vadd.f32 %v6881_v29, %v2415_v0  ;;  %v7406_v0 = vmov 0 }
 0x1f1   : > { %v599_v21 = vsel %vm597_vm9, %v5012_v40, %v598_v52  ;;  %vm6820_vm8 = vmpackc.low %vm3045_vm7, %vm3044_vm6  ;;  %vm3046_vm9 = vcmp.eq.s32.totalorder %v6796_v54, %v3009_v37  ;;  %vm3054_vm6 = vcmp.eq.s32.totalorder %v6796_v54, %v3017_v5  ;;  %vm3055_vm7 = vcmp.eq.s32.totalorder %v6796_v54, %v3018_v16 }
 0x1f2   : > { %v603_v6 = vsel %vm596_vm10, %v599_v21, %v602_v13  ;;  %v7380_v35 = vsel %vm6820_vm8, 4294967295, %v7379_v35  ;;  %vm3047_vm10 = vcmp.eq.s32.totalorder %v6796_v54, %v3010_v18  ;;  %v3022_v40 = vadd.s32 152, %v6786_v7 }
 0x1f3   : > { %v604_v56 = vsel %vm594_vm11, nan, %v603_v6  ;;  %7381 = vst [vmem:[#allocation7_spill] sm:$0xff] %v7380_v35  ;;  %vm6828_vm11 = vmpackc.low %vm3047_vm10, %vm3046_vm9  ;;  %vm3064_vm10 = vcmp.eq.s32.totalorder %v6796_v54, %v3027_v24  ;;  %v7397_v13 = vmov 0  ;;  %v3034_v37 = vadd.s32 248, %v6786_v7 }
 0x1f4   : > { %v2150_v55 = vadd.f32 1.0, %v604_v56  ;;  %v7383_v33 = vsel %vm6828_vm11, 4294967295, %v7382_v33  ;;  %vm6874_vm9 = vmpackc.low %vm3055_vm7, %vm3054_vm6  ;;  %vm3058_vm6 = vcmp.eq.s32.totalorder %v6796_v54, %v3021_v3  ;;  %vm3059_vm7 = vcmp.eq.s32.totalorder %v6796_v54, %v3022_v40 }
 0x1f5   : > { %4298 = vmatmul.mubr.msk.bf16.gmra.mxu1 %vm4297_vm15, %v7324_v20  ;;  %7384 = vst [vmem:[#allocation8_spill] sm:$0xff] %v7383_v33  ;;  %vm3050_vm15 = vcmp.eq.s32.totalorder %v6796_v54, %v3013_v25  ;;  %v7395_v58 = vsel %vm6874_vm9, 4294967295, %v7394_v58  ;;  %v7400_v56 = vmov 0  ;;  %v3023_v18 = vadd.s32 160, %v6786_v7 }
 0x1f6   : > { %v2166_v19 = vmul.f32 0.5, %v2150_v55  ;;  %vm6852_vm1 = vmpackc.low %vm3051_vm0, %vm3050_vm15  ;;  %7396 = vst [vmem:[#allocation12_spill] sm:$0xff] %v7395_v58  ;;  %vm3067_vm15 = vcmp.eq.s32.totalorder %v6796_v54, %v3030_v17  ;;  %v7409_v16 = vmov 0  ;;  %v2424_v24 = vadd.f32 %v6838_v45, %v6881_v29  ;;  %v6960_v45 = vpop.f32.mrf.mxu0 }
 0x1f7   : > { %v7389_v32 = vsel %vm6852_vm1, 4294967295, %v7388_v32  ;;  %vm4356_vm0 = vmpackc.low %vm3065_vm12, %vm3064_vm10  ;;  %v2427_v7 = vadd.f32 %v6864_v59, %v6881_v29  ;;  %v7415_v17 = vmov 0 }
 0x1f8   : > { %v2230_v42 = vmul.f32 %v4186_v31, %v2166_v19  ;;  %7390 = vst [vmem:[#allocation10_spill] sm:$0xff] %v7389_v32  ;;  %4642 = vmatprep.mubr.msk.bf16.mxu1 %vm4356_vm0, %v7324_v20  ;;  %vm6906_vm9 = vmpackc.low %vm3067_vm15, %vm3066_vm13  ;;  %v7403_v31 = vmov 0  ;;  %vm3068_vm13 = vcmp.eq.s32.totalorder %v6796_v54, %v3031_v12  ;;  %vm3069_vm15 = vcmp.eq.s32.totalorder %v6796_v54, %v3032_v34 }
 0x1f9   : > { %v7398_v13 = vsel %vm6906_vm9, 4294967295, %v7397_v13  ;;  %vm6910_vm10 = vmpackc.low %vm3057_vm3, %vm3056_vm2  ;;  %vm3070_vm0 = vcmp.eq.s32.totalorder %v6796_v54, %v3033_v23  ;;  %vm3071_vm3 = vcmp.eq.s32.totalorder %v6796_v54, %v3034_v37 }
 0x1fa   : > { %2480 = vperm.xlu0 %4917, %v2230_v42   ;;  %7399 = vst [vmem:[#allocation13_spill] sm:$0xff] %v7398_v13  ;;  %v7401_v56 = vsel %vm6910_vm10, 4294967295, %v7400_v56  ;;  %vm6914_vm12 = vmpackc.low %vm3059_vm7, %vm3058_vm6  ;;  %vm3060_vm6 = vcmp.eq.s32.totalorder %v6796_v54, %v3023_v18  ;;  %vm3061_vm7 = vcmp.eq.s32.totalorder %v6796_v54, %v3024_v63  ;;  %vm3062_vm10 = vcmp.eq.s32.totalorder %v6796_v54, %v3025_v46 }
 0x1fb   : > { %v6856_v11 = vpop.permute.xlu1 %2505  ;;  %7402 = vst [vmem:[#allocation14_spill] sm:$0xff] %v7401_v56  ;;  %v7404_v31 = vsel %vm6914_vm12, 4294967295, %v7403_v31  ;;  %vm6928_vm2 = vmpackc.low %vm3069_vm15, %vm3068_vm13  ;;  %vm3063_vm15 = vcmp.eq.s32.totalorder %v6796_v54, %v3026_v57 }
 0x1fc   : > { %7405 = vst [vmem:[#allocation15_spill] sm:$0xff] %v7404_v31  ;;  %v7407_v0 = vsel %vm6928_vm2, 4294967295, %v7406_v0  ;;  %vm6936_vm12 = vmpackc.low %vm3071_vm3, %vm3070_vm0 }
 0x1fd   : > { %7408 = vst [vmem:[#allocation16_spill] sm:$0xff] %v7407_v0  ;;  %v7410_v16 = vsel %vm6936_vm12, 4294967295, %v7409_v16  ;;  %vm6941_vm13 = vmpackc.low %vm3061_vm7, %vm3060_vm6 }
 0x1fe   : > { %7411 = vst [vmem:[#allocation17_spill] sm:$0xff] %v7410_v16  ;;  %vm6952_vm0 = vmpackc.low %vm3063_vm15, %vm3062_vm10 }
 0x1ff   : > { %v7416_v17 = vsel %vm6952_vm0, 4294967295, %v7415_v17 }
 0x200   : > { %7417 = vst [vmem:[#allocation19_spill] sm:$0xff] %v7416_v17 }
 0x20c   : > { %v6860_v43 = vpop.permute.xlu0 %2500 }
 0x22d   : > { %v6883_v47 = vpop.permute.xlu1 %2495 }
 0x22e   : > { %v2561_v40 = vmul.f32 %v6883_v47, %v2427_v7 }
 0x243   : > { %v6886_v62 = vpop.permute.xlu0 %2490 }
 0x244   : > { %v2560_v54 = vmul.f32 %v6886_v62, %v2424_v24 }
 0x25d   : > { %v2486_v52 = vpop.permute.xlu1 %2485 }
 0x25e   : > { %v2559_v19 = vmul.f32 %v2486_v52, %v2419_v1  ;;  %v7412_v1 = vmov 0 }
 0x25f   : > { %v7413_v1 = vsel %vm6941_vm13, 4294967295, %v7412_v1 }
 0x260   : > { %7414 = vst [vmem:[#allocation18_spill] sm:$0xff] %v7413_v1 }
 0x275   : > { %v2481_v21 = vpop.permute.xlu0 %2480 }
 0x276   : > { %v2558_v27 = vmul.f32 %v2481_v21, %v2416_v49 }
 0x27d   : > { %v4402_v51 = vpop.f32.mrf.mxu1 }
 0x27f   : > { %v4403_v6 = vpop.f32.mrf.mxu1 }
 0x280   : > { %v4404_v55 = vadd.f32 %v4403_v6, %v4402_v51 }
 0x281   : > { %v4405_v42 = vpop.f32.mrf.mxu1 }
 0x282   : > { %v2978_v2 = vmul.f32 %v4404_v55, %v2558_v27  ;;  %v4593_v55 = vpop.f32.mrf.mxu0 }
 0x283   : > { %v4406_v15 = vpop.f32.mrf.mxu1 }
 0x284   : > { %v4407_v25 = vadd.f32 %v4406_v15, %v4405_v42  ;;  %v6972_v27 = vpop.f32.mrf.mxu0 }
 0x285   : > { %v4408_v60 = vpop.f32.mrf.mxu1 }
 0x286   : > { %v2979_v5 = vmul.f32 %v4407_v25, %v2559_v19  ;;  %v4596_v12 = vpop.f32.mrf.mxu0 }
 0x287   : > { %v4409_v48 = vpop.f32.mrf.mxu1 }
 0x288   : > { %v6950_v53 = vpack.c.bf16 %v2979_v5, %v2978_v2  ;;  %v4410_v44 = vadd.f32 %v4409_v48, %v4408_v60  ;;  %v2447_v15 = vpop.f32.mrf.mxu0 }
 0x289   : > { %v4411_v61 = vpop.f32.mrf.mxu1 }
 0x28a   : > { %v2980_v59 = vmul.f32 %v4410_v44, %v2560_v54  ;;  %v4597_v63 = vpop.f32.mrf.mxu0 }
 0x28b   : > { %v4412_v3 = vpop.f32.mrf.mxu1  ;;  %v2459_v32 = vadd.f32 %v4597_v63, %v6881_v29 }
 0x28c   : > { %v4413_v51 = vadd.f32 %v4412_v3, %v4411_v61  ;;  %v2450_v60 = vpop.f32.mrf.mxu0 }
 0x28d   : > { %v6962_v49 = vpop.f32.mrf.mxu1  ;;  %v2451_v63 = vadd.f32 %v6881_v29, %v2450_v60  ;;  %v3154_v60 = vld [vmem:[#allocation2 + $0xd8] sm:$0xff] }
 0x28e   : > { %v2981_v52 = vmul.f32 %v4413_v51, %v2561_v40  ;;  %v4600_v5 = vpop.f32.mrf.mxu0 }
 0x28f   : > { %v6964_v21 = vpop.f32.mrf.mxu1 }
 0x290   : > { %v6966_v6 = vpack.c.bf16 %v2981_v52, %v2980_v59  ;;  %v2463_v7 = vpop.f32.mrf.mxu0  ;;  %v2472_v52 = vadd.f32 %v4600_v5, %v6881_v29 }
 0x291   : > { %v6968_v19 = vpop.f32.mrf.mxu1  ;;  %v2464_v31 = vadd.f32 %v6881_v29, %v2463_v7 }
 0x292   : > { %v4601_v3 = vpop.f32.mrf.mxu0  ;;  %v2572_v8 = vmul.f32 %v6781_v30, %v2472_v52 }
 0x293   : > { %v6970_v42 = vpop.f32.mrf.mxu1  ;;  %v2475_v17 = vadd.f32 %v4601_v3, %v6881_v29  ;;  %v2456_v3 = vadd.f32 %v4596_v12, %v6881_v29  ;;  %v3161_v12 = vld [vmem:[#allocation2 + $0x88] sm:$0xff] }
 0x294   : > { %v2466_v51 = vpop.f32.mrf.mxu0 }
 0x295   : > { %v6974_v47 = vpop.f32.mrf.mxu1  ;;  %v2467_v1 = vadd.f32 %v6881_v29, %v2466_v51  ;;  %v2573_v33 = vmul.f32 %v6779_v4, %v2475_v17  ;;  %v2570_v51 = vmul.f32 %v6788_v39, %v2464_v31  ;;  %v2568_v4 = vmul.f32 %v6804_v10, %v2456_v3  ;;  %v3155_v3 = vld [vmem:[#allocation2 + $0x18] sm:$0xff] }
 0x296   : > { %v2443_v39 = vadd.f32 %v4593_v55, %v6881_v29  ;;  %v2440_v10 = vadd.f32 %v6956_v14, %v6881_v29  ;;  %v4419_v17 = vadd.f32 %v6970_v42, %v6968_v19 }
 0x297   : > { %v6976_v62 = vpop.f32.mrf.mxu1  ;;  %v2571_v0 = vmul.f32 %v6783_v9, %v2467_v1  ;;  %v2448_v9 = vadd.f32 %v6881_v29, %v2447_v15  ;;  %v7428_v15 = vld [vmem:[#allocation12_spill] sm:$0xff] }
 0x299   : > { %v6978_v34 = vpop.f32.mrf.mxu1 }
 0x29b   : > { %v6980_v23 = vpop.f32.mrf.mxu1 }
 0x29d   : > { %v4426_v37 = vpop.f32.mrf.mxu1 }
 0x29f   : > { %v4427_v18 = vpop.f32.mrf.mxu1 }
 0x2a1   : > { %v4429_v46 = vpop.f32.mrf.mxu1 }
 0x2a3   : > { %v4430_v25 = vpop.f32.mrf.mxu1 }
 0x2a5   : > { %v4432_v57 = vpop.f32.mrf.mxu1 }
 0x2a7   : > { %v4433_v2 = vpop.f32.mrf.mxu1 }
 0x2a8   : > { %v4434_v30 = vadd.f32 %v4433_v2, %v4432_v57  ;;  %v3178_v57 = vld [vmem:[#allocation2 + $0x10] sm:$0xff] }
 0x2a9   : > { %v4435_v48 = vpop.f32.mrf.mxu1 }
 0x2ab   : > { %v4436_v24 = vpop.f32.mrf.mxu1 }
 0x2ac   : > { %v4437_v13 = vadd.f32 %v4436_v24, %v4435_v48  ;;  %v3152_v48 = vld [vmem:[#allocation2 + $0xb0] sm:$0xff] }
 0x2ad   : > { %v4438_v44 = vpop.f32.mrf.mxu1 }
 0x2af   : > { %v4439_v61 = vpop.f32.mrf.mxu1 }
 0x2b0   : > { %v4440_v5 = vadd.f32 %v4439_v61, %v4438_v44  ;;  %v3176_v44 = vld [vmem:[#allocation2 + $0xa8] sm:$0xff] }
 0x2b1   : > { %v4441_v40 = vpop.f32.mrf.mxu1 }
 0x2b3   : > { %v4442_v54 = vpop.f32.mrf.mxu1 }
 0x2b4   : > { %v4443_v58 = vadd.f32 %v4442_v54, %v4441_v40  ;;  %v2990_v54 = vmul.f32 %v4440_v5, %v2570_v51 }
 0x2b5   : > { %v4444_v59 = vpop.f32.mrf.mxu1 }
 0x2b6   : > { %v2991_v7 = vmul.f32 %v4443_v58, %v2571_v0  ;;  %v2435_v58 = vadd.f32 %v6881_v29, %v6972_v27  ;;  %v2564_v0 = vmul.f32 %v6844_v41, %v2440_v10  ;;  %v4416_v27 = vadd.f32 %v6964_v21, %v6962_v49  ;;  %v3156_v10 = vld [vmem:[#allocation2 + $0x50] sm:$0xff] }
 0x2b7   : > { %v4445_v20 = vpop.f32.mrf.mxu1 }
 0x2b8   : > { %v4446_v28 = vadd.f32 %v4445_v20, %v4444_v59  ;;  %v2569_v20 = vmul.f32 %v6800_v22, %v2459_v32  ;;  %v3000_v1 = vpack.c.bf16 %v2991_v7, %v2990_v54  ;;  %v2567_v22 = vmul.f32 %v6826_v26, %v2451_v63  ;;  %v3179_v7 = vld [vmem:[#allocation2 + $0x28] sm:$0xff] }
 0x2b9   : > { %v4447_v56 = vpop.f32.mrf.mxu1  ;;  %v2565_v26 = vmul.f32 %v6840_v38, %v2443_v39  ;;  %v2563_v38 = vmul.f32 %v6856_v11, %v2435_v58  ;;  %v7418_v11 = vmov 1.0|1.0   ;;  %v3182_v39 = vld [vmem:[#allocation2 + $0x20] sm:$0xff] }
 0x2ba   : > { %v2992_v36 = vmul.f32 %v4446_v28, %v2572_v8  ;;  %v4425_v8 = vadd.f32 %v6980_v23, %v6978_v34 }
 0x2bb   : > { %v4448_v16 = vpop.f32.mrf.mxu1 }
 0x2bc   : > { %v4449_v35 = vadd.f32 %v4448_v16, %v4447_v56  ;;  %v4431_v56 = vadd.f32 %v4430_v25, %v4429_v46  ;;  %v2989_v16 = vmul.f32 %v4437_v13, %v2569_v20  ;;  %v4422_v13 = vadd.f32 %v6976_v62, %v6974_v47  ;;  %v3164_v46 = vld [vmem:[#allocation2 + $0x60] sm:$0xff] }
 0x2bd   : > { %v2985_v14 = vmul.f32 %v4425_v8, %v2565_v26  ;;  %v3180_v8 = vld [vmem:[#allocation2 + $0xa0] sm:$0xff]  ;;  %v3159_v26 = vld [vmem:[#allocation2 + $0x48] sm:$0xff] }
 0x2be   : > { %v2993_v40 = vmul.f32 %v4449_v35, %v2573_v33  ;;  %v4428_v35 = vadd.f32 %v4427_v18, %v4426_v37  ;;  %v2988_v33 = vmul.f32 %v4434_v30, %v2568_v4  ;;  %v2987_v32 = vmul.f32 %v4431_v56, %v2567_v22  ;;  %v7430_v37 = vld [vmem:[#allocation14_spill] sm:$0xff]  ;;  %v7432_v18 = vld [vmem:[#allocation15_spill] sm:$0xff] }
 0x2bf   : > { %v2984_v47 = vmul.f32 %v4422_v13, %v2564_v0  ;;  %v3153_v30 = vld [vmem:[#allocation2] sm:$0xff] }
 0x2c0   : > { %v3001_v59 = vpack.c.bf16 %v2993_v40, %v2992_v36  ;;  %v2566_v36 = vmul.f32 %v6832_v50, %v2448_v9  ;;  %v2999_v28 = vpack.c.bf16 %v2989_v16, %v2988_v33  ;;  %v2432_v50 = vadd.f32 %v6881_v29, %v6960_v45  ;;  %v3158_v16 = vld [vmem:[#allocation2 + $0x30] sm:$0xff] }
 0x2c1   : > { %v2983_v29 = vmul.f32 %v4419_v17, %v2563_v38  ;;  %v2997_v45 = vpack.c.bf16 %v2985_v14, %v2984_v47  ;;  %v3157_v14 = vld [vmem:[#allocation2 + $0x68] sm:$0xff]  ;;  %v3181_v38 = vld [vmem:[#allocation2 + $0xf8] sm:$0xff] }
 0x2c2   : > { %4602 = vmatprep.subr.bf16.mxu0 %v3001_v59  ;;  %4810 = vmatprep.subr.bf16.mxu1 %v3001_v59  ;;  %v2986_v31 = vmul.f32 %v4428_v35, %v2566_v36  ;;  %v2562_v62 = vmul.f32 %v6860_v43, %v2432_v50  ;;  %v3160_v43 = vld [vmem:[#allocation2 + $0x80] sm:$0xff] }
 0x2c3   : > { %4603 = vmatpush3.bf16.msra.mxu0 %v3001_v59  ;;  %4818 = vmatpush3.bf16.msra.mxu1 %v3001_v59  ;;  %v3177_v59 = vld [vmem:[#allocation2 + $0xd0] sm:$0xff] }
 0x2c4   : > { %4604 = vmatprep.subr.bf16.mxu0 %v3000_v1  ;;  %4811 = vmatprep.subr.bf16.mxu1 %v3000_v1  ;;  %v2998_v55 = vpack.c.bf16 %v2987_v32, %v2986_v31  ;;  %v2982_v41 = vmul.f32 %v4416_v27, %v2562_v62  ;;  %v3183_v31 = vld [vmem:[#allocation2 + $0x98] sm:$0xff] }
 0x2c6   : > { %v2996_v19 = vpack.c.bf16 %v2983_v29, %v2982_v41  ;;  %v3162_v29 = vld [vmem:[#allocation2 + $0xe8] sm:$0xff] }
 0x2c7   : > { %4605 = vmatpush3.bf16.msra.mxu0 %v3000_v1  ;;  %4819 = vmatpush3.bf16.msra.mxu1 %v3000_v1 }
 0x2c8   : > { %4606 = vmatprep.subr.bf16.mxu0 %v2999_v28  ;;  %4812 = vmatprep.subr.bf16.mxu1 %v2999_v28 }
 0x2cb   : > { %4607 = vmatpush3.bf16.msra.mxu0 %v2999_v28  ;;  %4820 = vmatpush3.bf16.msra.mxu1 %v2999_v28 }
 0x2cc   : > { %4608 = vmatprep.subr.bf16.mxu0 %v2998_v55  ;;  %4813 = vmatprep.subr.bf16.mxu1 %v2998_v55 }
 0x2cf   : > { %4609 = vmatpush3.bf16.msra.mxu0 %v2998_v55  ;;  %4821 = vmatpush3.bf16.msra.mxu1 %v2998_v55 }
 0x2d0   : > { %4610 = vmatprep.subr.bf16.mxu0 %v2997_v45  ;;  %4814 = vmatprep.subr.bf16.mxu1 %v2997_v45 }
 0x2d3   : > { %4611 = vmatpush3.bf16.msra.mxu0 %v2997_v45  ;;  %4822 = vmatpush3.bf16.msra.mxu1 %v2997_v45 }
 0x2d4   : > { %4612 = vmatprep.subr.bf16.mxu0 %v2996_v19  ;;  %4815 = vmatprep.subr.bf16.mxu1 %v2996_v19 }
 0x2d7   : > { %4613 = vmatpush3.bf16.msra.mxu0 %v2996_v19  ;;  %4823 = vmatpush3.bf16.msra.mxu1 %v2996_v19 }
 0x2d8   : > { %4614 = vmatprep.subr.bf16.mxu0 %v6966_v6  ;;  %4816 = vmatprep.subr.bf16.mxu1 %v6966_v6 }
 0x2db   : > { %4615 = vmatpush3.bf16.msra.mxu0 %v6966_v6  ;;  %4824 = vmatpush3.bf16.msra.mxu1 %v6966_v6  ;;  %v3163_v6 = vld [vmem:[#allocation2 + $0xb8] sm:$0xff] }
 0x2dc   : > { %4616 = vmatprep.subr.bf16.mxu0 %v6950_v53  ;;  %4817 = vmatprep.subr.bf16.mxu1 %v6950_v53 }
 0x2df   : > { %4617 = vmatpush3.bf16.msra.mxu0 %v6950_v53  ;;  %4825 = vmatpush3.bf16.msra.mxu1 %v6950_v53 }
 0x2e2   : > { %4619 = vmatmul.mubr.msk.bf16.vlgmr.msra.gmra.mxu0 %vm6812_vm5, %v7418_v11  ;;  %4643 = vmatmul.mubr.msk.bf16.vlgmr.msra.gmra.mxu1 %vm6906_vm9, %v7418_v11  ;;  %vm7429_vm5 = vnez %v7428_v15  ;;  %v3166_v15 = vld [vmem:[#allocation2 + $0x8] sm:$0xff] }
 0x2e3   : > { %4622 = vmatprep.mubr.msk.bf16.mxu0 %vm6820_vm8, %v7418_v11  ;;  %4646 = vmatprep.mubr.msk.bf16.mxu1 %vm6928_vm2, %v7418_v11  ;;  %vm7431_vm8 = vnez %v7430_v37 }
 0x2ea   : > { %4623 = vmatmul.mubr.msk.bf16.gmra.mxu0 %vm6828_vm11, %v7418_v11  ;;  %4647 = vmatmul.mubr.msk.bf16.gmra.mxu1 %vm6936_vm12, %v7418_v11  ;;  %vm7433_vm11 = vnez %v7432_v18 }
 0x2eb   : > { %4626 = vmatprep.mubr.msk.bf16.mxu0 %vm6846_vm14, %v7418_v11 }
 0x2f2   : > { %4627 = vmatmul.mubr.msk.bf16.gmra.mxu0 %vm6852_vm1, %v7418_v11 }
 0x2f3   : > { %4630 = vmatprep.mubr.msk.bf16.mxu0 %vm6868_vm4, %v7418_v11 }
 0x2fa   : > { %4631 = vmatmul.mubr.msk.bf16.gmra.mxu0 %vm7429_vm5, %v7418_v11 }
 0x2fb   : > { %4634 = vmatprep.mubr.msk.bf16.mxu0 %vm7431_vm8, %v7418_v11 }
 0x302   : > { %4635 = vmatmul.mubr.msk.bf16.gmra.mxu0 %vm7433_vm11, %v7418_v11 }
 0x303   : > { %4638 = vmatprep.mubr.msk.bf16.mxu0 %vm6941_vm13, %v7418_v11 }
 0x30a   : > { %4639 = vmatmul.mubr.msk.bf16.gmra.mxu0 %vm6952_vm0, %v7418_v11 }
 0x3a2   : > { %v4620_v2 = vpop.f32.mrf.mxu0  ;;  %v4644_v24 = vpop.f32.mrf.mxu1 }
 0x3a3   : > { %v3347_v61 = vadd.f32 %v4620_v2, %v3154_v60  ;;  %v3371_v52 = vadd.f32 %v4644_v24, %v3178_v57  ;;  %v3167_v57 = vld [vmem:[#allocation2 + $0x78] sm:$0xff]  ;;  %v3165_v24 = vld [vmem:[#allocation2 + $0xf0] sm:$0xff] }
 0x3a4   : > { %v3218_v5 = vpop.f32.mrf.mxu0  ;;  %v3314_v51 = vpop.f32.mrf.mxu1 }
 0x3a5   : > { %3379 = vst [vmem:[#allocation2 + $0xd8] sm:$0xff] %v3347_v61  ;;  %v3345_v40 = vadd.f32 %v3218_v5, %v3152_v48  ;;  %3403 = vst [vmem:[#allocation2 + $0x10] sm:$0xff] %v3371_v52  ;;  %v3369_v20 = vadd.f32 %v3314_v51, %v3176_v44  ;;  %v3170_v52 = vld [vmem:[#allocation2 + $0x40] sm:$0xff]  ;;  %v3168_v51 = vld [vmem:[#allocation2 + $0x38] sm:$0xff] }
 0x3a6   : > { %v4621_v63 = vpop.f32.mrf.mxu0  ;;  %v4645_v54 = vpop.f32.mrf.mxu1 }
 0x3a7   : > { %3377 = vst [vmem:[#allocation2 + $0xb0] sm:$0xff] %v3345_v40  ;;  %v3348_v4 = vadd.f32 %v4621_v63, %v3155_v3  ;;  %3401 = vst [vmem:[#allocation2 + $0xa8] sm:$0xff] %v3369_v20  ;;  %v3372_v9 = vadd.f32 %v4645_v54, %v3179_v7  ;;  %v3171_v20 = vld [vmem:[#allocation2 + $0xc8] sm:$0xff]  ;;  %v3169_v54 = vld [vmem:[#allocation2 + $0x58] sm:$0xff] }
 0x3a8   : > { %v3221_v56 = vpop.f32.mrf.mxu0  ;;  %v3317_v1 = vpop.f32.mrf.mxu1 }
 0x3a9   : > { %3380 = vst [vmem:[#allocation2 + $0x18] sm:$0xff] %v3348_v4  ;;  %v3346_v22 = vadd.f32 %v3221_v56, %v3153_v30  ;;  %3404 = vst [vmem:[#allocation2 + $0x28] sm:$0xff] %v3372_v9  ;;  %v3370_v35 = vadd.f32 %v3317_v1, %v3177_v59  ;;  %v3174_v9 = vld [vmem:[#allocation2 + $0x70] sm:$0xff]  ;;  %v3172_v1 = vld [vmem:[#allocation2 + $0xe0] sm:$0xff] }
 0x3aa   : > { %v4624_v33 = vpop.f32.mrf.mxu0  ;;  %v4648_v36 = vpop.f32.mrf.mxu1 }
 0x3ab   : > { %3378 = vst [vmem:[#allocation2] sm:$0xff] %v3346_v22  ;;  %v3351_v32 = vadd.f32 %v4624_v33, %v3158_v16  ;;  %3402 = vst [vmem:[#allocation2 + $0xd0] sm:$0xff] %v3370_v35  ;;  %v3375_v28 = vadd.f32 %v4648_v36, %v3182_v39  ;;  %v3175_v35 = vld [vmem:[#allocation2 + $0xc0] sm:$0xff]  ;;  %v3173_v36 = vld [vmem:[#allocation2 + $0x90] sm:$0xff] }
 0x3ac   : > { %v3234_v58 = vpop.f32.mrf.mxu0  ;;  %v3330_v13 = vpop.f32.mrf.mxu1 }
 0x3ad   : > { %3383 = vst [vmem:[#allocation2 + $0x30] sm:$0xff] %v3351_v32  ;;  %v3349_v50 = vadd.f32 %v3234_v58, %v3156_v10  ;;  %3407 = vst [vmem:[#allocation2 + $0x20] sm:$0xff] %v3375_v28  ;;  %v3373_v0 = vadd.f32 %v3330_v13, %v3180_v8 }
 0x3ae   : > { %v4625_v17 = vpop.f32.mrf.mxu0  ;;  %v4649_v55 = vpop.f32.mrf.mxu1 }
 0x3af   : > { %3381 = vst [vmem:[#allocation2 + $0x50] sm:$0xff] %v3349_v50  ;;  %v3352_v27 = vadd.f32 %v4625_v17, %v3159_v26  ;;  %3405 = vst [vmem:[#allocation2 + $0xa0] sm:$0xff] %v3373_v0  ;;  %v3376_v47 = vadd.f32 %v4649_v55, %v3183_v31 }
 0x3b0   : > { %v3237_v62 = vpop.f32.mrf.mxu0  ;;  %v3333_v45 = vpop.f32.mrf.mxu1 }
 0x3b1   : > { %3384 = vst [vmem:[#allocation2 + $0x48] sm:$0xff] %v3352_v27  ;;  %v3350_v41 = vadd.f32 %v3237_v62, %v3157_v14  ;;  %3408 = vst [vmem:[#allocation2 + $0x98] sm:$0xff] %v3376_v47  ;;  %v3374_v19 = vadd.f32 %v3333_v45, %v3181_v38 }
 0x3b2   : > { %v4628_v11 = vpop.f32.mrf.mxu0 }
 0x3b3   : > { %3382 = vst [vmem:[#allocation2 + $0x68] sm:$0xff] %v3350_v41  ;;  %v3355_v49 = vadd.f32 %v4628_v11, %v3162_v29  ;;  %3406 = vst [vmem:[#allocation2 + $0xf8] sm:$0xff] %v3374_v19 }
 0x3b4   : > { %v3250_v21 = vpop.f32.mrf.mxu0 }
 0x3b5   : > { %3387 = vst [vmem:[#allocation2 + $0xe8] sm:$0xff] %v3355_v49  ;;  %v3353_v42 = vadd.f32 %v3250_v21, %v3160_v43 }
 0x3b6   : > { %v4629_v53 = vpop.f32.mrf.mxu0 }
 0x3b7   : > { %3385 = vst [vmem:[#allocation2 + $0x80] sm:$0xff] %v3353_v42  ;;  %v3356_v34 = vadd.f32 %v4629_v53, %v3163_v6 }
 0x3b8   : > { %v3253_v23 = vpop.f32.mrf.mxu0 }
 0x3b9   : > { %3388 = vst [vmem:[#allocation2 + $0xb8] sm:$0xff] %v3356_v34  ;;  %v3354_v37 = vadd.f32 %v3253_v23, %v3161_v12 }
 0x3ba   : > { %v4632_v18 = vpop.f32.mrf.mxu0 }
 0x3bb   : > { %3386 = vst [vmem:[#allocation2 + $0x88] sm:$0xff] %v3354_v37  ;;  %v3359_v25 = vadd.f32 %v4632_v18, %v3166_v15 }
 0x3bc   : > { %v3266_v60 = vpop.f32.mrf.mxu0 }
 0x3bd   : > { %3391 = vst [vmem:[#allocation2 + $0x8] sm:$0xff] %v3359_v25  ;;  %v3357_v2 = vadd.f32 %v3266_v60, %v3164_v46 }
 0x3be   : > { %v4633_v48 = vpop.f32.mrf.mxu0 }
 0x3bf   : > { %3389 = vst [vmem:[#allocation2 + $0x60] sm:$0xff] %v3357_v2  ;;  %v3360_v44 = vadd.f32 %v4633_v48, %v3167_v57 }
 0x3c0   : > { %v3269_v61 = vpop.f32.mrf.mxu0 }
 0x3c1   : > { %3392 = vst [vmem:[#allocation2 + $0x78] sm:$0xff] %v3360_v44  ;;  %v3358_v5 = vadd.f32 %v3269_v61, %v3165_v24 }
 0x3c2   : > { %v4636_v3 = vpop.f32.mrf.mxu0 }
 0x3c3   : > { %3390 = vst [vmem:[#allocation2 + $0xf0] sm:$0xff] %v3358_v5  ;;  %v3363_v7 = vadd.f32 %v4636_v3, %v3170_v52 }
 0x3c4   : > { %v3282_v40 = vpop.f32.mrf.mxu0 }
 0x3c5   : > { %3395 = vst [vmem:[#allocation2 + $0x40] sm:$0xff] %v3363_v7  ;;  %v3361_v63 = vadd.f32 %v3282_v40, %v3168_v51 }
 0x3c6   : > { %v4637_v30 = vpop.f32.mrf.mxu0 }
 0x3c7   : > { %3393 = vst [vmem:[#allocation2 + $0x38] sm:$0xff] %v3361_v63  ;;  %v3364_v59 = vadd.f32 %v4637_v30, %v3171_v20 }
 0x3c8   : > { %v3285_v4 = vpop.f32.mrf.mxu0 }
 0x3c9   : > { %3396 = vst [vmem:[#allocation2 + $0xc8] sm:$0xff] %v3364_v59  ;;  %v3362_v56 = vadd.f32 %v3285_v4, %v3169_v54 }
 0x3ca   : > { %v4640_v16 = vpop.f32.mrf.mxu0 }
 0x3cb   : > { %3394 = vst [vmem:[#allocation2 + $0x58] sm:$0xff] %v3362_v56  ;;  %v3367_v39 = vadd.f32 %v4640_v16, %v3174_v9 }
 0x3cc   : > { %v3298_v22 = vpop.f32.mrf.mxu0 }
 0x3cd   : > { %3399 = vst [vmem:[#allocation2 + $0x70] sm:$0xff] %v3367_v39  ;;  %v3365_v33 = vadd.f32 %v3298_v22, %v3172_v1 }
 0x3ce   : > { %v4641_v10 = vpop.f32.mrf.mxu0 }
 0x3cf   : > { %3397 = vst [vmem:[#allocation2 + $0xe0] sm:$0xff] %v3365_v33  ;;  %v3368_v8 = vadd.f32 %v4641_v10, %v3175_v35  ;;  %3412 = sbr.rel (%p4364_p6) target bundleno = 1275 (0x4fb), region = 72 }
 0x3d0   : > { %v3301_v32 = vpop.f32.mrf.mxu0 }
 0x3d1   : > { %3400 = vst [vmem:[#allocation2 + $0xc0] sm:$0xff] %v3368_v8  ;;  %v3366_v28 = vadd.f32 %v3301_v32, %v3173_v36 }
 0x3d3   : > { %3398 = vst [vmem:[#allocation2 + $0x90] sm:$0xff] %v3366_v28 }
 0x3d4   : > { %v3508_v58 = vld [vmem:[%s7321_s9 + $0x78] sm:$0xff]  ;;  %v3507_v13 = vld [vmem:[%s7321_s9 + $0x70] sm:$0xff]  ;;  %v3506_v50 = vld [vmem:[%s7321_s9 + $0x68] sm:$0xff] }
 0x3d5   : > { %v3460_v26 = vld [vmem:[%s7320_s8 + $0x78] sm:$0xff]  ;;  %4650 = vmatprep.subr.mxu0 %v3508_v58  ;;  %v3459_v31 = vld [vmem:[%s7320_s8 + $0x70] sm:$0xff]  ;;  %v3458_v0 = vld [vmem:[%s7320_s8 + $0x68] sm:$0xff] }
 0x3d6   : > { %4730 = vmatprep.subr.mxu1 %v3460_v26  ;;  %4651 = vmatpush3.msra.mxu0 %v3508_v58  ;;  %v3505_v17 = vld [vmem:[%s7321_s9 + $0x60] sm:$0xff]  ;;  %v3504_v55 = vld [vmem:[%s7321_s9 + $0x58] sm:$0xff]  ;;  %v3503_v27 = vld [vmem:[%s7321_s9 + $0x50] sm:$0xff] }
 0x3d7   : > { %4731 = vmatpush3.msra.mxu1 %v3460_v26  ;;  %4652 = vmatprep.subr.mxu0 %v3507_v13  ;;  %v3457_v14 = vld [vmem:[%s7320_s8 + $0x60] sm:$0xff]  ;;  %v3456_v38 = vld [vmem:[%s7320_s8 + $0x58] sm:$0xff]  ;;  %v3455_v47 = vld [vmem:[%s7320_s8 + $0x50] sm:$0xff] }
 0x3d8   : > { %4732 = vmatprep.subr.mxu1 %v3459_v31  ;;  %4653 = vmatpush3.msra.mxu0 %v3507_v13  ;;  %v3502_v62 = vld [vmem:[%s7321_s9 + $0x48] sm:$0xff]  ;;  %v3501_v45 = vld [vmem:[%s7321_s9 + $0x40] sm:$0xff]  ;;  %v3500_v19 = vld [vmem:[%s7321_s9 + $0x38] sm:$0xff] }
 0x3d9   : > { %4733 = vmatpush3.msra.mxu1 %v3459_v31  ;;  %4654 = vmatprep.subr.mxu0 %v3506_v50  ;;  %v3454_v29 = vld [vmem:[%s7320_s8 + $0x48] sm:$0xff]  ;;  %v3453_v41 = vld [vmem:[%s7320_s8 + $0x40] sm:$0xff]  ;;  %v3452_v11 = vld [vmem:[%s7320_s8 + $0x38] sm:$0xff] }
 0x3da   : > { %4734 = vmatprep.subr.mxu1 %v3458_v0  ;;  %4655 = vmatpush3.msra.mxu0 %v3506_v50  ;;  %v3499_v43 = vld [vmem:[%s7321_s9 + $0x30] sm:$0xff]  ;;  %v3498_v21 = vld [vmem:[%s7321_s9 + $0x28] sm:$0xff]  ;;  %v3497_v42 = vld [vmem:[%s7321_s9 + $0x20] sm:$0xff] }
 0x3db   : > { %4735 = vmatpush3.msra.mxu1 %v3458_v0  ;;  %4656 = vmatprep.subr.mxu0 %v3505_v17  ;;  %v3451_v49 = vld [vmem:[%s7320_s8 + $0x30] sm:$0xff]  ;;  %v3450_v6 = vld [vmem:[%s7320_s8 + $0x28] sm:$0xff]  ;;  %v3449_v53 = vld [vmem:[%s7320_s8 + $0x20] sm:$0xff] }
 0x3dc   : > { %4736 = vmatprep.subr.mxu1 %v3457_v14  ;;  %4657 = vmatpush3.msra.mxu0 %v3505_v17  ;;  %v3496_v12 = vld [vmem:[%s7321_s9 + $0x18] sm:$0xff]  ;;  %v3495_v23 = vld [vmem:[%s7321_s9 + $0x10] sm:$0xff]  ;;  %v3494_v37 = vld [vmem:[%s7321_s9 + $0x8] sm:$0xff] }
 0x3dd   : > { %4737 = vmatpush3.msra.mxu1 %v3457_v14  ;;  %4658 = vmatprep.subr.mxu0 %v3504_v55  ;;  %v3448_v34 = vld [vmem:[%s7320_s8 + $0x18] sm:$0xff]  ;;  %v3447_v15 = vld [vmem:[%s7320_s8 + $0x10] sm:$0xff]  ;;  %v3446_v18 = vld [vmem:[%s7320_s8 + $0x8] sm:$0xff] }
 0x3de   : > { %4738 = vmatprep.subr.mxu1 %v3456_v38  ;;  %4659 = vmatpush3.msra.mxu0 %v3504_v55  ;;  %v3493_v46 = vld [vmem:[%s7321_s9] sm:$0xff]  ;;  %v3461_v60 = vld [vmem:[#allocation2 + $0xb0] sm:$0xff]  ;;  %v3414_v48 = vld [vmem:[%s7312_s0 + $0x8] sm:$0xff] }
 0x3df   : > { %4739 = vmatpush3.msra.mxu1 %v3456_v38  ;;  %4660 = vmatprep.subr.mxu0 %v3503_v27  ;;  %v3445_v25 = vld [vmem:[%s7320_s8] sm:$0xff]  ;;  %v3463_v24 = vld [vmem:[#allocation2 + $0xd8] sm:$0xff]  ;;  %v3415_v44 = vld [vmem:[%s7312_s0 + $0x10] sm:$0xff] }
 0x3e0   : > { %4740 = vmatprep.subr.mxu1 %v3455_v47  ;;  %4661 = vmatpush3.msra.mxu0 %v3503_v27  ;;  %v3413_v57 = vld [vmem:[%s7312_s0] sm:$0xff]  ;;  %v3464_v61 = vld [vmem:[#allocation2 + $0x18] sm:$0xff]  ;;  %v3465_v5 = vld [vmem:[#allocation2 + $0x50] sm:$0xff] }
 0x3e1   : > { %4741 = vmatpush3.msra.mxu1 %v3455_v47  ;;  %4662 = vmatprep.subr.mxu0 %v3502_v62  ;;  %v3462_v2 = vld [vmem:[#allocation2] sm:$0xff]  ;;  %v3416_v52 = vld [vmem:[%s7312_s0 + $0x18] sm:$0xff]  ;;  %v3466_v51 = vld [vmem:[#allocation2 + $0x68] sm:$0xff] }
 0x3e2   : > { %4742 = vmatprep.subr.mxu1 %v3454_v29  ;;  %4663 = vmatpush3.msra.mxu0 %v3502_v62  ;;  %v3417_v3 = vld [vmem:[%s7312_s0 + $0x20] sm:$0xff]  ;;  %v3418_v7 = vld [vmem:[%s7312_s0 + $0x28] sm:$0xff]  ;;  %v3467_v40 = vld [vmem:[#allocation2 + $0x30] sm:$0xff] }
 0x3e3   : > { %4743 = vmatpush3.msra.mxu1 %v3454_v29  ;;  %4664 = vmatprep.subr.mxu0 %v3501_v45  ;;  %v3419_v20 = vld [vmem:[%s7312_s0 + $0x30] sm:$0xff]  ;;  %v3468_v63 = vld [vmem:[#allocation2 + $0x48] sm:$0xff]  ;;  %v3420_v30 = vld [vmem:[%s7312_s0 + $0x38] sm:$0xff] }
 0x3e4   : > { %4744 = vmatprep.subr.mxu1 %v3453_v41  ;;  %4665 = vmatpush3.msra.mxu0 %v3501_v45  ;;  %v3469_v54 = vld [vmem:[#allocation2 + $0x80] sm:$0xff]  ;;  %v3470_v4 = vld [vmem:[#allocation2 + $0x88] sm:$0xff]  ;;  %v3423_v16 = vld [vmem:[%s7312_s0 + $0x50] sm:$0xff] }
 0x3e5   : > { %4745 = vmatpush3.msra.mxu1 %v3453_v41  ;;  %4666 = vmatprep.subr.mxu0 %v3500_v19  ;;  %v3421_v59 = vld [vmem:[%s7312_s0 + $0x40] sm:$0xff]  ;;  %v3422_v9 = vld [vmem:[%s7312_s0 + $0x48] sm:$0xff]  ;;  %v3472_v1 = vld [vmem:[#allocation2 + $0xb8] sm:$0xff] }
 0x3e6   : > { %4746 = vmatprep.subr.mxu1 %v3452_v11  ;;  %4667 = vmatpush3.msra.mxu0 %v3500_v19  ;;  %v3471_v56 = vld [vmem:[#allocation2 + $0xe8] sm:$0xff]  ;;  %v3424_v39 = vld [vmem:[%s7312_s0 + $0x58] sm:$0xff]  ;;  %v3473_v22 = vld [vmem:[#allocation2 + $0x60] sm:$0xff] }
 0x3e7   : > { %4747 = vmatpush3.msra.mxu1 %v3452_v11  ;;  %4668 = vmatprep.subr.mxu0 %v3499_v43  ;;  %v3425_v35 = vld [vmem:[%s7312_s0 + $0x60] sm:$0xff]  ;;  %v3474_v33 = vld [vmem:[#allocation2 + $0xf0] sm:$0xff]  ;;  %v3426_v10 = vld [vmem:[%s7312_s0 + $0x68] sm:$0xff] }
 0x3e8   : > { %4748 = vmatprep.subr.mxu1 %v3451_v49  ;;  %4669 = vmatpush3.msra.mxu0 %v3499_v43  ;;  %v3475_v36 = vld [vmem:[#allocation2 + $0x8] sm:$0xff]  ;;  %v3427_v8 = vld [vmem:[%s7312_s0 + $0x70] sm:$0xff]  ;;  %v3476_v32 = vld [vmem:[#allocation2 + $0x78] sm:$0xff] }
 0x3e9   : > { %4749 = vmatpush3.msra.mxu1 %v3451_v49  ;;  %4670 = vmatprep.subr.mxu0 %v3498_v21  ;;  %v3428_v28 = vld [vmem:[%s7312_s0 + $0x78] sm:$0xff]  ;;  %v3429_v26 = vld [vmem:[%s7312_s0 + $0x80] sm:$0xff]  ;;  %v3430_v31 = vld [vmem:[%s7312_s0 + $0x88] sm:$0xff] }
 0x3ea   : > { %4750 = vmatprep.subr.mxu1 %v3450_v6  ;;  %4671 = vmatpush3.msra.mxu0 %v3498_v21  ;;  %v3477_v58 = vld [vmem:[#allocation2 + $0x38] sm:$0xff]  ;;  %v3479_v50 = vld [vmem:[#allocation2 + $0x40] sm:$0xff]  ;;  %v3431_v0 = vld [vmem:[%s7312_s0 + $0x90] sm:$0xff] }
 0x3eb   : > { %4751 = vmatpush3.msra.mxu1 %v3450_v6  ;;  %4672 = vmatprep.subr.mxu0 %v3497_v42  ;;  %v3478_v13 = vld [vmem:[#allocation2 + $0x58] sm:$0xff]  ;;  %v3480_v17 = vld [vmem:[#allocation2 + $0xc8] sm:$0xff]  ;;  %v3481_v55 = vld [vmem:[#allocation2 + $0xe0] sm:$0xff] }
 0x3ec   : > { %4752 = vmatprep.subr.mxu1 %v3449_v53  ;;  %4673 = vmatpush3.msra.mxu0 %v3497_v42  ;;  %v3432_v14 = vld [vmem:[%s7312_s0 + $0x98] sm:$0xff]  ;;  %v3433_v38 = vld [vmem:[%s7312_s0 + $0xa0] sm:$0xff]  ;;  %v3482_v27 = vld [vmem:[#allocation2 + $0x90] sm:$0xff] }
 0x3ed   : > { %4753 = vmatpush3.msra.mxu1 %v3449_v53  ;;  %4674 = vmatprep.subr.mxu0 %v3496_v12  ;;  %v3434_v47 = vld [vmem:[%s7312_s0 + $0xa8] sm:$0xff]  ;;  %v3483_v62 = vld [vmem:[#allocation2 + $0x70] sm:$0xff]  ;;  %v3484_v45 = vld [vmem:[#allocation2 + $0xc0] sm:$0xff] }
 0x3ee   : > { %4754 = vmatprep.subr.mxu1 %v3448_v34  ;;  %4675 = vmatpush3.msra.mxu0 %v3496_v12  ;;  %v3435_v29 = vld [vmem:[%s7312_s0 + $0xb0] sm:$0xff]  ;;  %v3436_v41 = vld [vmem:[%s7312_s0 + $0xb8] sm:$0xff]  ;;  %v3485_v19 = vld [vmem:[#allocation2 + $0xa8] sm:$0xff] }
 0x3ef   : > { %4755 = vmatpush3.msra.mxu1 %v3448_v34  ;;  %4676 = vmatprep.subr.mxu0 %v3495_v23  ;;  %v3437_v11 = vld [vmem:[%s7312_s0 + $0xc0] sm:$0xff]  ;;  %v3486_v43 = vld [vmem:[#allocation2 + $0xd0] sm:$0xff]  ;;  %v3438_v49 = vld [vmem:[%s7312_s0 + $0xc8] sm:$0xff] }
 0x3f0   : > { %4756 = vmatprep.subr.mxu1 %v3447_v15  ;;  %4677 = vmatpush3.msra.mxu0 %v3495_v23  ;;  %v3487_v21 = vld [vmem:[#allocation2 + $0x10] sm:$0xff]  ;;  %v3488_v42 = vld [vmem:[#allocation2 + $0x28] sm:$0xff]  ;;  %v3440_v53 = vld [vmem:[%s7312_s0 + $0xd8] sm:$0xff] }
 0x3f1   : > { %4757 = vmatpush3.msra.mxu1 %v3447_v15  ;;  %4678 = vmatprep.subr.mxu0 %v3494_v37  ;;  %v3439_v6 = vld [vmem:[%s7312_s0 + $0xd0] sm:$0xff]  ;;  %v3489_v12 = vld [vmem:[#allocation2 + $0xa0] sm:$0xff]  ;;  %v3490_v23 = vld [vmem:[#allocation2 + $0xf8] sm:$0xff] }
 0x3f2   : > { %4758 = vmatprep.subr.mxu1 %v3446_v18  ;;  %4679 = vmatpush3.msra.mxu0 %v3494_v37  ;;  %v3441_v34 = vld [vmem:[%s7312_s0 + $0xe0] sm:$0xff]  ;;  %v3442_v15 = vld [vmem:[%s7312_s0 + $0xe8] sm:$0xff] }
 0x3f3   : > { %4759 = vmatpush3.msra.mxu1 %v3446_v18  ;;  %4680 = vmatprep.subr.mxu0 %v3493_v46  ;;  %v3491_v37 = vld [vmem:[#allocation2 + $0x20] sm:$0xff]  ;;  %v3443_v18 = vld [vmem:[%s7312_s0 + $0xf0] sm:$0xff] }
 0x3f4   : > { %4760 = vmatprep.subr.mxu1 %v3445_v25  ;;  %4681 = vmatpush3.msra.mxu0 %v3493_v46  ;;  %v3492_v46 = vld [vmem:[#allocation2 + $0x98] sm:$0xff] }
 0x3f5   : > { %4682 = vmatprep.mubr.f32.mxu0 %v3461_v60  ;;  %4761 = vmatpush3.msra.mxu1 %v3445_v25  ;;  %v3444_v25 = vld [vmem:[%s7312_s0 + $0xf8] sm:$0xff] }
 0x3f6   : > { %4762 = vmatprep.mubr.f32.mxu1 %v3413_v57  ;;  %4683 = vmatmul.mubr.f32.vlgmr.msra.gmra.mxu0 %v3462_v2  ;;  %v7263_v2 = vld [vmem:[%s7322_s10] ss:$0 sm:$0xff] }
 0x3f7   : > { %4763 = vmatmul.mubr.f32.vlgmr.msra.gmra.mxu1 %v3414_v48  ;;  %4685 = vmatprep.mubr.f32.mxu0 %v3463_v24 }
 0x3f8   : > { %4765 = vmatprep.mubr.f32.mxu1 %v3415_v44 }
 0x3fa   : > { %4686 = vmatmul.mubr.f32.gmra.mxu0 %v3464_v61 }
 0x3fb   : > { %4766 = vmatmul.mubr.f32.gmra.mxu1 %v3416_v52  ;;  %4688 = vmatprep.mubr.f32.mxu0 %v3465_v5 }
 0x3fc   : > { %4768 = vmatprep.mubr.f32.mxu1 %v3417_v3 }
 0x3fe   : > { %4689 = vmatmul.mubr.f32.gmra.mxu0 %v3466_v51 }
 0x3ff   : > { %4769 = vmatmul.mubr.f32.gmra.mxu1 %v3418_v7  ;;  %4691 = vmatprep.mubr.f32.mxu0 %v3467_v40 }
 0x400   : > { %4771 = vmatprep.mubr.f32.mxu1 %v3419_v20 }
 0x402   : > { %4692 = vmatmul.mubr.f32.gmra.mxu0 %v3468_v63 }
 0x403   : > { %4772 = vmatmul.mubr.f32.gmra.mxu1 %v3420_v30  ;;  %4694 = vmatprep.mubr.f32.mxu0 %v3469_v54 }
 0x404   : > { %4774 = vmatprep.mubr.f32.mxu1 %v3421_v59 }
 0x406   : > { %4695 = vmatmul.mubr.f32.gmra.mxu0 %v3470_v4 }
 0x407   : > { %4775 = vmatmul.mubr.f32.gmra.mxu1 %v3422_v9  ;;  %4697 = vmatprep.mubr.f32.mxu0 %v3471_v56 }
 0x408   : > { %4777 = vmatprep.mubr.f32.mxu1 %v3423_v16 }
 0x40a   : > { %4698 = vmatmul.mubr.f32.gmra.mxu0 %v3472_v1 }
 0x40b   : > { %4778 = vmatmul.mubr.f32.gmra.mxu1 %v3424_v39  ;;  %4700 = vmatprep.mubr.f32.mxu0 %v3473_v22 }
 0x40c   : > { %4780 = vmatprep.mubr.f32.mxu1 %v3425_v35 }
 0x40e   : > { %4701 = vmatmul.mubr.f32.gmra.mxu0 %v3474_v33 }
 0x40f   : > { %4781 = vmatmul.mubr.f32.gmra.mxu1 %v3426_v10  ;;  %4703 = vmatprep.mubr.f32.mxu0 %v3475_v36 }
 0x410   : > { %4783 = vmatprep.mubr.f32.mxu1 %v3427_v8 }
 0x412   : > { %4704 = vmatmul.mubr.f32.gmra.mxu0 %v3476_v32 }
 0x413   : > { %4784 = vmatmul.mubr.f32.gmra.mxu1 %v3428_v28  ;;  %4706 = vmatprep.mubr.f32.mxu0 %v3477_v58 }
 0x414   : > { %4786 = vmatprep.mubr.f32.mxu1 %v3429_v26 }
 0x416   : > { %4707 = vmatmul.mubr.f32.gmra.mxu0 %v3478_v13 }
 0x417   : > { %4787 = vmatmul.mubr.f32.gmra.mxu1 %v3430_v31  ;;  %4709 = vmatprep.mubr.f32.mxu0 %v3479_v50 }
 0x418   : > { %4789 = vmatprep.mubr.f32.mxu1 %v3431_v0 }
 0x41a   : > { %4710 = vmatmul.mubr.f32.gmra.mxu0 %v3480_v17 }
 0x41b   : > { %4790 = vmatmul.mubr.f32.gmra.mxu1 %v3432_v14  ;;  %4712 = vmatprep.mubr.f32.mxu0 %v3481_v55 }
 0x41c   : > { %4792 = vmatprep.mubr.f32.mxu1 %v3433_v38 }
 0x41e   : > { %4713 = vmatmul.mubr.f32.gmra.mxu0 %v3482_v27 }
 0x41f   : > { %4793 = vmatmul.mubr.f32.gmra.mxu1 %v3434_v47  ;;  %4715 = vmatprep.mubr.f32.mxu0 %v3483_v62 }
 0x420   : > { %4795 = vmatprep.mubr.f32.mxu1 %v3435_v29 }
 0x422   : > { %4716 = vmatmul.mubr.f32.gmra.mxu0 %v3484_v45 }
 0x423   : > { %4796 = vmatmul.mubr.f32.gmra.mxu1 %v3436_v41  ;;  %4718 = vmatprep.mubr.f32.mxu0 %v3485_v19 }
 0x424   : > { %4798 = vmatprep.mubr.f32.mxu1 %v3437_v11 }
 0x426   : > { %4719 = vmatmul.mubr.f32.gmra.mxu0 %v3486_v43 }
 0x427   : > { %4799 = vmatmul.mubr.f32.gmra.mxu1 %v3438_v49  ;;  %4721 = vmatprep.mubr.f32.mxu0 %v3487_v21 }
 0x428   : > { %4801 = vmatprep.mubr.f32.mxu1 %v3439_v6 }
 0x42a   : > { %4722 = vmatmul.mubr.f32.gmra.mxu0 %v3488_v42 }
 0x42b   : > { %4802 = vmatmul.mubr.f32.gmra.mxu1 %v3440_v53  ;;  %4724 = vmatprep.mubr.f32.mxu0 %v3489_v12 }
 0x42c   : > { %4804 = vmatprep.mubr.f32.mxu1 %v3441_v34 }
 0x42e   : > { %4725 = vmatmul.mubr.f32.gmra.mxu0 %v3490_v23 }
 0x42f   : > { %4805 = vmatmul.mubr.f32.gmra.mxu1 %v3442_v15  ;;  %4727 = vmatprep.mubr.f32.mxu0 %v3491_v37 }
 0x430   : > { %4807 = vmatprep.mubr.f32.mxu1 %v3443_v18 }
 0x432   : > { %4728 = vmatmul.mubr.f32.gmra.mxu0 %v3492_v46 }
 0x433   : > { %4808 = vmatmul.mubr.f32.gmra.mxu1 %v3444_v25 }
 0x4b6   : > { %v4684_v60 = vpop.f32.mrf.mxu0 }
 0x4b7   : > { %v4764_v57 = vpop.f32.mrf.mxu1 }
 0x4b8   : > { %v3806_v48 = vadd.f32 %v4764_v57, %v4684_v60  ;;  %v3575_v24 = vpop.f32.mrf.mxu0 }
 0x4b9   : > { %v3800_v44 = vpop.f32.mrf.mxu1 }
 0x4ba   : > { %v3967_v61 = vadd.f32 %v7263_v2, %v3806_v48  ;;  %v3801_v52 = vadd.f32 %v3800_v44, %v3575_v24  ;;  %v4687_v5 = vpop.f32.mrf.mxu0 }
 0x4bb   : > { %v4767_v3 = vpop.f32.mrf.mxu1 }
 0x4bc   : > { %3999 = vst [vmem:[#allocation3 + $0x8] sm:$0xff] %v3967_v61  ;;  %v3966_v51 = vadd.f32 %v7263_v2, %v3801_v52  ;;  %v3816_v7 = vadd.f32 %v4767_v3, %v4687_v5  ;;  %v3585_v40 = vpop.f32.mrf.mxu0 }
 0x4bd   : > { %v3810_v20 = vpop.f32.mrf.mxu1 }
 0x4be   : > { %3998 = vst [vmem:[#allocation3] sm:$0xff] %v3966_v51  ;;  %v3969_v63 = vadd.f32 %v7263_v2, %v3816_v7  ;;  %v3811_v30 = vadd.f32 %v3810_v20, %v3585_v40  ;;  %v4690_v54 = vpop.f32.mrf.mxu0 }
 0x4bf   : > { %v4770_v59 = vpop.f32.mrf.mxu1 }
 0x4c0   : > { %4001 = vst [vmem:[#allocation3 + $0x18] sm:$0xff] %v3969_v63  ;;  %v3968_v4 = vadd.f32 %v7263_v2, %v3811_v30  ;;  %v3826_v9 = vadd.f32 %v4770_v59, %v4690_v54  ;;  %v3595_v56 = vpop.f32.mrf.mxu0 }
 0x4c1   : > { %v3820_v16 = vpop.f32.mrf.mxu1 }
 0x4c2   : > { %4000 = vst [vmem:[#allocation3 + $0x10] sm:$0xff] %v3968_v4  ;;  %v3971_v1 = vadd.f32 %v7263_v2, %v3826_v9  ;;  %v3821_v39 = vadd.f32 %v3820_v16, %v3595_v56  ;;  %v4693_v22 = vpop.f32.mrf.mxu0 }
 0x4c3   : > { %v4773_v35 = vpop.f32.mrf.mxu1 }
 0x4c4   : > { %4003 = vst [vmem:[#allocation3 + $0x28] sm:$0xff] %v3971_v1  ;;  %v3970_v33 = vadd.f32 %v7263_v2, %v3821_v39  ;;  %v3836_v10 = vadd.f32 %v4773_v35, %v4693_v22  ;;  %v3605_v36 = vpop.f32.mrf.mxu0 }
 0x4c5   : > { %v3830_v8 = vpop.f32.mrf.mxu1 }
 0x4c6   : > { %4002 = vst [vmem:[#allocation3 + $0x20] sm:$0xff] %v3970_v33  ;;  %v3973_v32 = vadd.f32 %v7263_v2, %v3836_v10  ;;  %v3831_v28 = vadd.f32 %v3830_v8, %v3605_v36  ;;  %v4696_v58 = vpop.f32.mrf.mxu0 }
 0x4c7   : > { %v4776_v26 = vpop.f32.mrf.mxu1 }
 0x4c8   : > { %4005 = vst [vmem:[#allocation3 + $0x38] sm:$0xff] %v3973_v32  ;;  %v3972_v13 = vadd.f32 %v7263_v2, %v3831_v28  ;;  %v3846_v31 = vadd.f32 %v4776_v26, %v4696_v58  ;;  %v3615_v50 = vpop.f32.mrf.mxu0 }
 0x4c9   : > { %v3840_v0 = vpop.f32.mrf.mxu1 }
 0x4ca   : > { %4004 = vst [vmem:[#allocation3 + $0x30] sm:$0xff] %v3972_v13  ;;  %v3975_v17 = vadd.f32 %v7263_v2, %v3846_v31  ;;  %v3841_v14 = vadd.f32 %v3840_v0, %v3615_v50  ;;  %v4699_v55 = vpop.f32.mrf.mxu0 }
 0x4cb   : > { %v4779_v38 = vpop.f32.mrf.mxu1 }
 0x4cc   : > { %4007 = vst [vmem:[#allocation3 + $0x48] sm:$0xff] %v3975_v17  ;;  %v3974_v27 = vadd.f32 %v7263_v2, %v3841_v14  ;;  %v3856_v47 = vadd.f32 %v4779_v38, %v4699_v55  ;;  %v3625_v62 = vpop.f32.mrf.mxu0 }
 0x4cd   : > { %v3850_v29 = vpop.f32.mrf.mxu1 }
 0x4ce   : > { %4006 = vst [vmem:[#allocation3 + $0x40] sm:$0xff] %v3974_v27  ;;  %v3977_v45 = vadd.f32 %v7263_v2, %v3856_v47  ;;  %v3851_v41 = vadd.f32 %v3850_v29, %v3625_v62  ;;  %v4702_v19 = vpop.f32.mrf.mxu0 }
 0x4cf   : > { %v4782_v11 = vpop.f32.mrf.mxu1 }
 0x4d0   : > { %4009 = vst [vmem:[#allocation3 + $0x58] sm:$0xff] %v3977_v45  ;;  %v3976_v43 = vadd.f32 %v7263_v2, %v3851_v41  ;;  %v3866_v49 = vadd.f32 %v4782_v11, %v4702_v19  ;;  %v3635_v21 = vpop.f32.mrf.mxu0 }
 0x4d1   : > { %v3860_v6 = vpop.f32.mrf.mxu1 }
 0x4d2   : > { %4008 = vst [vmem:[#allocation3 + $0x50] sm:$0xff] %v3976_v43  ;;  %v3979_v42 = vadd.f32 %v7263_v2, %v3866_v49  ;;  %v3861_v53 = vadd.f32 %v3860_v6, %v3635_v21  ;;  %v4705_v12 = vpop.f32.mrf.mxu0 }
 0x4d3   : > { %v4785_v34 = vpop.f32.mrf.mxu1 }
 0x4d4   : > { %4011 = vst [vmem:[#allocation3 + $0x68] sm:$0xff] %v3979_v42  ;;  %v3978_v23 = vadd.f32 %v7263_v2, %v3861_v53  ;;  %v3876_v15 = vadd.f32 %v4785_v34, %v4705_v12  ;;  %v3645_v37 = vpop.f32.mrf.mxu0 }
 0x4d5   : > { %v3870_v18 = vpop.f32.mrf.mxu1 }
 0x4d6   : > { %4010 = vst [vmem:[#allocation3 + $0x60] sm:$0xff] %v3978_v23  ;;  %v3981_v46 = vadd.f32 %v7263_v2, %v3876_v15  ;;  %v3871_v25 = vadd.f32 %v3870_v18, %v3645_v37  ;;  %v4708_v60 = vpop.f32.mrf.mxu0 }
 0x4d7   : > { %v4788_v57 = vpop.f32.mrf.mxu1 }
 0x4d8   : > { %4013 = vst [vmem:[#allocation3 + $0x78] sm:$0xff] %v3981_v46  ;;  %v3980_v48 = vadd.f32 %v7263_v2, %v3871_v25  ;;  %v3886_v24 = vadd.f32 %v4788_v57, %v4708_v60  ;;  %v3655_v44 = vpop.f32.mrf.mxu0 }
 0x4d9   : > { %v3880_v61 = vpop.f32.mrf.mxu1 }
 0x4da   : > { %4012 = vst [vmem:[#allocation3 + $0x70] sm:$0xff] %v3980_v48  ;;  %v3983_v52 = vadd.f32 %v7263_v2, %v3886_v24  ;;  %v3881_v5 = vadd.f32 %v3880_v61, %v3655_v44  ;;  %v4711_v3 = vpop.f32.mrf.mxu0 }
 0x4db   : > { %v4791_v51 = vpop.f32.mrf.mxu1 }
 0x4dc   : > { %4015 = vst [vmem:[#allocation3 + $0x88] sm:$0xff] %v3983_v52  ;;  %v3982_v7 = vadd.f32 %v7263_v2, %v3881_v5  ;;  %v3896_v40 = vadd.f32 %v4791_v51, %v4711_v3  ;;  %v3665_v20 = vpop.f32.mrf.mxu0 }
 0x4dd   : > { %v3890_v63 = vpop.f32.mrf.mxu1 }
 0x4de   : > { %4014 = vst [vmem:[#allocation3 + $0x80] sm:$0xff] %v3982_v7  ;;  %v3985_v30 = vadd.f32 %v7263_v2, %v3896_v40  ;;  %v3891_v54 = vadd.f32 %v3890_v63, %v3665_v20  ;;  %v4714_v59 = vpop.f32.mrf.mxu0 }
 0x4df   : > { %v4794_v4 = vpop.f32.mrf.mxu1 }
 0x4e0   : > { %4017 = vst [vmem:[#allocation3 + $0x98] sm:$0xff] %v3985_v30  ;;  %v3984_v9 = vadd.f32 %v7263_v2, %v3891_v54  ;;  %v3906_v56 = vadd.f32 %v4794_v4, %v4714_v59  ;;  %v3675_v16 = vpop.f32.mrf.mxu0 }
 0x4e1   : > { %v3900_v1 = vpop.f32.mrf.mxu1 }
 0x4e2   : > { %4016 = vst [vmem:[#allocation3 + $0x90] sm:$0xff] %v3984_v9  ;;  %v3987_v39 = vadd.f32 %v7263_v2, %v3906_v56  ;;  %v3901_v22 = vadd.f32 %v3900_v1, %v3675_v16  ;;  %v4717_v35 = vpop.f32.mrf.mxu0 }
 0x4e3   : > { %v4797_v33 = vpop.f32.mrf.mxu1 }
 0x4e4   : > { %4019 = vst [vmem:[#allocation3 + $0xa8] sm:$0xff] %v3987_v39  ;;  %v3986_v10 = vadd.f32 %v7263_v2, %v3901_v22  ;;  %v3916_v36 = vadd.f32 %v4797_v33, %v4717_v35  ;;  %v3685_v8 = vpop.f32.mrf.mxu0 }
 0x4e5   : > { %v3910_v32 = vpop.f32.mrf.mxu1 }
 0x4e6   : > { %4018 = vst [vmem:[#allocation3 + $0xa0] sm:$0xff] %v3986_v10  ;;  %v3989_v28 = vadd.f32 %v7263_v2, %v3916_v36  ;;  %v3911_v58 = vadd.f32 %v3910_v32, %v3685_v8  ;;  %v4720_v26 = vpop.f32.mrf.mxu0 }
 0x4e7   : > { %v4800_v13 = vpop.f32.mrf.mxu1 }
 0x4e8   : > { %4021 = vst [vmem:[#allocation3 + $0xb8] sm:$0xff] %v3989_v28  ;;  %v3988_v31 = vadd.f32 %v7263_v2, %v3911_v58  ;;  %v3926_v50 = vadd.f32 %v4800_v13, %v4720_v26  ;;  %v3695_v0 = vpop.f32.mrf.mxu0 }
 0x4e9   : > { %v3920_v17 = vpop.f32.mrf.mxu1 }
 0x4ea   : > { %4020 = vst [vmem:[#allocation3 + $0xb0] sm:$0xff] %v3988_v31  ;;  %v3991_v14 = vadd.f32 %v7263_v2, %v3926_v50  ;;  %v3921_v55 = vadd.f32 %v3920_v17, %v3695_v0  ;;  %v4723_v38 = vpop.f32.mrf.mxu0 }
 0x4eb   : > { %v4803_v27 = vpop.f32.mrf.mxu1 }
 0x4ec   : > { %4023 = vst [vmem:[#allocation3 + $0xc8] sm:$0xff] %v3991_v14  ;;  %v3990_v47 = vadd.f32 %v7263_v2, %v3921_v55  ;;  %v3936_v62 = vadd.f32 %v4803_v27, %v4723_v38  ;;  %v3705_v29 = vpop.f32.mrf.mxu0 }
 0x4ed   : > { %v3930_v45 = vpop.f32.mrf.mxu1 }
 0x4ee   : > { %4022 = vst [vmem:[#allocation3 + $0xc0] sm:$0xff] %v3990_v47  ;;  %v3993_v41 = vadd.f32 %v7263_v2, %v3936_v62  ;;  %v3931_v19 = vadd.f32 %v3930_v45, %v3705_v29  ;;  %v4726_v11 = vpop.f32.mrf.mxu0 }
 0x4ef   : > { %v4806_v43 = vpop.f32.mrf.mxu1 }
 0x4f0   : > { %4025 = vst [vmem:[#allocation3 + $0xd8] sm:$0xff] %v3993_v41  ;;  %v3992_v49 = vadd.f32 %v7263_v2, %v3931_v19  ;;  %v3946_v21 = vadd.f32 %v4806_v43, %v4726_v11  ;;  %v3715_v6 = vpop.f32.mrf.mxu0 }
 0x4f1   : > { %v3940_v42 = vpop.f32.mrf.mxu1 }
 0x4f2   : > { %4024 = vst [vmem:[#allocation3 + $0xd0] sm:$0xff] %v3992_v49  ;;  %v3995_v53 = vadd.f32 %v7263_v2, %v3946_v21  ;;  %v3941_v12 = vadd.f32 %v3940_v42, %v3715_v6  ;;  %v4729_v34 = vpop.f32.mrf.mxu0 }
 0x4f3   : > { %v4809_v23 = vpop.f32.mrf.mxu1 }
 0x4f4   : > { %4027 = vst [vmem:[#allocation3 + $0xe8] sm:$0xff] %v3995_v53  ;;  %v3994_v15 = vadd.f32 %v7263_v2, %v3941_v12  ;;  %v3956_v37 = vadd.f32 %v4809_v23, %v4729_v34  ;;  %v3725_v18 = vpop.f32.mrf.mxu0 }
 0x4f5   : > { %v3950_v46 = vpop.f32.mrf.mxu1 }
 0x4f6   : > { %4026 = vst [vmem:[#allocation3 + $0xe0] sm:$0xff] %v3994_v15  ;;  %v3997_v25 = vadd.f32 %v7263_v2, %v3956_v37  ;;  %v3951_v60 = vadd.f32 %v3950_v46, %v3725_v18 }
 0x4f8   : > { %4029 = vst [vmem:[#allocation3 + $0xf8] sm:$0xff] %v3997_v25  ;;  %v3996_v57 = vadd.f32 %v7263_v2, %v3951_v60 }
 0x4fa   : > { %4028 = vst [vmem:[#allocation3 + $0xf0] sm:$0xff] %v3996_v57 }
 0x4fb PF: > { %p4894_p7 = scmp.eq.s32.totalorder %s5130_s18, 3  ;;  %s5061_s24 = smov [#allocation3]  }
 0x4fc   : > { %s4036_s25 = sshll.u32 %s5061_s24, 4  ;;  %s4037_s25 = int_to_ptr.vmem [resolvable:$true] %s4036_s25 }
 0x4fd   : > { %s5015_s12 = scalar_lea.vmem %s4037_s25, 4096  ;;  %p5022_p11 = scmp.lt.s32.totalorder %s4037_s25, %s4037_s25 }
 0x4fe   : > { %p5016_p8 = scmp.ne.s32.totalorder %s4037_s25, %s5015_s12  ;;  %p5023_p12 = scmp.lt.s32.totalorder %s5015_s12, %s5015_s12 }
 0x500   : > { %p5017_p9 = pnand %p5016_p8, %p4894_p7  ;;  %p5024_p13 = por %p5023_p12, %p5022_p11 }
 0x502   : > { %p5018_p10 = pneg %p5017_p9 }
 0x504   : > { %p5025_p0 = pnand %p5024_p13, %p5018_p10 }
 0x506   : > { %5028 = shalt.err (!%p5025_p0)
}
 0x507   : > { %s5062_s26 = smov 128   ;;  %s5063_s20 = smov 8  }
 0x508   : > { %4891 = dma.vmem_to_hbm [thread:$0]  (%p4894_p7), %s4037_s25, 4096, %s7323_s11, [#allocation4], %s5062_s26, %s5062_s26, %s5063_s20  }
 0x509   : > { %5044 = dma.done.wait (%p4894_p7), [#allocation4], 4096  }
 0x50a   : > { %5046 = vsyncadd (%p4894_p7), [#allocation4], 4294963200 }
 0x50b PF: > { %s22_s17 = sadd.s32 1, %s5049_s17  }
 0x50c   : > { %p19_p1 = scmp.ge.s32.totalorder %s22_s17, 6  }
 0x50e   :  { %21 = sbr.rel (!%p19_p1) target bundleno = 1 (0x1), region = 108 }
 0x513   :  { %4052 = vsyncpa [#allocation4], 1 }
 0x514   :  { %4054 = vsyncpa [#allocation4 + $0x1], 1 }

</bundles_post_ra>
